<compile_context>
chip_gen: v7x
topology: tpu7x:2x2x1
jax: 0.10.0
libtpu: 0.0.40
codegen_flags: <defaults>
</compile_context>

<pallas_src>
import functools

import jax
import jax.numpy as jnp
from jax import lax
from jax.experimental import pallas as pl
from jax.experimental.pallas import tpu as pltpu

BN_EPS = 1e-5
LANE = 128          # TPU lane width: Cout is padded up to a multiple of this.
DEFAULT_TM = 512    # rows (N*Ho*Wo) per tile; keeps the double-buffered
                    # working set well under scoped VMEM on v5e/v6e/v7x.


# ----------------------------------------------------------------------------
# Small helpers
# ----------------------------------------------------------------------------
def _cdiv(a, b):
    return -(-a // b)


def _round_up(a, m):
    return _cdiv(a, m) * m


def _choose_tiling(m, max_tm=DEFAULT_TM):
    """Pick (TM, M_pad, grid) with M_pad = TM*grid >= m, TM % 8 == 0, TM <= ~max_tm."""
    grid = max(1, _cdiv(m, max_tm))
    tm = _round_up(_cdiv(m, grid), 8)
    return tm, tm * grid, grid


def _pad2d(x, rows, cols):
    pr, pc = rows - x.shape[0], cols - x.shape[1]
    if pr or pc:
        x = jnp.pad(x, ((0, pr), (0, pc)))
    return x


def _pad1d(x, n):
    if n != x.shape[0]:
        x = jnp.pad(x, (0, n - x.shape[0]))
    return x


# ----------------------------------------------------------------------------
# Pallas kernels
# ----------------------------------------------------------------------------
def _matmul_stats_kernel(p_ref, w_ref, y_ref, sum_ref, sq_ref):
    """Pass 1: per-tile MXU matmul; accumulate per-channel sum / sum-of-squares
    into grid-resident (1, Cp) outputs (exact batch statistics despite M-tiling)."""
    @pl.when(pl.program_id(0) == 0)
    def _():
        sum_ref[...] = jnp.zeros_like(sum_ref)
        sq_ref[...] = jnp.zeros_like(sq_ref)

    y = jnp.dot(p_ref[...], w_ref[...], preferred_element_type=jnp.float32)
    y_ref[...] = y
    sum_ref[...] += jnp.sum(y, axis=0, keepdims=True)
    sq_ref[...] += jnp.sum(y * y, axis=0, keepdims=True)


def _make_matmul_act_kernel(use_relu, use_residual):
    """Single-pass (no BatchNorm): matmul [+ReLU] [+residual]."""
    def kernel(*refs):
        if use_residual:
            p_ref, w_ref, r_ref, o_ref = refs
        else:
            p_ref, w_ref, o_ref = refs
        y = jnp.dot(p_ref[...], w_ref[...], preferred_element_type=jnp.float32)
        if use_relu:
            y = jnp.maximum(y, 0.0)
        if use_residual:
            y = y + r_ref[...]
        o_ref[...] = y
    return kernel


def _make_norm_act_kernel(use_relu, use_residual):
    """Pass 2: y*scale + shift [+ReLU] [+residual]; gamma/beta/mean/var are
    pre-folded into a single per-channel FMA."""
    def kernel(*refs):
        if use_residual:
            y_ref, s_ref, b_ref, r_ref, o_ref = refs
        else:
            y_ref, s_ref, b_ref, o_ref = refs
        y = y_ref[...] * s_ref[...] + b_ref[...]
        if use_relu:
            y = jnp.maximum(y, 0.0)
        if use_residual:
            y = y + r_ref[...]
        o_ref[...] = y
    return kernel


# ----------------------------------------------------------------------------
# Fused conv (as matmul) + training-mode BatchNorm + ReLU + residual
# ----------------------------------------------------------------------------
def fused_conv_bn_act_pallas(patches, w2, gamma, beta, residual=None, *,
                             use_bn=True, use_relu=True, mxu_dtype=jnp.bfloat16):
    """patches: (M, K); w2: (K, Cout); gamma/beta: (Cout,); residual: (M, Cout)."""
    m, k = patches.shape
    cout = w2.shape[1]
    cp = _round_up(cout, LANE)
    tm, m_pad, grid = _choose_tiling(m)
    itemsize = jnp.dtype(mxu_dtype).itemsize

    # Zero-pad rows to a multiple of TM and channels to a multiple of 128.
    # Padded rows are all-zero so they contribute nothing to the BN sums.
    p = _pad2d(patches, m_pad, k).astype(mxu_dtype)
    w = _pad2d(w2, k, cp).astype(mxu_dtype)
    r = None
    if residual is not None:
        r = _pad2d(residual.astype(jnp.float32), m_pad, cp)

    patch_spec = pl.BlockSpec((tm, k), lambda i: (i, 0))
    w_spec = pl.BlockSpec((k, cp), lambda i: (0, 0))
    rowc_spec = pl.BlockSpec((tm, cp), lambda i: (i, 0))
    vec_spec = pl.BlockSpec((1, cp), lambda i: (0, 0))

    matmul_flops = 2 * m_pad * k * cp

    if not use_bn:
        use_res = r is not None
        in_specs = [patch_spec, w_spec] + ([rowc_spec] if use_res else [])
        args = [p, w] + ([r] if use_res else [])
        out = pl.pallas_call(
            _make_matmul_act_kernel(use_relu, use_res),
            out_shape=jax.ShapeDtypeStruct((m_pad, cp), jnp.float32),
            grid_spec=pltpu.PrefetchScalarGridSpec(
                num_scalar_prefetch=0, grid=(grid,),
                in_specs=in_specs, out_specs=rowc_spec),
            compiler_params=pltpu.CompilerParams(
                dimension_semantics=("parallel",)),
            cost_estimate=pl.CostEstimate(
                flops=matmul_flops, transcendentals=0,
                bytes_accessed=(m_pad * k + k * cp) * itemsize
                + m_pad * cp * 4 * (2 if use_res else 1)),
        )(*args)
        return out[:m, :cout]

    # ---- Pass 1: matmul + per-channel sum / sum-of-squares ------------------
    y, ssum, ssq = pl.pallas_call(
        _matmul_stats_kernel,
        out_shape=(jax.ShapeDtypeStruct((m_pad, cp), jnp.float32),
                   jax.ShapeDtypeStruct((1, cp), jnp.float32),
                   jax.ShapeDtypeStruct((1, cp), jnp.float32)),
        grid_spec=pltpu.PrefetchScalarGridSpec(
            num_scalar_prefetch=0, grid=(grid,),
            in_specs=[patch_spec, w_spec],
            out_specs=(rowc_spec, vec_spec, vec_spec)),
        compiler_params=pltpu.CompilerParams(
            dimension_semantics=("arbitrary",)),
        cost_estimate=pl.CostEstimate(
            flops=matmul_flops, transcendentals=0,
            bytes_accessed=(m_pad * k + k * cp) * itemsize
            + (m_pad + 2) * cp * 4),
    )(p, w)

    # ---- Fold batch stats + gamma/beta into one per-channel scale/shift -----
    gp = _pad1d(gamma.astype(jnp.float32), cp)
    bp = _pad1d(beta.astype(jnp.float32), cp)
    inv_m = jnp.float32(1.0 / m)                      # true M, not padded M
    mean = ssum[0] * inv_m
    var = jnp.maximum(ssq[0] * inv_m - mean * mean, 0.0)
    scale = gp * lax.rsqrt(var + BN_EPS)
    shift = bp - mean * scale

    # ---- Pass 2: normalize + ReLU + residual (lane-dense, megacore-parallel) -
    use_res = r is not None
    in_specs = [rowc_spec, vec_spec, vec_spec] + ([rowc_spec] if use_res else [])
    args = [y, scale.reshape(1, cp), shift.reshape(1, cp)] + ([r] if use_res else [])
    out = pl.pallas_call(
        _make_norm_act_kernel(use_relu, use_res),
        out_shape=jax.ShapeDtypeStruct((m_pad, cp), jnp.float32),
        grid_spec=pltpu.PrefetchScalarGridSpec(
            num_scalar_prefetch=0, grid=(grid,),
            in_specs=in_specs, out_specs=rowc_spec),
        compiler_params=pltpu.CompilerParams(
            dimension_semantics=("parallel",)),
        input_output_aliases={0: 0},   # reuse y's HBM buffer for the output
        cost_estimate=pl.CostEstimate(
            flops=3 * m_pad * cp, transcendentals=0,
            bytes_accessed=m_pad * cp * 4 * (3 if use_res else 2)),
    )(*args)
    return out[:m, :cout]


def fused_conv_bn_act_ref(patches, w2, gamma, beta, residual=None, *,
                          use_bn=True, use_relu=True, mxu_dtype=jnp.bfloat16):
    """Pure-JAX reference with identical math (bf16 matmul operands, f32 acc)."""
    cout = w2.shape[1]
    y = jnp.dot(patches.astype(mxu_dtype), w2.astype(mxu_dtype),
                preferred_element_type=jnp.float32)
    if use_bn:
        mean = jnp.mean(y, axis=0, keepdims=True)
        cent = y - mean
        var = jnp.mean(cent * cent, axis=0, keepdims=True)
        y = cent * lax.rsqrt(var + BN_EPS) * gamma.reshape(1, cout) + beta.reshape(1, cout)
    if use_relu:
        y = jnp.maximum(y, 0.0)
    if residual is not None:
        y = y + residual
    return y


# ----------------------------------------------------------------------------
# JAX glue: padding + im2col, block wrappers
# ----------------------------------------------------------------------------
def _im2col(x_padded, kh_sz, kw_sz, stride):
    """x_padded: (N, Hp, Wp, Cin) -> (N*Ho*Wo, KH*KW*Cin), row order (n, h, w),
    feature order (kh, kw, cin)."""
    n, hp, wp, cin = x_padded.shape
    ho = (hp - kh_sz) // stride + 1
    wo = (wp - kw_sz) // stride + 1
    cols = []
    for kh in range(kh_sz):
        for kw in range(kw_sz):
            cols.append(
                x_padded[:,
                         kh: kh + stride * (ho - 1) + 1: stride,
                         kw: kw + stride * (wo - 1) + 1: stride,
                         :])
    patches = jnp.concatenate(cols, axis=-1)  # (N, Ho, Wo, KH*KW*Cin)
    return patches.reshape(n * ho * wo, kh_sz * kw_sz * cin), (n, ho, wo)


def conv_block(x_nhwc, w_oihw, gamma, beta, *, stride=1, pad_mode="reflect",
               use_bn=True, use_relu=True, residual=None, use_pallas=True,
               mxu_dtype=jnp.bfloat16):
    """Conv2d(padding='same', bias=False) -> [BatchNorm] -> [ReLU] -> [+residual]."""
    cout, cin, kh, kw = w_oihw.shape
    p = kh // 2
    x_p = jnp.pad(x_nhwc, ((0, 0), (p, p), (p, p), (0, 0)), mode=pad_mode)
    patches, (n, ho, wo) = _im2col(x_p, kh, kw, stride)
    # OIHW -> (KH, KW, Cin, Cout) -> (KH*KW*Cin, Cout), matching im2col order.
    w2 = jnp.transpose(w_oihw, (2, 3, 1, 0)).reshape(kh * kw * cin, cout)
    r = None if residual is None else residual.reshape(-1, cout)
    f = fused_conv_bn_act_pallas if use_pallas else fused_conv_bn_act_ref
    y = f(patches, w2, gamma, beta, r, use_bn=use_bn, use_relu=use_relu,
          mxu_dtype=mxu_dtype)
    return y.reshape(n, ho, wo, cout)


def deconv_block(x_nhwc, w_iohw, gamma, beta, *, stride=2, output_padding=1,
                 use_bn=True, use_relu=True, use_pallas=True,
                 mxu_dtype=jnp.bfloat16):
    """ConvTranspose2d(padding=k//2, output_padding, bias=False) -> BN -> ReLU,
    implemented as zero-dilation + zero-padding + stride-1 conv with flipped kernel."""
    cin, cout, kh, kw = w_iohw.shape
    p = kh // 2
    lo = kh - 1 - p
    hi = kh - 1 - p + output_padding
    zero = jnp.zeros((), x_nhwc.dtype)
    x_d = lax.pad(x_nhwc, zero,
                  ((0, 0, 0), (lo, hi, stride - 1), (lo, hi, stride - 1), (0, 0, 0)))
    patches, (n, ho, wo) = _im2col(x_d, kh, kw, 1)
    # IOHW, flipped spatially -> (KH, KW, Cin, Cout) -> (KH*KW*Cin, Cout).
    w_flip = jnp.flip(w_iohw, axis=(2, 3))
    w2 = jnp.transpose(w_flip, (2, 3, 0, 1)).reshape(kh * kw * cin, cout)
    f = fused_conv_bn_act_pallas if use_pallas else fused_conv_bn_act_ref
    y = f(patches, w2, gamma, beta, None, use_bn=use_bn, use_relu=use_relu,
          mxu_dtype=mxu_dtype)
    return y.reshape(n, ho, wo, cout)


# ----------------------------------------------------------------------------
# Parameters (deterministic synthetic init, shapes mirror the PyTorch __init__)
# ----------------------------------------------------------------------------
def init_params(key, *, input_channels, output_channels, encoding_channels,
                decoding_channels, nb_residual_blocks, convolution_kernel=3,
                init_kernel=7, out_kernel=7):
    keys = iter(jax.random.split(key, 64))

    def conv_w(k, cout, cin, ks):
        fan_in = cin * ks * ks
        return jax.random.normal(k, (cout, cin, ks, ks), jnp.float32) / jnp.sqrt(fan_in)

    def deconv_w(k, cin, cout, ks):
        fan_in = cin * ks * ks
        return jax.random.normal(k, (cin, cout, ks, ks), jnp.float32) / jnp.sqrt(fan_in)

    def bn_p(k, c):
        k1, k2 = jax.random.split(k)
        gamma = 1.0 + 0.1 * jax.random.normal(k1, (c,), jnp.float32)
        beta = 0.1 * jax.random.normal(k2, (c,), jnp.float32)
        return gamma, beta

    params = {}
    inter = encoding_channels[0] // 2
    params["initial"] = dict(w=conv_w(next(keys), inter, input_channels, init_kernel),
                             gb=bn_p(next(keys), inter))
    prev = inter
    params["encoders"] = []
    for cur in encoding_channels:
        params["encoders"].append(dict(w=conv_w(next(keys), cur, prev, convolution_kernel),
                                       gb=bn_p(next(keys), cur)))
        prev = cur
    params["residuals"] = []
    for _ in range(nb_residual_blocks):
        params["residuals"].append(dict(
            w1=conv_w(next(keys), prev, prev, convolution_kernel), gb1=bn_p(next(keys), prev),
            w2=conv_w(next(keys), prev, prev, convolution_kernel), gb2=bn_p(next(keys), prev)))
    params["decoders"] = []
    for cur in decoding_channels:
        params["decoders"].append(dict(w=deconv_w(next(keys), prev, cur, convolution_kernel),
                                       gb=bn_p(next(keys), cur)))
        prev = cur
    params["out"] = dict(w=conv_w(next(keys), output_channels, prev, out_kernel))
    return params


# ----------------------------------------------------------------------------
# Full forward pass (mirrors EncoderDecoderResnet.forward)
# ----------------------------------------------------------------------------
def encoder_decoder_resnet_forward(params, x_nchw, *, strides=2, use_pallas=True,
                                   mxu_dtype=jnp.bfloat16):
    x = jnp.transpose(x_nchw, (0, 2, 3, 1))  # NCHW -> NHWC

    # initial: 7x7 conv (reflect 'same') -> BN -> ReLU
    g, b = params["initial"]["gb"]
    x = conv_block(x, params["initial"]["w"], g, b, stride=1,
                   use_pallas=use_pallas, mxu_dtype=mxu_dtype)

    # encoders: 3x3 conv stride 2 (reflect 'same') -> BN -> ReLU
    for enc in params["encoders"]:
        g, b = enc["gb"]
        x = conv_block(x, enc["w"], g, b, stride=strides,
                       use_pallas=use_pallas, mxu_dtype=mxu_dtype)

    # residual (BlockRes) blocks: x + [conv-BN-ReLU -> conv-BN](x), no post-add act
    for res in params["residuals"]:
        g1, b1 = res["gb1"]
        g2, b2 = res["gb2"]
        h = conv_block(x, res["w1"], g1, b1, stride=1,
                       use_pallas=use_pallas, mxu_dtype=mxu_dtype)
        x = conv_block(h, res["w2"], g2, b2, stride=1, use_relu=False,
                       residual=x, use_pallas=use_pallas, mxu_dtype=mxu_dtype)

    # decoders: ConvTranspose 3x3 stride 2, output_padding=1 -> BN -> ReLU
    for dec in params["decoders"]:
        g, b = dec["gb"]
        x = deconv_block(x, dec["w"], g, b, stride=strides,
                         output_padding=strides - 1, use_pallas=use_pallas,
                         mxu_dtype=mxu_dtype)

    # out: 7x7 conv (reflect 'same'), no norm, no activation, no bias
    cout = params["out"]["w"].shape[0]
    ones = jnp.ones((cout,), jnp.float32)
    zeros = jnp.zeros((cout,), jnp.float32)
    x = conv_block(x, params["out"]["w"], ones, zeros, stride=1,
                   use_bn=False, use_relu=False, use_pallas=use_pallas,
                   mxu_dtype=mxu_dtype)

    return jnp.transpose(x, (0, 3, 1, 2))  # NHWC -> NCHW


# ----------------------------------------------------------------------------
# Demo / self-check
# ----------------------------------------------------------------------------
if __name__ == "__main__":
    key = jax.random.PRNGKey(0)
    kx, kp = jax.random.split(key)

    N, CIN, H, W = 2, 4, 16, 16
    x = jax.random.normal(kx, (N, CIN, H, W), jnp.float32)

    params = init_params(
        kp,
        input_channels=CIN,
        output_channels=3,
        encoding_channels=(8, 16),
        decoding_channels=(16, 8),
        nb_residual_blocks=2,
    )

    fwd = jax.jit(functools.partial(encoder_decoder_resnet_forward, use_pallas=True))
    out = jax.block_until_ready(fwd(params, x))
    assert out.shape == (N, 3, H, W), out.shape
    assert bool(jnp.all(jnp.isfinite(out)))

    # Cross-check the Pallas kernels against a pure-JAX reference of the same math.
    ref = jax.block_until_ready(
        encoder_decoder_resnet_forward(params, x, use_pallas=False))
    max_diff = float(jnp.max(jnp.abs(out - ref)))
    assert max_diff < 1e-2, f"mismatch vs reference: {max_diff}"

    print("KERNEL_OK")
</pallas_src>

<mosaic_0001>
module attributes {stable_mosaic.version = 11 : i64} {
  func.func @_matmul_stats_kernel(%arg0: i32, %arg1: memref<512x196xbf16, #tpu.memory_space<vmem>>, %arg2: memref<196x128xbf16, #tpu.memory_space<vmem>>, %arg3: memref<512x128xf32, #tpu.memory_space<vmem>>, %arg4: memref<1x128xf32, #tpu.memory_space<vmem>>, %arg5: memref<1x128xf32, #tpu.memory_space<vmem>>) attributes {dimension_semantics = [#tpu.dimension_semantics<arbitrary>], iteration_bounds = array<i64: 1>, scalar_prefetch = 0 : i64, scratch_operands = 0 : i64, tpu.core_type = #tpu.core_type<tc>, window_params = [{transform_indices = @transform_0, window_bounds = array<i64: 512, 196>}, {pipeline_mode = #tpu.pipeline_mode<synchronous>, transform_indices = @transform_1, window_bounds = array<i64: 196, 128>}, {transform_indices = @transform_2, window_bounds = array<i64: 512, 128>}, {pipeline_mode = #tpu.pipeline_mode<synchronous>, transform_indices = @transform_3, window_bounds = array<i64: 1, 128>}, {pipeline_mode = #tpu.pipeline_mode<synchronous>, transform_indices = @transform_4, window_bounds = array<i64: 1, 128>}]} {
    %c0_i32 = arith.constant 0 : i32
    %0 = arith.cmpi eq, %arg0, %c0_i32 : i32
    %1 = arith.extui %0 : i1 to i32
    %c0_i32_0 = arith.constant 0 : i32
    %2 = arith.cmpi ne, %1, %c0_i32_0 : i32
    scf.if %2 {
      %cst_16 = arith.constant 0.000000e+00 : f32
      %18 = vector.broadcast %cst_16 : f32 to vector<1x128xf32>
      %c0_17 = arith.constant 0 : index
      %c0_18 = arith.constant 0 : index
      %19 = vector.load %arg4[%c0_17, %c0_18] : memref<1x128xf32, #tpu.memory_space<vmem>>, vector<1x128xf32>
      tpu.vector_store %arg4[%c0_17, %c0_18], %18 {strides = array<i32>} : memref<1x128xf32, #tpu.memory_space<vmem>>, vector<1x128xf32>,
      %cst_19 = arith.constant 0.000000e+00 : f32
      %20 = vector.broadcast %cst_19 : f32 to vector<1x128xf32>
      %c0_20 = arith.constant 0 : index
      %c0_21 = arith.constant 0 : index
      %21 = vector.load %arg5[%c0_20, %c0_21] : memref<1x128xf32, #tpu.memory_space<vmem>>, vector<1x128xf32>
      tpu.vector_store %arg5[%c0_20, %c0_21], %20 {strides = array<i32>} : memref<1x128xf32, #tpu.memory_space<vmem>>, vector<1x128xf32>,
    } else {
    }
    %c0 = arith.constant 0 : index
    %c0_1 = arith.constant 0 : index
    %3 = vector.load %arg1[%c0, %c0_1] : memref<512x196xbf16, #tpu.memory_space<vmem>>, vector<512x196xbf16>
    %c0_2 = arith.constant 0 : index
    %c0_3 = arith.constant 0 : index
    %4 = vector.load %arg2[%c0_2, %c0_3] : memref<196x128xbf16, #tpu.memory_space<vmem>>, vector<196x128xbf16>
    %cst = arith.constant dense<0.000000e+00> : vector<512x128xf32>
    %5 = tpu.matmul %3, %4, %cst {dimension_numbers = #tpu.dot_dimension_numbers<[1], [0], [0], [1], [0, 0, 1, 1], [], []>} : vector<512x196xbf16>, vector<196x128xbf16>, vector<512x128xf32> -> vector<512x128xf32>
    %c0_4 = arith.constant 0 : index
    %c0_5 = arith.constant 0 : index
    %6 = vector.load %arg3[%c0_4, %c0_5] : memref<512x128xf32, #tpu.memory_space<vmem>>, vector<512x128xf32>
    tpu.vector_store %arg3[%c0_4, %c0_5], %5 {strides = array<i32>} : memref<512x128xf32, #tpu.memory_space<vmem>>, vector<512x128xf32>,
    %c0_6 = arith.constant 0 : index
    %c0_7 = arith.constant 0 : index
    %7 = vector.load %arg4[%c0_6, %c0_7] : memref<1x128xf32, #tpu.memory_space<vmem>>, vector<1x128xf32>
    %cst_8 = arith.constant dense<0.000000e+00> : vector<128xf32>
    %8 = vector.multi_reduction <add>, %5, %cst_8 [0] : vector<512x128xf32> to vector<128xf32>
    %9 = vector.shape_cast %8 : vector<128xf32> to vector<1x128xf32>
    %10 = arith.addf %7, %9 : vector<1x128xf32>
    %c0_9 = arith.constant 0 : index
    %c0_10 = arith.constant 0 : index
    %11 = vector.load %arg4[%c0_9, %c0_10] : memref<1x128xf32, #tpu.memory_space<vmem>>, vector<1x128xf32>
    tpu.vector_store %arg4[%c0_9, %c0_10], %10 {strides = array<i32>} : memref<1x128xf32, #tpu.memory_space<vmem>>, vector<1x128xf32>,
    %c0_11 = arith.constant 0 : index
    %c0_12 = arith.constant 0 : index
    %12 = vector.load %arg5[%c0_11, %c0_12] : memref<1x128xf32, #tpu.memory_space<vmem>>, vector<1x128xf32>
    %13 = arith.mulf %5, %5 : vector<512x128xf32>
    %cst_13 = arith.constant dense<0.000000e+00> : vector<128xf32>
    %14 = vector.multi_reduction <add>, %13, %cst_13 [0] : vector<512x128xf32> to vector<128xf32>
    %15 = vector.shape_cast %14 : vector<128xf32> to vector<1x128xf32>
    %16 = arith.addf %12, %15 : vector<1x128xf32>
    %c0_14 = arith.constant 0 : index
    %c0_15 = arith.constant 0 : index
    %17 = vector.load %arg5[%c0_14, %c0_15] : memref<1x128xf32, #tpu.memory_space<vmem>>, vector<1x128xf32>
    tpu.vector_store %arg5[%c0_14, %c0_15], %16 {strides = array<i32>} : memref<1x128xf32, #tpu.memory_space<vmem>>, vector<1x128xf32>,
    return
  }
  func.func @transform_0(%arg0: i32) -> (i32, i32) {
    %c0_i32 = arith.constant 0 : i32
    %c0_i32_0 = arith.constant 0 : i32
    return %arg0, %c0_i32 : i32, i32
  }
  func.func @transform_1(%arg0: i32) -> (i32, i32) {
    %c0_i32 = arith.constant 0 : i32
    %c0_i32_0 = arith.constant 0 : i32
    %c0_i32_1 = arith.constant 0 : i32
    return %c0_i32, %c0_i32_0 : i32, i32
  }
  func.func @transform_2(%arg0: i32) -> (i32, i32) {
    %c0_i32 = arith.constant 0 : i32
    %c0_i32_0 = arith.constant 0 : i32
    return %arg0, %c0_i32 : i32, i32
  }
  func.func @transform_3(%arg0: i32) -> (i32, i32) {
    %c0_i32 = arith.constant 0 : i32
    %c0_i32_0 = arith.constant 0 : i32
    %c0_i32_1 = arith.constant 0 : i32
    return %c0_i32, %c0_i32_0 : i32, i32
  }
  func.func @transform_4(%arg0: i32) -> (i32, i32) {
    %c0_i32 = arith.constant 0 : i32
    %c0_i32_0 = arith.constant 0 : i32
    %c0_i32_1 = arith.constant 0 : i32
    return %c0_i32, %c0_i32_0 : i32, i32
  }
}

module attributes {stable_mosaic.version = 11 : i64} {
  func.func @kernel(%arg0: i32, %arg1: memref<512x128xf32, #tpu.memory_space<vmem>>, %arg2: memref<1x128xf32, #tpu.memory_space<vmem>>, %arg3: memref<1x128xf32, #tpu.memory_space<vmem>>, %arg4: memref<512x128xf32, #tpu.memory_space<vmem>>) attributes {dimension_semantics = [#tpu.dimension_semantics<parallel>], iteration_bounds = array<i64: 1>, scalar_prefetch = 0 : i64, scratch_operands = 0 : i64, tpu.core_type = #tpu.core_type<tc>, window_params = [{transform_indices = @transform_0, window_bounds = array<i64: 512, 128>}, {pipeline_mode = #tpu.pipeline_mode<synchronous>, transform_indices = @transform_1, window_bounds = array<i64: 1, 128>}, {pipeline_mode = #tpu.pipeline_mode<synchronous>, transform_indices = @transform_2, window_bounds = array<i64: 1, 128>}, {transform_indices = @transform_3, window_bounds = array<i64: 512, 128>}]} {
    %c0 = arith.constant 0 : index
    %c0_0 = arith.constant 0 : index
    %0 = vector.load %arg1[%c0, %c0_0] : memref<512x128xf32, #tpu.memory_space<vmem>>, vector<512x128xf32>
    %c0_1 = arith.constant 0 : index
    %c0_2 = arith.constant 0 : index
    %1 = vector.load %arg2[%c0_1, %c0_2] : memref<1x128xf32, #tpu.memory_space<vmem>>, vector<1x128xf32>
    %2 = vector.broadcast %1 : vector<1x128xf32> to vector<512x128xf32>
    %3 = arith.mulf %0, %2 : vector<512x128xf32>
    %c0_3 = arith.constant 0 : index
    %c0_4 = arith.constant 0 : index
    %4 = vector.load %arg3[%c0_3, %c0_4] : memref<1x128xf32, #tpu.memory_space<vmem>>, vector<1x128xf32>
    %5 = vector.broadcast %4 : vector<1x128xf32> to vector<512x128xf32>
    %6 = arith.addf %3, %5 : vector<512x128xf32>
    %cst = arith.constant 0.000000e+00 : f32
    %7 = vector.broadcast %cst : f32 to vector<512x128xf32>
    %8 = arith.maximumf %6, %7 : vector<512x128xf32>
    %c0_5 = arith.constant 0 : index
    %c0_6 = arith.constant 0 : index
    %9 = vector.load %arg4[%c0_5, %c0_6] : memref<512x128xf32, #tpu.memory_space<vmem>>, vector<512x128xf32>
    tpu.vector_store %arg4[%c0_5, %c0_6], %8 {strides = array<i32>} : memref<512x128xf32, #tpu.memory_space<vmem>>, vector<512x128xf32>,
    return
  }
  func.func @transform_0(%arg0: i32) -> (i32, i32) {
    %c0_i32 = arith.constant 0 : i32
    %c0_i32_0 = arith.constant 0 : i32
    return %arg0, %c0_i32 : i32, i32
  }
  func.func @transform_1(%arg0: i32) -> (i32, i32) {
    %c0_i32 = arith.constant 0 : i32
    %c0_i32_0 = arith.constant 0 : i32
    %c0_i32_1 = arith.constant 0 : i32
    return %c0_i32, %c0_i32_0 : i32, i32
  }
  func.func @transform_2(%arg0: i32) -> (i32, i32) {
    %c0_i32 = arith.constant 0 : i32
    %c0_i32_0 = arith.constant 0 : i32
    %c0_i32_1 = arith.constant 0 : i32
    return %c0_i32, %c0_i32_0 : i32, i32
  }
  func.func @transform_3(%arg0: i32) -> (i32, i32) {
    %c0_i32 = arith.constant 0 : i32
    %c0_i32_0 = arith.constant 0 : i32
    return %arg0, %c0_i32 : i32, i32
  }
}

module attributes {stable_mosaic.version = 11 : i64} {
  func.func @kernel(%arg0: i32, %arg1: memref<128x128xf32, #tpu.memory_space<vmem>>, %arg2: memref<1x128xf32, #tpu.memory_space<vmem>>, %arg3: memref<1x128xf32, #tpu.memory_space<vmem>>, %arg4: memref<128x128xf32, #tpu.memory_space<vmem>>) attributes {dimension_semantics = [#tpu.dimension_semantics<parallel>], iteration_bounds = array<i64: 1>, scalar_prefetch = 0 : i64, scratch_operands = 0 : i64, tpu.core_type = #tpu.core_type<tc>, window_params = [{transform_indices = @transform_0, window_bounds = array<i64: 128, 128>}, {pipeline_mode = #tpu.pipeline_mode<synchronous>, transform_indices = @transform_1, window_bounds = array<i64: 1, 128>}, {pipeline_mode = #tpu.pipeline_mode<synchronous>, transform_indices = @transform_2, window_bounds = array<i64: 1, 128>}, {transform_indices = @transform_3, window_bounds = array<i64: 128, 128>}]} {
    %c0 = arith.constant 0 : index
    %c0_0 = arith.constant 0 : index
    %0 = vector.load %arg1[%c0, %c0_0] : memref<128x128xf32, #tpu.memory_space<vmem>>, vector<128x128xf32>
    %c0_1 = arith.constant 0 : index
    %c0_2 = arith.constant 0 : index
    %1 = vector.load %arg2[%c0_1, %c0_2] : memref<1x128xf32, #tpu.memory_space<vmem>>, vector<1x128xf32>
    %2 = vector.broadcast %1 : vector<1x128xf32> to vector<128x128xf32>
    %3 = arith.mulf %0, %2 : vector<128x128xf32>
    %c0_3 = arith.constant 0 : index
    %c0_4 = arith.constant 0 : index
    %4 = vector.load %arg3[%c0_3, %c0_4] : memref<1x128xf32, #tpu.memory_space<vmem>>, vector<1x128xf32>
    %5 = vector.broadcast %4 : vector<1x128xf32> to vector<128x128xf32>
    %6 = arith.addf %3, %5 : vector<128x128xf32>
    %cst = arith.constant 0.000000e+00 : f32
    %7 = vector.broadcast %cst : f32 to vector<128x128xf32>
    %8 = arith.maximumf %6, %7 : vector<128x128xf32>
    %c0_5 = arith.constant 0 : index
    %c0_6 = arith.constant 0 : index
    %9 = vector.load %arg4[%c0_5, %c0_6] : memref<128x128xf32, #tpu.memory_space<vmem>>, vector<128x128xf32>
    tpu.vector_store %arg4[%c0_5, %c0_6], %8 {strides = array<i32>} : memref<128x128xf32, #tpu.memory_space<vmem>>, vector<128x128xf32>,
    return
  }
  func.func @transform_0(%arg0: i32) -> (i32, i32) {
    %c0_i32 = arith.constant 0 : i32
    %c0_i32_0 = arith.constant 0 : i32
    return %arg0, %c0_i32 : i32, i32
  }
  func.func @transform_1(%arg0: i32) -> (i32, i32) {
    %c0_i32 = arith.constant 0 : i32
    %c0_i32_0 = arith.constant 0 : i32
    %c0_i32_1 = arith.constant 0 : i32
    return %c0_i32, %c0_i32_0 : i32, i32
  }
  func.func @transform_2(%arg0: i32) -> (i32, i32) {
    %c0_i32 = arith.constant 0 : i32
    %c0_i32_0 = arith.constant 0 : i32
    %c0_i32_1 = arith.constant 0 : i32
    return %c0_i32, %c0_i32_0 : i32, i32
  }
  func.func @transform_3(%arg0: i32) -> (i32, i32) {
    %c0_i32 = arith.constant 0 : i32
    %c0_i32_0 = arith.constant 0 : i32
    return %arg0, %c0_i32 : i32, i32
  }
}

module attributes {stable_mosaic.version = 11 : i64} {
  func.func @_matmul_stats_kernel(%arg0: i32, %arg1: memref<128x36xbf16, #tpu.memory_space<vmem>>, %arg2: memref<36x128xbf16, #tpu.memory_space<vmem>>, %arg3: memref<128x128xf32, #tpu.memory_space<vmem>>, %arg4: memref<1x128xf32, #tpu.memory_space<vmem>>, %arg5: memref<1x128xf32, #tpu.memory_space<vmem>>) attributes {dimension_semantics = [#tpu.dimension_semantics<arbitrary>], iteration_bounds = array<i64: 1>, scalar_prefetch = 0 : i64, scratch_operands = 0 : i64, tpu.core_type = #tpu.core_type<tc>, window_params = [{transform_indices = @transform_0, window_bounds = array<i64: 128, 36>}, {pipeline_mode = #tpu.pipeline_mode<synchronous>, transform_indices = @transform_1, window_bounds = array<i64: 36, 128>}, {transform_indices = @transform_2, window_bounds = array<i64: 128, 128>}, {pipeline_mode = #tpu.pipeline_mode<synchronous>, transform_indices = @transform_3, window_bounds = array<i64: 1, 128>}, {pipeline_mode = #tpu.pipeline_mode<synchronous>, transform_indices = @transform_4, window_bounds = array<i64: 1, 128>}]} {
    %c0_i32 = arith.constant 0 : i32
    %0 = arith.cmpi eq, %arg0, %c0_i32 : i32
    %1 = arith.extui %0 : i1 to i32
    %c0_i32_0 = arith.constant 0 : i32
    %2 = arith.cmpi ne, %1, %c0_i32_0 : i32
    scf.if %2 {
      %cst_16 = arith.constant 0.000000e+00 : f32
      %18 = vector.broadcast %cst_16 : f32 to vector<1x128xf32>
      %c0_17 = arith.constant 0 : index
      %c0_18 = arith.constant 0 : index
      %19 = vector.load %arg4[%c0_17, %c0_18] : memref<1x128xf32, #tpu.memory_space<vmem>>, vector<1x128xf32>
      tpu.vector_store %arg4[%c0_17, %c0_18], %18 {strides = array<i32>} : memref<1x128xf32, #tpu.memory_space<vmem>>, vector<1x128xf32>,
      %cst_19 = arith.constant 0.000000e+00 : f32
      %20 = vector.broadcast %cst_19 : f32 to vector<1x128xf32>
      %c0_20 = arith.constant 0 : index
      %c0_21 = arith.constant 0 : index
      %21 = vector.load %arg5[%c0_20, %c0_21] : memref<1x128xf32, #tpu.memory_space<vmem>>, vector<1x128xf32>
      tpu.vector_store %arg5[%c0_20, %c0_21], %20 {strides = array<i32>} : memref<1x128xf32, #tpu.memory_space<vmem>>, vector<1x128xf32>,
    } else {
    }
    %c0 = arith.constant 0 : index
    %c0_1 = arith.constant 0 : index
    %3 = vector.load %arg1[%c0, %c0_1] : memref<128x36xbf16, #tpu.memory_space<vmem>>, vector<128x36xbf16>
    %c0_2 = arith.constant 0 : index
    %c0_3 = arith.constant 0 : index
    %4 = vector.load %arg2[%c0_2, %c0_3] : memref<36x128xbf16, #tpu.memory_space<vmem>>, vector<36x128xbf16>
    %cst = arith.constant dense<0.000000e+00> : vector<128x128xf32>
    %5 = tpu.matmul %3, %4, %cst {dimension_numbers = #tpu.dot_dimension_numbers<[1], [0], [0], [1], [0, 0, 1, 1], [], []>} : vector<128x36xbf16>, vector<36x128xbf16>, vector<128x128xf32> -> vector<128x128xf32>
    %c0_4 = arith.constant 0 : index
    %c0_5 = arith.constant 0 : index
    %6 = vector.load %arg3[%c0_4, %c0_5] : memref<128x128xf32, #tpu.memory_space<vmem>>, vector<128x128xf32>
    tpu.vector_store %arg3[%c0_4, %c0_5], %5 {strides = array<i32>} : memref<128x128xf32, #tpu.memory_space<vmem>>, vector<128x128xf32>,
    %c0_6 = arith.constant 0 : index
    %c0_7 = arith.constant 0 : index
    %7 = vector.load %arg4[%c0_6, %c0_7] : memref<1x128xf32, #tpu.memory_space<vmem>>, vector<1x128xf32>
    %cst_8 = arith.constant dense<0.000000e+00> : vector<128xf32>
    %8 = vector.multi_reduction <add>, %5, %cst_8 [0] : vector<128x128xf32> to vector<128xf32>
    %9 = vector.shape_cast %8 : vector<128xf32> to vector<1x128xf32>
    %10 = arith.addf %7, %9 : vector<1x128xf32>
    %c0_9 = arith.constant 0 : index
    %c0_10 = arith.constant 0 : index
    %11 = vector.load %arg4[%c0_9, %c0_10] : memref<1x128xf32, #tpu.memory_space<vmem>>, vector<1x128xf32>
    tpu.vector_store %arg4[%c0_9, %c0_10], %10 {strides = array<i32>} : memref<1x128xf32, #tpu.memory_space<vmem>>, vector<1x128xf32>,
    %c0_11 = arith.constant 0 : index
    %c0_12 = arith.constant 0 : index
    %12 = vector.load %arg5[%c0_11, %c0_12] : memref<1x128xf32, #tpu.memory_space<vmem>>, vector<1x128xf32>
    %13 = arith.mulf %5, %5 : vector<128x128xf32>
    %cst_13 = arith.constant dense<0.000000e+00> : vector<128xf32>
    %14 = vector.multi_reduction <add>, %13, %cst_13 [0] : vector<128x128xf32> to vector<128xf32>
    %15 = vector.shape_cast %14 : vector<128xf32> to vector<1x128xf32>
    %16 = arith.addf %12, %15 : vector<1x128xf32>
    %c0_14 = arith.constant 0 : index
    %c0_15 = arith.constant 0 : index
    %17 = vector.load %arg5[%c0_14, %c0_15] : memref<1x128xf32, #tpu.memory_space<vmem>>, vector<1x128xf32>
    tpu.vector_store %arg5[%c0_14, %c0_15], %16 {strides = array<i32>} : memref<1x128xf32, #tpu.memory_space<vmem>>, vector<1x128xf32>,
    return
  }
  func.func @transform_0(%arg0: i32) -> (i32, i32) {
    %c0_i32 = arith.constant 0 : i32
    %c0_i32_0 = arith.constant 0 : i32
    return %arg0, %c0_i32 : i32, i32
  }
  func.func @transform_1(%arg0: i32) -> (i32, i32) {
    %c0_i32 = arith.constant 0 : i32
    %c0_i32_0 = arith.constant 0 : i32
    %c0_i32_1 = arith.constant 0 : i32
    return %c0_i32, %c0_i32_0 : i32, i32
  }
  func.func @transform_2(%arg0: i32) -> (i32, i32) {
    %c0_i32 = arith.constant 0 : i32
    %c0_i32_0 = arith.constant 0 : i32
    return %arg0, %c0_i32 : i32, i32
  }
  func.func @transform_3(%arg0: i32) -> (i32, i32) {
    %c0_i32 = arith.constant 0 : i32
    %c0_i32_0 = arith.constant 0 : i32
    %c0_i32_1 = arith.constant 0 : i32
    return %c0_i32, %c0_i32_0 : i32, i32
  }
  func.func @transform_4(%arg0: i32) -> (i32, i32) {
    %c0_i32 = arith.constant 0 : i32
    %c0_i32_0 = arith.constant 0 : i32
    %c0_i32_1 = arith.constant 0 : i32
    return %c0_i32, %c0_i32_0 : i32, i32
  }
}

module attributes {stable_mosaic.version = 11 : i64} {
  func.func @kernel(%arg0: i32, %arg1: memref<32x128xf32, #tpu.memory_space<vmem>>, %arg2: memref<1x128xf32, #tpu.memory_space<vmem>>, %arg3: memref<1x128xf32, #tpu.memory_space<vmem>>, %arg4: memref<32x128xf32, #tpu.memory_space<vmem>>) attributes {dimension_semantics = [#tpu.dimension_semantics<parallel>], iteration_bounds = array<i64: 1>, scalar_prefetch = 0 : i64, scratch_operands = 0 : i64, tpu.core_type = #tpu.core_type<tc>, window_params = [{transform_indices = @transform_0, window_bounds = array<i64: 32, 128>}, {pipeline_mode = #tpu.pipeline_mode<synchronous>, transform_indices = @transform_1, window_bounds = array<i64: 1, 128>}, {pipeline_mode = #tpu.pipeline_mode<synchronous>, transform_indices = @transform_2, window_bounds = array<i64: 1, 128>}, {transform_indices = @transform_3, window_bounds = array<i64: 32, 128>}]} {
    %c0 = arith.constant 0 : index
    %c0_0 = arith.constant 0 : index
    %0 = vector.load %arg1[%c0, %c0_0] : memref<32x128xf32, #tpu.memory_space<vmem>>, vector<32x128xf32>
    %c0_1 = arith.constant 0 : index
    %c0_2 = arith.constant 0 : index
    %1 = vector.load %arg2[%c0_1, %c0_2] : memref<1x128xf32, #tpu.memory_space<vmem>>, vector<1x128xf32>
    %2 = vector.broadcast %1 : vector<1x128xf32> to vector<32x128xf32>
    %3 = arith.mulf %0, %2 : vector<32x128xf32>
    %c0_3 = arith.constant 0 : index
    %c0_4 = arith.constant 0 : index
    %4 = vector.load %arg3[%c0_3, %c0_4] : memref<1x128xf32, #tpu.memory_space<vmem>>, vector<1x128xf32>
    %5 = vector.broadcast %4 : vector<1x128xf32> to vector<32x128xf32>
    %6 = arith.addf %3, %5 : vector<32x128xf32>
    %cst = arith.constant 0.000000e+00 : f32
    %7 = vector.broadcast %cst : f32 to vector<32x128xf32>
    %8 = arith.maximumf %6, %7 : vector<32x128xf32>
    %c0_5 = arith.constant 0 : index
    %c0_6 = arith.constant 0 : index
    %9 = vector.load %arg4[%c0_5, %c0_6] : memref<32x128xf32, #tpu.memory_space<vmem>>, vector<32x128xf32>
    tpu.vector_store %arg4[%c0_5, %c0_6], %8 {strides = array<i32>} : memref<32x128xf32, #tpu.memory_space<vmem>>, vector<32x128xf32>,
    return
  }
  func.func @transform_0(%arg0: i32) -> (i32, i32) {
    %c0_i32 = arith.constant 0 : i32
    %c0_i32_0 = arith.constant 0 : i32
    return %arg0, %c0_i32 : i32, i32
  }
  func.func @transform_1(%arg0: i32) -> (i32, i32) {
    %c0_i32 = arith.constant 0 : i32
    %c0_i32_0 = arith.constant 0 : i32
    %c0_i32_1 = arith.constant 0 : i32
    return %c0_i32, %c0_i32_0 : i32, i32
  }
  func.func @transform_2(%arg0: i32) -> (i32, i32) {
    %c0_i32 = arith.constant 0 : i32
    %c0_i32_0 = arith.constant 0 : i32
    %c0_i32_1 = arith.constant 0 : i32
    return %c0_i32, %c0_i32_0 : i32, i32
  }
  func.func @transform_3(%arg0: i32) -> (i32, i32) {
    %c0_i32 = arith.constant 0 : i32
    %c0_i32_0 = arith.constant 0 : i32
    return %arg0, %c0_i32 : i32, i32
  }
}

module attributes {stable_mosaic.version = 11 : i64} {
  func.func @_matmul_stats_kernel(%arg0: i32, %arg1: memref<32x72xbf16, #tpu.memory_space<vmem>>, %arg2: memref<72x128xbf16, #tpu.memory_space<vmem>>, %arg3: memref<32x128xf32, #tpu.memory_space<vmem>>, %arg4: memref<1x128xf32, #tpu.memory_space<vmem>>, %arg5: memref<1x128xf32, #tpu.memory_space<vmem>>) attributes {dimension_semantics = [#tpu.dimension_semantics<arbitrary>], iteration_bounds = array<i64: 1>, scalar_prefetch = 0 : i64, scratch_operands = 0 : i64, tpu.core_type = #tpu.core_type<tc>, window_params = [{transform_indices = @transform_0, window_bounds = array<i64: 32, 72>}, {pipeline_mode = #tpu.pipeline_mode<synchronous>, transform_indices = @transform_1, window_bounds = array<i64: 72, 128>}, {transform_indices = @transform_2, window_bounds = array<i64: 32, 128>}, {pipeline_mode = #tpu.pipeline_mode<synchronous>, transform_indices = @transform_3, window_bounds = array<i64: 1, 128>}, {pipeline_mode = #tpu.pipeline_mode<synchronous>, transform_indices = @transform_4, window_bounds = array<i64: 1, 128>}]} {
    %c0_i32 = arith.constant 0 : i32
    %0 = arith.cmpi eq, %arg0, %c0_i32 : i32
    %1 = arith.extui %0 : i1 to i32
    %c0_i32_0 = arith.constant 0 : i32
    %2 = arith.cmpi ne, %1, %c0_i32_0 : i32
    scf.if %2 {
      %cst_16 = arith.constant 0.000000e+00 : f32
      %18 = vector.broadcast %cst_16 : f32 to vector<1x128xf32>
      %c0_17 = arith.constant 0 : index
      %c0_18 = arith.constant 0 : index
      %19 = vector.load %arg4[%c0_17, %c0_18] : memref<1x128xf32, #tpu.memory_space<vmem>>, vector<1x128xf32>
      tpu.vector_store %arg4[%c0_17, %c0_18], %18 {strides = array<i32>} : memref<1x128xf32, #tpu.memory_space<vmem>>, vector<1x128xf32>,
      %cst_19 = arith.constant 0.000000e+00 : f32
      %20 = vector.broadcast %cst_19 : f32 to vector<1x128xf32>
      %c0_20 = arith.constant 0 : index
      %c0_21 = arith.constant 0 : index
      %21 = vector.load %arg5[%c0_20, %c0_21] : memref<1x128xf32, #tpu.memory_space<vmem>>, vector<1x128xf32>
      tpu.vector_store %arg5[%c0_20, %c0_21], %20 {strides = array<i32>} : memref<1x128xf32, #tpu.memory_space<vmem>>, vector<1x128xf32>,
    } else {
    }
    %c0 = arith.constant 0 : index
    %c0_1 = arith.constant 0 : index
    %3 = vector.load %arg1[%c0, %c0_1] : memref<32x72xbf16, #tpu.memory_space<vmem>>, vector<32x72xbf16>
    %c0_2 = arith.constant 0 : index
    %c0_3 = arith.constant 0 : index
    %4 = vector.load %arg2[%c0_2, %c0_3] : memref<72x128xbf16, #tpu.memory_space<vmem>>, vector<72x128xbf16>
    %cst = arith.constant dense<0.000000e+00> : vector<32x128xf32>
    %5 = tpu.matmul %3, %4, %cst {dimension_numbers = #tpu.dot_dimension_numbers<[1], [0], [0], [1], [0, 0, 1, 1], [], []>} : vector<32x72xbf16>, vector<72x128xbf16>, vector<32x128xf32> -> vector<32x128xf32>
    %c0_4 = arith.constant 0 : index
    %c0_5 = arith.constant 0 : index
    %6 = vector.load %arg3[%c0_4, %c0_5] : memref<32x128xf32, #tpu.memory_space<vmem>>, vector<32x128xf32>
    tpu.vector_store %arg3[%c0_4, %c0_5], %5 {strides = array<i32>} : memref<32x128xf32, #tpu.memory_space<vmem>>, vector<32x128xf32>,
    %c0_6 = arith.constant 0 : index
    %c0_7 = arith.constant 0 : index
    %7 = vector.load %arg4[%c0_6, %c0_7] : memref<1x128xf32, #tpu.memory_space<vmem>>, vector<1x128xf32>
    %cst_8 = arith.constant dense<0.000000e+00> : vector<128xf32>
    %8 = vector.multi_reduction <add>, %5, %cst_8 [0] : vector<32x128xf32> to vector<128xf32>
    %9 = vector.shape_cast %8 : vector<128xf32> to vector<1x128xf32>
    %10 = arith.addf %7, %9 : vector<1x128xf32>
    %c0_9 = arith.constant 0 : index
    %c0_10 = arith.constant 0 : index
    %11 = vector.load %arg4[%c0_9, %c0_10] : memref<1x128xf32, #tpu.memory_space<vmem>>, vector<1x128xf32>
    tpu.vector_store %arg4[%c0_9, %c0_10], %10 {strides = array<i32>} : memref<1x128xf32, #tpu.memory_space<vmem>>, vector<1x128xf32>,
    %c0_11 = arith.constant 0 : index
    %c0_12 = arith.constant 0 : index
    %12 = vector.load %arg5[%c0_11, %c0_12] : memref<1x128xf32, #tpu.memory_space<vmem>>, vector<1x128xf32>
    %13 = arith.mulf %5, %5 : vector<32x128xf32>
    %cst_13 = arith.constant dense<0.000000e+00> : vector<128xf32>
    %14 = vector.multi_reduction <add>, %13, %cst_13 [0] : vector<32x128xf32> to vector<128xf32>
    %15 = vector.shape_cast %14 : vector<128xf32> to vector<1x128xf32>
    %16 = arith.addf %12, %15 : vector<1x128xf32>
    %c0_14 = arith.constant 0 : index
    %c0_15 = arith.constant 0 : index
    %17 = vector.load %arg5[%c0_14, %c0_15] : memref<1x128xf32, #tpu.memory_space<vmem>>, vector<1x128xf32>
    tpu.vector_store %arg5[%c0_14, %c0_15], %16 {strides = array<i32>} : memref<1x128xf32, #tpu.memory_space<vmem>>, vector<1x128xf32>,
    return
  }
  func.func @transform_0(%arg0: i32) -> (i32, i32) {
    %c0_i32 = arith.constant 0 : i32
    %c0_i32_0 = arith.constant 0 : i32
    return %arg0, %c0_i32 : i32, i32
  }
  func.func @transform_1(%arg0: i32) -> (i32, i32) {
    %c0_i32 = arith.constant 0 : i32
    %c0_i32_0 = arith.constant 0 : i32
    %c0_i32_1 = arith.constant 0 : i32
    return %c0_i32, %c0_i32_0 : i32, i32
  }
  func.func @transform_2(%arg0: i32) -> (i32, i32) {
    %c0_i32 = arith.constant 0 : i32
    %c0_i32_0 = arith.constant 0 : i32
    return %arg0, %c0_i32 : i32, i32
  }
  func.func @transform_3(%arg0: i32) -> (i32, i32) {
    %c0_i32 = arith.constant 0 : i32
    %c0_i32_0 = arith.constant 0 : i32
    %c0_i32_1 = arith.constant 0 : i32
    return %c0_i32, %c0_i32_0 : i32, i32
  }
  func.func @transform_4(%arg0: i32) -> (i32, i32) {
    %c0_i32 = arith.constant 0 : i32
    %c0_i32_0 = arith.constant 0 : i32
    %c0_i32_1 = arith.constant 0 : i32
    return %c0_i32, %c0_i32_0 : i32, i32
  }
}

module attributes {stable_mosaic.version = 11 : i64} {
  func.func @_matmul_stats_kernel(%arg0: i32, %arg1: memref<32x144xbf16, #tpu.memory_space<vmem>>, %arg2: memref<144x128xbf16, #tpu.memory_space<vmem>>, %arg3: memref<32x128xf32, #tpu.memory_space<vmem>>, %arg4: memref<1x128xf32, #tpu.memory_space<vmem>>, %arg5: memref<1x128xf32, #tpu.memory_space<vmem>>) attributes {dimension_semantics = [#tpu.dimension_semantics<arbitrary>], iteration_bounds = array<i64: 1>, scalar_prefetch = 0 : i64, scratch_operands = 0 : i64, tpu.core_type = #tpu.core_type<tc>, window_params = [{transform_indices = @transform_0, window_bounds = array<i64: 32, 144>}, {pipeline_mode = #tpu.pipeline_mode<synchronous>, transform_indices = @transform_1, window_bounds = array<i64: 144, 128>}, {transform_indices = @transform_2, window_bounds = array<i64: 32, 128>}, {pipeline_mode = #tpu.pipeline_mode<synchronous>, transform_indices = @transform_3, window_bounds = array<i64: 1, 128>}, {pipeline_mode = #tpu.pipeline_mode<synchronous>, transform_indices = @transform_4, window_bounds = array<i64: 1, 128>}]} {
    %c0_i32 = arith.constant 0 : i32
    %0 = arith.cmpi eq, %arg0, %c0_i32 : i32
    %1 = arith.extui %0 : i1 to i32
    %c0_i32_0 = arith.constant 0 : i32
    %2 = arith.cmpi ne, %1, %c0_i32_0 : i32
    scf.if %2 {
      %cst_16 = arith.constant 0.000000e+00 : f32
      %18 = vector.broadcast %cst_16 : f32 to vector<1x128xf32>
      %c0_17 = arith.constant 0 : index
      %c0_18 = arith.constant 0 : index
      %19 = vector.load %arg4[%c0_17, %c0_18] : memref<1x128xf32, #tpu.memory_space<vmem>>, vector<1x128xf32>
      tpu.vector_store %arg4[%c0_17, %c0_18], %18 {strides = array<i32>} : memref<1x128xf32, #tpu.memory_space<vmem>>, vector<1x128xf32>,
      %cst_19 = arith.constant 0.000000e+00 : f32
      %20 = vector.broadcast %cst_19 : f32 to vector<1x128xf32>
      %c0_20 = arith.constant 0 : index
      %c0_21 = arith.constant 0 : index
      %21 = vector.load %arg5[%c0_20, %c0_21] : memref<1x128xf32, #tpu.memory_space<vmem>>, vector<1x128xf32>
      tpu.vector_store %arg5[%c0_20, %c0_21], %20 {strides = array<i32>} : memref<1x128xf32, #tpu.memory_space<vmem>>, vector<1x128xf32>,
    } else {
    }
    %c0 = arith.constant 0 : index
    %c0_1 = arith.constant 0 : index
    %3 = vector.load %arg1[%c0, %c0_1] : memref<32x144xbf16, #tpu.memory_space<vmem>>, vector<32x144xbf16>
    %c0_2 = arith.constant 0 : index
    %c0_3 = arith.constant 0 : index
    %4 = vector.load %arg2[%c0_2, %c0_3] : memref<144x128xbf16, #tpu.memory_space<vmem>>, vector<144x128xbf16>
    %cst = arith.constant dense<0.000000e+00> : vector<32x128xf32>
    %5 = tpu.matmul %3, %4, %cst {dimension_numbers = #tpu.dot_dimension_numbers<[1], [0], [0], [1], [0, 0, 1, 1], [], []>} : vector<32x144xbf16>, vector<144x128xbf16>, vector<32x128xf32> -> vector<32x128xf32>
    %c0_4 = arith.constant 0 : index
    %c0_5 = arith.constant 0 : index
    %6 = vector.load %arg3[%c0_4, %c0_5] : memref<32x128xf32, #tpu.memory_space<vmem>>, vector<32x128xf32>
    tpu.vector_store %arg3[%c0_4, %c0_5], %5 {strides = array<i32>} : memref<32x128xf32, #tpu.memory_space<vmem>>, vector<32x128xf32>,
    %c0_6 = arith.constant 0 : index
    %c0_7 = arith.constant 0 : index
    %7 = vector.load %arg4[%c0_6, %c0_7] : memref<1x128xf32, #tpu.memory_space<vmem>>, vector<1x128xf32>
    %cst_8 = arith.constant dense<0.000000e+00> : vector<128xf32>
    %8 = vector.multi_reduction <add>, %5, %cst_8 [0] : vector<32x128xf32> to vector<128xf32>
    %9 = vector.shape_cast %8 : vector<128xf32> to vector<1x128xf32>
    %10 = arith.addf %7, %9 : vector<1x128xf32>
    %c0_9 = arith.constant 0 : index
    %c0_10 = arith.constant 0 : index
    %11 = vector.load %arg4[%c0_9, %c0_10] : memref<1x128xf32, #tpu.memory_space<vmem>>, vector<1x128xf32>
    tpu.vector_store %arg4[%c0_9, %c0_10], %10 {strides = array<i32>} : memref<1x128xf32, #tpu.memory_space<vmem>>, vector<1x128xf32>,
    %c0_11 = arith.constant 0 : index
    %c0_12 = arith.constant 0 : index
    %12 = vector.load %arg5[%c0_11, %c0_12] : memref<1x128xf32, #tpu.memory_space<vmem>>, vector<1x128xf32>
    %13 = arith.mulf %5, %5 : vector<32x128xf32>
    %cst_13 = arith.constant dense<0.000000e+00> : vector<128xf32>
    %14 = vector.multi_reduction <add>, %13, %cst_13 [0] : vector<32x128xf32> to vector<128xf32>
    %15 = vector.shape_cast %14 : vector<128xf32> to vector<1x128xf32>
    %16 = arith.addf %12, %15 : vector<1x128xf32>
    %c0_14 = arith.constant 0 : index
    %c0_15 = arith.constant 0 : index
    %17 = vector.load %arg5[%c0_14, %c0_15] : memref<1x128xf32, #tpu.memory_space<vmem>>, vector<1x128xf32>
    tpu.vector_store %arg5[%c0_14, %c0_15], %16 {strides = array<i32>} : memref<1x128xf32, #tpu.memory_space<vmem>>, vector<1x128xf32>,
    return
  }
  func.func @transform_0(%arg0: i32) -> (i32, i32) {
    %c0_i32 = arith.constant 0 : i32
    %c0_i32_0 = arith.constant 0 : i32
    return %arg0, %c0_i32 : i32, i32
  }
  func.func @transform_1(%arg0: i32) -> (i32, i32) {
    %c0_i32 = arith.constant 0 : i32
    %c0_i32_0 = arith.constant 0 : i32
    %c0_i32_1 = arith.constant 0 : i32
    return %c0_i32, %c0_i32_0 : i32, i32
  }
  func.func @transform_2(%arg0: i32) -> (i32, i32) {
    %c0_i32 = arith.constant 0 : i32
    %c0_i32_0 = arith.constant 0 : i32
    return %arg0, %c0_i32 : i32, i32
  }
  func.func @transform_3(%arg0: i32) -> (i32, i32) {
    %c0_i32 = arith.constant 0 : i32
    %c0_i32_0 = arith.constant 0 : i32
    %c0_i32_1 = arith.constant 0 : i32
    return %c0_i32, %c0_i32_0 : i32, i32
  }
  func.func @transform_4(%arg0: i32) -> (i32, i32) {
    %c0_i32 = arith.constant 0 : i32
    %c0_i32_0 = arith.constant 0 : i32
    %c0_i32_1 = arith.constant 0 : i32
    return %c0_i32, %c0_i32_0 : i32, i32
  }
}

module attributes {stable_mosaic.version = 11 : i64} {
  func.func @kernel(%arg0: i32, %arg1: memref<32x128xf32, #tpu.memory_space<vmem>>, %arg2: memref<1x128xf32, #tpu.memory_space<vmem>>, %arg3: memref<1x128xf32, #tpu.memory_space<vmem>>, %arg4: memref<32x128xf32, #tpu.memory_space<vmem>>, %arg5: memref<32x128xf32, #tpu.memory_space<vmem>>) attributes {dimension_semantics = [#tpu.dimension_semantics<parallel>], iteration_bounds = array<i64: 1>, scalar_prefetch = 0 : i64, scratch_operands = 0 : i64, tpu.core_type = #tpu.core_type<tc>, window_params = [{transform_indices = @transform_0, window_bounds = array<i64: 32, 128>}, {pipeline_mode = #tpu.pipeline_mode<synchronous>, transform_indices = @transform_1, window_bounds = array<i64: 1, 128>}, {pipeline_mode = #tpu.pipeline_mode<synchronous>, transform_indices = @transform_2, window_bounds = array<i64: 1, 128>}, {transform_indices = @transform_3, window_bounds = array<i64: 32, 128>}, {transform_indices = @transform_4, window_bounds = array<i64: 32, 128>}]} {
    %c0 = arith.constant 0 : index
    %c0_0 = arith.constant 0 : index
    %0 = vector.load %arg1[%c0, %c0_0] : memref<32x128xf32, #tpu.memory_space<vmem>>, vector<32x128xf32>
    %c0_1 = arith.constant 0 : index
    %c0_2 = arith.constant 0 : index
    %1 = vector.load %arg2[%c0_1, %c0_2] : memref<1x128xf32, #tpu.memory_space<vmem>>, vector<1x128xf32>
    %2 = vector.broadcast %1 : vector<1x128xf32> to vector<32x128xf32>
    %3 = arith.mulf %0, %2 : vector<32x128xf32>
    %c0_3 = arith.constant 0 : index
    %c0_4 = arith.constant 0 : index
    %4 = vector.load %arg3[%c0_3, %c0_4] : memref<1x128xf32, #tpu.memory_space<vmem>>, vector<1x128xf32>
    %5 = vector.broadcast %4 : vector<1x128xf32> to vector<32x128xf32>
    %6 = arith.addf %3, %5 : vector<32x128xf32>
    %c0_5 = arith.constant 0 : index
    %c0_6 = arith.constant 0 : index
    %7 = vector.load %arg4[%c0_5, %c0_6] : memref<32x128xf32, #tpu.memory_space<vmem>>, vector<32x128xf32>
    %8 = arith.addf %6, %7 : vector<32x128xf32>
    %c0_7 = arith.constant 0 : index
    %c0_8 = arith.constant 0 : index
    %9 = vector.load %arg5[%c0_7, %c0_8] : memref<32x128xf32, #tpu.memory_space<vmem>>, vector<32x128xf32>
    tpu.vector_store %arg5[%c0_7, %c0_8], %8 {strides = array<i32>} : memref<32x128xf32, #tpu.memory_space<vmem>>, vector<32x128xf32>,
    return
  }
  func.func @transform_0(%arg0: i32) -> (i32, i32) {
    %c0_i32 = arith.constant 0 : i32
    %c0_i32_0 = arith.constant 0 : i32
    return %arg0, %c0_i32 : i32, i32
  }
  func.func @transform_1(%arg0: i32) -> (i32, i32) {
    %c0_i32 = arith.constant 0 : i32
    %c0_i32_0 = arith.constant 0 : i32
    %c0_i32_1 = arith.constant 0 : i32
    return %c0_i32, %c0_i32_0 : i32, i32
  }
  func.func @transform_2(%arg0: i32) -> (i32, i32) {
    %c0_i32 = arith.constant 0 : i32
    %c0_i32_0 = arith.constant 0 : i32
    %c0_i32_1 = arith.constant 0 : i32
    return %c0_i32, %c0_i32_0 : i32, i32
  }
  func.func @transform_3(%arg0: i32) -> (i32, i32) {
    %c0_i32 = arith.constant 0 : i32
    %c0_i32_0 = arith.constant 0 : i32
    return %arg0, %c0_i32 : i32, i32
  }
  func.func @transform_4(%arg0: i32) -> (i32, i32) {
    %c0_i32 = arith.constant 0 : i32
    %c0_i32_0 = arith.constant 0 : i32
    return %arg0, %c0_i32 : i32, i32
  }
}

module attributes {stable_mosaic.version = 11 : i64} {
  func.func @_matmul_stats_kernel(%arg0: i32, %arg1: memref<128x144xbf16, #tpu.memory_space<vmem>>, %arg2: memref<144x128xbf16, #tpu.memory_space<vmem>>, %arg3: memref<128x128xf32, #tpu.memory_space<vmem>>, %arg4: memref<1x128xf32, #tpu.memory_space<vmem>>, %arg5: memref<1x128xf32, #tpu.memory_space<vmem>>) attributes {dimension_semantics = [#tpu.dimension_semantics<arbitrary>], iteration_bounds = array<i64: 1>, scalar_prefetch = 0 : i64, scratch_operands = 0 : i64, tpu.core_type = #tpu.core_type<tc>, window_params = [{transform_indices = @transform_0, window_bounds = array<i64: 128, 144>}, {pipeline_mode = #tpu.pipeline_mode<synchronous>, transform_indices = @transform_1, window_bounds = array<i64: 144, 128>}, {transform_indices = @transform_2, window_bounds = array<i64: 128, 128>}, {pipeline_mode = #tpu.pipeline_mode<synchronous>, transform_indices = @transform_3, window_bounds = array<i64: 1, 128>}, {pipeline_mode = #tpu.pipeline_mode<synchronous>, transform_indices = @transform_4, window_bounds = array<i64: 1, 128>}]} {
    %c0_i32 = arith.constant 0 : i32
    %0 = arith.cmpi eq, %arg0, %c0_i32 : i32
    %1 = arith.extui %0 : i1 to i32
    %c0_i32_0 = arith.constant 0 : i32
    %2 = arith.cmpi ne, %1, %c0_i32_0 : i32
    scf.if %2 {
      %cst_16 = arith.constant 0.000000e+00 : f32
      %18 = vector.broadcast %cst_16 : f32 to vector<1x128xf32>
      %c0_17 = arith.constant 0 : index
      %c0_18 = arith.constant 0 : index
      %19 = vector.load %arg4[%c0_17, %c0_18] : memref<1x128xf32, #tpu.memory_space<vmem>>, vector<1x128xf32>
      tpu.vector_store %arg4[%c0_17, %c0_18], %18 {strides = array<i32>} : memref<1x128xf32, #tpu.memory_space<vmem>>, vector<1x128xf32>,
      %cst_19 = arith.constant 0.000000e+00 : f32
      %20 = vector.broadcast %cst_19 : f32 to vector<1x128xf32>
      %c0_20 = arith.constant 0 : index
      %c0_21 = arith.constant 0 : index
      %21 = vector.load %arg5[%c0_20, %c0_21] : memref<1x128xf32, #tpu.memory_space<vmem>>, vector<1x128xf32>
      tpu.vector_store %arg5[%c0_20, %c0_21], %20 {strides = array<i32>} : memref<1x128xf32, #tpu.memory_space<vmem>>, vector<1x128xf32>,
    } else {
    }
    %c0 = arith.constant 0 : index
    %c0_1 = arith.constant 0 : index
    %3 = vector.load %arg1[%c0, %c0_1] : memref<128x144xbf16, #tpu.memory_space<vmem>>, vector<128x144xbf16>
    %c0_2 = arith.constant 0 : index
    %c0_3 = arith.constant 0 : index
    %4 = vector.load %arg2[%c0_2, %c0_3] : memref<144x128xbf16, #tpu.memory_space<vmem>>, vector<144x128xbf16>
    %cst = arith.constant dense<0.000000e+00> : vector<128x128xf32>
    %5 = tpu.matmul %3, %4, %cst {dimension_numbers = #tpu.dot_dimension_numbers<[1], [0], [0], [1], [0, 0, 1, 1], [], []>} : vector<128x144xbf16>, vector<144x128xbf16>, vector<128x128xf32> -> vector<128x128xf32>
    %c0_4 = arith.constant 0 : index
    %c0_5 = arith.constant 0 : index
    %6 = vector.load %arg3[%c0_4, %c0_5] : memref<128x128xf32, #tpu.memory_space<vmem>>, vector<128x128xf32>
    tpu.vector_store %arg3[%c0_4, %c0_5], %5 {strides = array<i32>} : memref<128x128xf32, #tpu.memory_space<vmem>>, vector<128x128xf32>,
    %c0_6 = arith.constant 0 : index
    %c0_7 = arith.constant 0 : index
    %7 = vector.load %arg4[%c0_6, %c0_7] : memref<1x128xf32, #tpu.memory_space<vmem>>, vector<1x128xf32>
    %cst_8 = arith.constant dense<0.000000e+00> : vector<128xf32>
    %8 = vector.multi_reduction <add>, %5, %cst_8 [0] : vector<128x128xf32> to vector<128xf32>
    %9 = vector.shape_cast %8 : vector<128xf32> to vector<1x128xf32>
    %10 = arith.addf %7, %9 : vector<1x128xf32>
    %c0_9 = arith.constant 0 : index
    %c0_10 = arith.constant 0 : index
    %11 = vector.load %arg4[%c0_9, %c0_10] : memref<1x128xf32, #tpu.memory_space<vmem>>, vector<1x128xf32>
    tpu.vector_store %arg4[%c0_9, %c0_10], %10 {strides = array<i32>} : memref<1x128xf32, #tpu.memory_space<vmem>>, vector<1x128xf32>,
    %c0_11 = arith.constant 0 : index
    %c0_12 = arith.constant 0 : index
    %12 = vector.load %arg5[%c0_11, %c0_12] : memref<1x128xf32, #tpu.memory_space<vmem>>, vector<1x128xf32>
    %13 = arith.mulf %5, %5 : vector<128x128xf32>
    %cst_13 = arith.constant dense<0.000000e+00> : vector<128xf32>
    %14 = vector.multi_reduction <add>, %13, %cst_13 [0] : vector<128x128xf32> to vector<128xf32>
    %15 = vector.shape_cast %14 : vector<128xf32> to vector<1x128xf32>
    %16 = arith.addf %12, %15 : vector<1x128xf32>
    %c0_14 = arith.constant 0 : index
    %c0_15 = arith.constant 0 : index
    %17 = vector.load %arg5[%c0_14, %c0_15] : memref<1x128xf32, #tpu.memory_space<vmem>>, vector<1x128xf32>
    tpu.vector_store %arg5[%c0_14, %c0_15], %16 {strides = array<i32>} : memref<1x128xf32, #tpu.memory_space<vmem>>, vector<1x128xf32>,
    return
  }
  func.func @transform_0(%arg0: i32) -> (i32, i32) {
    %c0_i32 = arith.constant 0 : i32
    %c0_i32_0 = arith.constant 0 : i32
    return %arg0, %c0_i32 : i32, i32
  }
  func.func @transform_1(%arg0: i32) -> (i32, i32) {
    %c0_i32 = arith.constant 0 : i32
    %c0_i32_0 = arith.constant 0 : i32
    %c0_i32_1 = arith.constant 0 : i32
    return %c0_i32, %c0_i32_0 : i32, i32
  }
  func.func @transform_2(%arg0: i32) -> (i32, i32) {
    %c0_i32 = arith.constant 0 : i32
    %c0_i32_0 = arith.constant 0 : i32
    return %arg0, %c0_i32 : i32, i32
  }
  func.func @transform_3(%arg0: i32) -> (i32, i32) {
    %c0_i32 = arith.constant 0 : i32
    %c0_i32_0 = arith.constant 0 : i32
    %c0_i32_1 = arith.constant 0 : i32
    return %c0_i32, %c0_i32_0 : i32, i32
  }
  func.func @transform_4(%arg0: i32) -> (i32, i32) {
    %c0_i32 = arith.constant 0 : i32
    %c0_i32_0 = arith.constant 0 : i32
    %c0_i32_1 = arith.constant 0 : i32
    return %c0_i32, %c0_i32_0 : i32, i32
  }
}

module attributes {stable_mosaic.version = 11 : i64} {
  func.func @_matmul_stats_kernel(%arg0: i32, %arg1: memref<512x144xbf16, #tpu.memory_space<vmem>>, %arg2: memref<144x128xbf16, #tpu.memory_space<vmem>>, %arg3: memref<512x128xf32, #tpu.memory_space<vmem>>, %arg4: memref<1x128xf32, #tpu.memory_space<vmem>>, %arg5: memref<1x128xf32, #tpu.memory_space<vmem>>) attributes {dimension_semantics = [#tpu.dimension_semantics<arbitrary>], iteration_bounds = array<i64: 1>, scalar_prefetch = 0 : i64, scratch_operands = 0 : i64, tpu.core_type = #tpu.core_type<tc>, window_params = [{transform_indices = @transform_0, window_bounds = array<i64: 512, 144>}, {pipeline_mode = #tpu.pipeline_mode<synchronous>, transform_indices = @transform_1, window_bounds = array<i64: 144, 128>}, {transform_indices = @transform_2, window_bounds = array<i64: 512, 128>}, {pipeline_mode = #tpu.pipeline_mode<synchronous>, transform_indices = @transform_3, window_bounds = array<i64: 1, 128>}, {pipeline_mode = #tpu.pipeline_mode<synchronous>, transform_indices = @transform_4, window_bounds = array<i64: 1, 128>}]} {
    %c0_i32 = arith.constant 0 : i32
    %0 = arith.cmpi eq, %arg0, %c0_i32 : i32
    %1 = arith.extui %0 : i1 to i32
    %c0_i32_0 = arith.constant 0 : i32
    %2 = arith.cmpi ne, %1, %c0_i32_0 : i32
    scf.if %2 {
      %cst_16 = arith.constant 0.000000e+00 : f32
      %18 = vector.broadcast %cst_16 : f32 to vector<1x128xf32>
      %c0_17 = arith.constant 0 : index
      %c0_18 = arith.constant 0 : index
      %19 = vector.load %arg4[%c0_17, %c0_18] : memref<1x128xf32, #tpu.memory_space<vmem>>, vector<1x128xf32>
      tpu.vector_store %arg4[%c0_17, %c0_18], %18 {strides = array<i32>} : memref<1x128xf32, #tpu.memory_space<vmem>>, vector<1x128xf32>,
      %cst_19 = arith.constant 0.000000e+00 : f32
      %20 = vector.broadcast %cst_19 : f32 to vector<1x128xf32>
      %c0_20 = arith.constant 0 : index
      %c0_21 = arith.constant 0 : index
      %21 = vector.load %arg5[%c0_20, %c0_21] : memref<1x128xf32, #tpu.memory_space<vmem>>, vector<1x128xf32>
      tpu.vector_store %arg5[%c0_20, %c0_21], %20 {strides = array<i32>} : memref<1x128xf32, #tpu.memory_space<vmem>>, vector<1x128xf32>,
    } else {
    }
    %c0 = arith.constant 0 : index
    %c0_1 = arith.constant 0 : index
    %3 = vector.load %arg1[%c0, %c0_1] : memref<512x144xbf16, #tpu.memory_space<vmem>>, vector<512x144xbf16>
    %c0_2 = arith.constant 0 : index
    %c0_3 = arith.constant 0 : index
    %4 = vector.load %arg2[%c0_2, %c0_3] : memref<144x128xbf16, #tpu.memory_space<vmem>>, vector<144x128xbf16>
    %cst = arith.constant dense<0.000000e+00> : vector<512x128xf32>
    %5 = tpu.matmul %3, %4, %cst {dimension_numbers = #tpu.dot_dimension_numbers<[1], [0], [0], [1], [0, 0, 1, 1], [], []>} : vector<512x144xbf16>, vector<144x128xbf16>, vector<512x128xf32> -> vector<512x128xf32>
    %c0_4 = arith.constant 0 : index
    %c0_5 = arith.constant 0 : index
    %6 = vector.load %arg3[%c0_4, %c0_5] : memref<512x128xf32, #tpu.memory_space<vmem>>, vector<512x128xf32>
    tpu.vector_store %arg3[%c0_4, %c0_5], %5 {strides = array<i32>} : memref<512x128xf32, #tpu.memory_space<vmem>>, vector<512x128xf32>,
    %c0_6 = arith.constant 0 : index
    %c0_7 = arith.constant 0 : index
    %7 = vector.load %arg4[%c0_6, %c0_7] : memref<1x128xf32, #tpu.memory_space<vmem>>, vector<1x128xf32>
    %cst_8 = arith.constant dense<0.000000e+00> : vector<128xf32>
    %8 = vector.multi_reduction <add>, %5, %cst_8 [0] : vector<512x128xf32> to vector<128xf32>
    %9 = vector.shape_cast %8 : vector<128xf32> to vector<1x128xf32>
    %10 = arith.addf %7, %9 : vector<1x128xf32>
    %c0_9 = arith.constant 0 : index
    %c0_10 = arith.constant 0 : index
    %11 = vector.load %arg4[%c0_9, %c0_10] : memref<1x128xf32, #tpu.memory_space<vmem>>, vector<1x128xf32>
    tpu.vector_store %arg4[%c0_9, %c0_10], %10 {strides = array<i32>} : memref<1x128xf32, #tpu.memory_space<vmem>>, vector<1x128xf32>,
    %c0_11 = arith.constant 0 : index
    %c0_12 = arith.constant 0 : index
    %12 = vector.load %arg5[%c0_11, %c0_12] : memref<1x128xf32, #tpu.memory_space<vmem>>, vector<1x128xf32>
    %13 = arith.mulf %5, %5 : vector<512x128xf32>
    %cst_13 = arith.constant dense<0.000000e+00> : vector<128xf32>
    %14 = vector.multi_reduction <add>, %13, %cst_13 [0] : vector<512x128xf32> to vector<128xf32>
    %15 = vector.shape_cast %14 : vector<128xf32> to vector<1x128xf32>
    %16 = arith.addf %12, %15 : vector<1x128xf32>
    %c0_14 = arith.constant 0 : index
    %c0_15 = arith.constant 0 : index
    %17 = vector.load %arg5[%c0_14, %c0_15] : memref<1x128xf32, #tpu.memory_space<vmem>>, vector<1x128xf32>
    tpu.vector_store %arg5[%c0_14, %c0_15], %16 {strides = array<i32>} : memref<1x128xf32, #tpu.memory_space<vmem>>, vector<1x128xf32>,
    return
  }
  func.func @transform_0(%arg0: i32) -> (i32, i32) {
    %c0_i32 = arith.constant 0 : i32
    %c0_i32_0 = arith.constant 0 : i32
    return %arg0, %c0_i32 : i32, i32
  }
  func.func @transform_1(%arg0: i32) -> (i32, i32) {
    %c0_i32 = arith.constant 0 : i32
    %c0_i32_0 = arith.constant 0 : i32
    %c0_i32_1 = arith.constant 0 : i32
    return %c0_i32, %c0_i32_0 : i32, i32
  }
  func.func @transform_2(%arg0: i32) -> (i32, i32) {
    %c0_i32 = arith.constant 0 : i32
    %c0_i32_0 = arith.constant 0 : i32
    return %arg0, %c0_i32 : i32, i32
  }
  func.func @transform_3(%arg0: i32) -> (i32, i32) {
    %c0_i32 = arith.constant 0 : i32
    %c0_i32_0 = arith.constant 0 : i32
    %c0_i32_1 = arith.constant 0 : i32
    return %c0_i32, %c0_i32_0 : i32, i32
  }
  func.func @transform_4(%arg0: i32) -> (i32, i32) {
    %c0_i32 = arith.constant 0 : i32
    %c0_i32_0 = arith.constant 0 : i32
    %c0_i32_1 = arith.constant 0 : i32
    return %c0_i32, %c0_i32_0 : i32, i32
  }
}

module attributes {stable_mosaic.version = 11 : i64} {
  func.func @kernel(%arg0: i32, %arg1: memref<512x392xbf16, #tpu.memory_space<vmem>>, %arg2: memref<392x128xbf16, #tpu.memory_space<vmem>>, %arg3: memref<512x128xf32, #tpu.memory_space<vmem>>) attributes {dimension_semantics = [#tpu.dimension_semantics<parallel>], iteration_bounds = array<i64: 1>, scalar_prefetch = 0 : i64, scratch_operands = 0 : i64, tpu.core_type = #tpu.core_type<tc>, window_params = [{transform_indices = @transform_0, window_bounds = array<i64: 512, 392>}, {pipeline_mode = #tpu.pipeline_mode<synchronous>, transform_indices = @transform_1, window_bounds = array<i64: 392, 128>}, {transform_indices = @transform_2, window_bounds = array<i64: 512, 128>}]} {
    %c0 = arith.constant 0 : index
    %c0_0 = arith.constant 0 : index
    %0 = vector.load %arg1[%c0, %c0_0] : memref<512x392xbf16, #tpu.memory_space<vmem>>, vector<512x392xbf16>
    %c0_1 = arith.constant 0 : index
    %c0_2 = arith.constant 0 : index
    %1 = vector.load %arg2[%c0_1, %c0_2] : memref<392x128xbf16, #tpu.memory_space<vmem>>, vector<392x128xbf16>
    %cst = arith.constant dense<0.000000e+00> : vector<512x128xf32>
    %2 = tpu.matmul %0, %1, %cst {dimension_numbers = #tpu.dot_dimension_numbers<[1], [0], [0], [1], [0, 0, 1, 1], [], []>} : vector<512x392xbf16>, vector<392x128xbf16>, vector<512x128xf32> -> vector<512x128xf32>
    %c0_3 = arith.constant 0 : index
    %c0_4 = arith.constant 0 : index
    %3 = vector.load %arg3[%c0_3, %c0_4] : memref<512x128xf32, #tpu.memory_space<vmem>>, vector<512x128xf32>
    tpu.vector_store %arg3[%c0_3, %c0_4], %2 {strides = array<i32>} : memref<512x128xf32, #tpu.memory_space<vmem>>, vector<512x128xf32>,
    return
  }
  func.func @transform_0(%arg0: i32) -> (i32, i32) {
    %c0_i32 = arith.constant 0 : i32
    %c0_i32_0 = arith.constant 0 : i32
    return %arg0, %c0_i32 : i32, i32
  }
  func.func @transform_1(%arg0: i32) -> (i32, i32) {
    %c0_i32 = arith.constant 0 : i32
    %c0_i32_0 = arith.constant 0 : i32
    %c0_i32_1 = arith.constant 0 : i32
    return %c0_i32, %c0_i32_0 : i32, i32
  }
  func.func @transform_2(%arg0: i32) -> (i32, i32) {
    %c0_i32 = arith.constant 0 : i32
    %c0_i32_0 = arith.constant 0 : i32
    return %arg0, %c0_i32 : i32, i32
  }
}

</mosaic_0001>

<bundles_post_ra>
// kernel: encoder_decoder_resnet_forward.20
= control target key start
LH: loop header
LB: loop body
LE: loop exit
PB: predicated region body
PF: predicated region fallthrough
CT: control target
= control target key end

     0   :  { %s896_s0 = inlined_call_operand.vmem [shape: f32[512,128], index: 0, kind: input, shape index: {}, may-alias: {0,3}]   ;;  %s897_s1 = inlined_call_operand.vmem [shape: f32[1,128], index: 1, kind: input, shape index: {}]   ;;  %s898_s2 = inlined_call_operand.vmem [shape: f32[1,128], index: 2, kind: input, shape index: {}]   ;;  %s899_s3 = inlined_call_operand.vmem [shape: f32[512,128], index: 3, kind: output, shape index: {}, may-alias: {0,3}]  }
   0x1   :  { %v14_v0 = vld [vmem:[%s896_s0] sm:$0xff]  ;;  %v15_v4 = vld [vmem:[%s896_s0 + $0x8] sm:$0xff]  ;;  %v16_v5 = vld [vmem:[%s896_s0 + $0x10] sm:$0xff] }
   0x2   :  { %v380_v1 = vld [vmem:[%s897_s1] ss:$0 sm:$0xff]  ;;  %v17_v6 = vld [vmem:[%s896_s0 + $0x18] sm:$0xff]  ;;  %v19_v11 = vld [vmem:[%s896_s0 + $0x28] sm:$0xff] }
   0x3   :  { %v385_v2 = vld [vmem:[%s898_s2] ss:$0 sm:$0xff]  ;;  %v85_v3 = vmul.f32 %v380_v1, %v14_v0  ;;  %v86_v7 = vmul.f32 %v380_v1, %v15_v4  ;;  %v87_v8 = vmul.f32 %v380_v1, %v16_v5  ;;  %v88_v9 = vmul.f32 %v380_v1, %v17_v6  ;;  %v20_v12 = vld [vmem:[%s896_s0 + $0x30] sm:$0xff]  ;;  %v21_v17 = vld [vmem:[%s896_s0 + $0x38] sm:$0xff] }
   0x4   :  { %v18_v10 = vld [vmem:[%s896_s0 + $0x20] sm:$0xff]  ;;  %v90_v15 = vmul.f32 %v380_v1, %v19_v11  ;;  %v91_v16 = vmul.f32 %v380_v1, %v20_v12  ;;  %v92_v21 = vmul.f32 %v380_v1, %v21_v17  ;;  %v23_v27 = vld [vmem:[%s896_s0 + $0x48] sm:$0xff]  ;;  %v24_v28 = vld [vmem:[%s896_s0 + $0x50] sm:$0xff] }
   0x5   :  { %v156_v13 = vadd.f32 %v385_v2, %v85_v3  ;;  %v89_v14 = vmul.f32 %v380_v1, %v18_v10  ;;  %v157_v18 = vadd.f32 %v385_v2, %v86_v7  ;;  %v158_v19 = vadd.f32 %v385_v2, %v87_v8  ;;  %v22_v22 = vld [vmem:[%s896_s0 + $0x40] sm:$0xff]  ;;  %v25_v29 = vld [vmem:[%s896_s0 + $0x58] sm:$0xff]  ;;  %v27_v35 = vld [vmem:[%s896_s0 + $0x68] sm:$0xff] }
   0x6   :  { %v159_v20 = vadd.f32 %v385_v2, %v88_v9  ;;  %v161_v25 = vadd.f32 %v385_v2, %v90_v15  ;;  %v162_v26 = vadd.f32 %v385_v2, %v91_v16  ;;  %v163_v33 = vadd.f32 %v385_v2, %v92_v21  ;;  %v26_v34 = vld [vmem:[%s896_s0 + $0x60] sm:$0xff]  ;;  %v28_v36 = vld [vmem:[%s896_s0 + $0x70] sm:$0xff] }
   0x7   :  { %v220_v23 = vmax.f32 %v156_v13, 0.0  ;;  %v160_v24 = vadd.f32 %v385_v2, %v89_v14  ;;  %v221_v30 = vmax.f32 %v157_v18, 0.0  ;;  %v222_v31 = vmax.f32 %v158_v19, 0.0 }
   0x8   :  { %v223_v32 = vmax.f32 %v159_v20, 0.0  ;;  %v225_v38 = vmax.f32 %v161_v25, 0.0  ;;  %v226_v39 = vmax.f32 %v162_v26, 0.0  ;;  %v93_v40 = vmul.f32 %v380_v1, %v22_v22 }
   0x9   :  { %284 = vst [vmem:[%s899_s3] sm:$0xff] %v220_v23  ;;  %v224_v37 = vmax.f32 %v160_v24, 0.0  ;;  %v227_v42 = vmax.f32 %v163_v33, 0.0  ;;  %v94_v43 = vmul.f32 %v380_v1, %v23_v27  ;;  %v95_v44 = vmul.f32 %v380_v1, %v24_v28 }
   0xa   :  { %v96_v45 = vmul.f32 %v380_v1, %v25_v29  ;;  %v164_v46 = vadd.f32 %v385_v2, %v93_v40  ;;  %v97_v47 = vmul.f32 %v380_v1, %v26_v34  ;;  %v98_v48 = vmul.f32 %v380_v1, %v27_v35 }
   0xb   :  { %v99_v49 = vmul.f32 %v380_v1, %v28_v36  ;;  %v165_v50 = vadd.f32 %v385_v2, %v94_v43  ;;  %v166_v51 = vadd.f32 %v385_v2, %v95_v44 }
   0xc   :  { %v167_v52 = vadd.f32 %v385_v2, %v96_v45  ;;  %v228_v55 = vmax.f32 %v164_v46, 0.0  ;;  %v168_v56 = vadd.f32 %v385_v2, %v97_v47  ;;  %v169_v57 = vadd.f32 %v385_v2, %v98_v48 }
   0xd   :  { %v170_v58 = vadd.f32 %v385_v2, %v99_v49  ;;  %v229_v62 = vmax.f32 %v165_v50, 0.0  ;;  %v230_v63 = vmax.f32 %v166_v51, 0.0 }
   0xe   :  { %v231_v0 = vmax.f32 %v167_v52, 0.0  ;;  %v232_v7 = vmax.f32 %v168_v56, 0.0  ;;  %v233_v8 = vmax.f32 %v169_v57, 0.0 }
   0xf   :  { %v234_v9 = vmax.f32 %v170_v58, 0.0 }
  0x10   :  { %v29_v41 = vld [vmem:[%s896_s0 + $0x78] sm:$0xff] }
  0x11   :  { %285 = vst [vmem:[%s899_s3 + $0x8] sm:$0xff] %v221_v30  ;;  %286 = vst [vmem:[%s899_s3 + $0x10] sm:$0xff] %v222_v31  ;;  %v100_v53 = vmul.f32 %v380_v1, %v29_v41 }
  0x12   :  { %287 = vst [vmem:[%s899_s3 + $0x18] sm:$0xff] %v223_v32  ;;  %288 = vst [vmem:[%s899_s3 + $0x20] sm:$0xff] %v224_v37 }
  0x13   :  { %289 = vst [vmem:[%s899_s3 + $0x28] sm:$0xff] %v225_v38  ;;  %290 = vst [vmem:[%s899_s3 + $0x30] sm:$0xff] %v226_v39  ;;  %v171_v3 = vadd.f32 %v385_v2, %v100_v53 }
  0x14   :  { %291 = vst [vmem:[%s899_s3 + $0x38] sm:$0xff] %v227_v42 }
  0x15   :  { %v235_v12 = vmax.f32 %v171_v3, 0.0 }
  0x1b   :  { %v30_v54 = vld [vmem:[%s896_s0 + $0x80] sm:$0xff]  ;;  %v31_v59 = vld [vmem:[%s896_s0 + $0x88] sm:$0xff]  ;;  %v32_v60 = vld [vmem:[%s896_s0 + $0x90] sm:$0xff] }
  0x1c   :  { %v33_v61 = vld [vmem:[%s896_s0 + $0x98] sm:$0xff]  ;;  %v34_v4 = vld [vmem:[%s896_s0 + $0xa0] sm:$0xff]  ;;  %v35_v5 = vld [vmem:[%s896_s0 + $0xa8] sm:$0xff]  ;;  %v101_v10 = vmul.f32 %v380_v1, %v30_v54  ;;  %v102_v13 = vmul.f32 %v380_v1, %v31_v59  ;;  %v103_v14 = vmul.f32 %v380_v1, %v32_v60 }
  0x1d   :  { %v36_v6 = vld [vmem:[%s896_s0 + $0xb0] sm:$0xff]  ;;  %v104_v15 = vmul.f32 %v380_v1, %v33_v61  ;;  %v105_v17 = vmul.f32 %v380_v1, %v34_v4  ;;  %v106_v18 = vmul.f32 %v380_v1, %v35_v5 }
  0x1e   :  { %292 = vst [vmem:[%s899_s3 + $0x40] sm:$0xff] %v228_v55  ;;  %v172_v16 = vadd.f32 %v385_v2, %v101_v10  ;;  %v107_v19 = vmul.f32 %v380_v1, %v36_v6  ;;  %v173_v20 = vadd.f32 %v385_v2, %v102_v13  ;;  %v174_v21 = vadd.f32 %v385_v2, %v103_v14 }
  0x1f   :  { %v175_v22 = vadd.f32 %v385_v2, %v104_v15  ;;  %v176_v26 = vadd.f32 %v385_v2, %v105_v17  ;;  %v177_v27 = vadd.f32 %v385_v2, %v106_v18 }
  0x20   :  { %v236_v25 = vmax.f32 %v172_v16, 0.0  ;;  %v178_v28 = vadd.f32 %v385_v2, %v107_v19  ;;  %v237_v32 = vmax.f32 %v173_v20, 0.0  ;;  %v238_v33 = vmax.f32 %v174_v21, 0.0 }
  0x21   :  { %v239_v34 = vmax.f32 %v175_v22, 0.0  ;;  %v240_v39 = vmax.f32 %v176_v26, 0.0  ;;  %v241_v40 = vmax.f32 %v177_v27, 0.0 }
  0x22   :  { %v242_v41 = vmax.f32 %v178_v28, 0.0 }
  0x25   :  { %v37_v11 = vld [vmem:[%s896_s0 + $0xb8] sm:$0xff] }
  0x26   :  { %293 = vst [vmem:[%s899_s3 + $0x48] sm:$0xff] %v229_v62  ;;  %294 = vst [vmem:[%s899_s3 + $0x50] sm:$0xff] %v230_v63  ;;  %v108_v23 = vmul.f32 %v380_v1, %v37_v11 }
  0x27   :  { %295 = vst [vmem:[%s899_s3 + $0x58] sm:$0xff] %v231_v0  ;;  %296 = vst [vmem:[%s899_s3 + $0x60] sm:$0xff] %v232_v7 }
  0x28   :  { %297 = vst [vmem:[%s899_s3 + $0x68] sm:$0xff] %v233_v8  ;;  %298 = vst [vmem:[%s899_s3 + $0x70] sm:$0xff] %v234_v9  ;;  %v179_v35 = vadd.f32 %v385_v2, %v108_v23 }
  0x29   :  { %299 = vst [vmem:[%s899_s3 + $0x78] sm:$0xff] %v235_v12 }
  0x2a   :  { %v243_v44 = vmax.f32 %v179_v35, 0.0 }
  0x30   :  { %v38_v24 = vld [vmem:[%s896_s0 + $0xc0] sm:$0xff]  ;;  %v39_v29 = vld [vmem:[%s896_s0 + $0xc8] sm:$0xff]  ;;  %v40_v30 = vld [vmem:[%s896_s0 + $0xd0] sm:$0xff] }
  0x31   :  { %v41_v31 = vld [vmem:[%s896_s0 + $0xd8] sm:$0xff]  ;;  %v42_v36 = vld [vmem:[%s896_s0 + $0xe0] sm:$0xff]  ;;  %v43_v37 = vld [vmem:[%s896_s0 + $0xe8] sm:$0xff]  ;;  %v109_v42 = vmul.f32 %v380_v1, %v38_v24  ;;  %v110_v45 = vmul.f32 %v380_v1, %v39_v29  ;;  %v111_v46 = vmul.f32 %v380_v1, %v40_v30 }
  0x32   :  { %v44_v38 = vld [vmem:[%s896_s0 + $0xf0] sm:$0xff]  ;;  %v112_v47 = vmul.f32 %v380_v1, %v41_v31  ;;  %v113_v49 = vmul.f32 %v380_v1, %v42_v36  ;;  %v114_v50 = vmul.f32 %v380_v1, %v43_v37 }
  0x33   :  { %300 = vst [vmem:[%s899_s3 + $0x80] sm:$0xff] %v236_v25  ;;  %v180_v48 = vadd.f32 %v385_v2, %v109_v42  ;;  %v115_v51 = vmul.f32 %v380_v1, %v44_v38  ;;  %v181_v52 = vadd.f32 %v385_v2, %v110_v45  ;;  %v182_v53 = vadd.f32 %v385_v2, %v111_v46 }
  0x34   :  { %v183_v54 = vadd.f32 %v385_v2, %v112_v47  ;;  %v184_v58 = vadd.f32 %v385_v2, %v113_v49  ;;  %v185_v59 = vadd.f32 %v385_v2, %v114_v50 }
  0x35   :  { %v244_v57 = vmax.f32 %v180_v48, 0.0  ;;  %v186_v60 = vadd.f32 %v385_v2, %v115_v51  ;;  %v245_v0 = vmax.f32 %v181_v52, 0.0  ;;  %v246_v3 = vmax.f32 %v182_v53, 0.0 }
  0x36   :  { %v247_v4 = vmax.f32 %v183_v54, 0.0  ;;  %v248_v9 = vmax.f32 %v184_v58, 0.0  ;;  %v249_v10 = vmax.f32 %v185_v59, 0.0 }
  0x37   :  { %v250_v11 = vmax.f32 %v186_v60, 0.0 }
  0x3a   :  { %v45_v43 = vld [vmem:[%s896_s0 + $0xf8] sm:$0xff] }
  0x3b   :  { %301 = vst [vmem:[%s899_s3 + $0x88] sm:$0xff] %v237_v32  ;;  %302 = vst [vmem:[%s899_s3 + $0x90] sm:$0xff] %v238_v33  ;;  %v116_v55 = vmul.f32 %v380_v1, %v45_v43 }
  0x3c   :  { %303 = vst [vmem:[%s899_s3 + $0x98] sm:$0xff] %v239_v34  ;;  %304 = vst [vmem:[%s899_s3 + $0xa0] sm:$0xff] %v240_v39 }
  0x3d   :  { %305 = vst [vmem:[%s899_s3 + $0xa8] sm:$0xff] %v241_v40  ;;  %306 = vst [vmem:[%s899_s3 + $0xb0] sm:$0xff] %v242_v41  ;;  %v187_v5 = vadd.f32 %v385_v2, %v116_v55 }
  0x3e   :  { %307 = vst [vmem:[%s899_s3 + $0xb8] sm:$0xff] %v243_v44 }
  0x3f   :  { %v251_v14 = vmax.f32 %v187_v5, 0.0 }
  0x45   :  { %v46_v56 = vld [vmem:[%s896_s0 + $0x100] sm:$0xff]  ;;  %v47_v61 = vld [vmem:[%s896_s0 + $0x108] sm:$0xff]  ;;  %v48_v62 = vld [vmem:[%s896_s0 + $0x110] sm:$0xff] }
  0x46   :  { %v49_v63 = vld [vmem:[%s896_s0 + $0x118] sm:$0xff]  ;;  %v50_v6 = vld [vmem:[%s896_s0 + $0x120] sm:$0xff]  ;;  %v51_v7 = vld [vmem:[%s896_s0 + $0x128] sm:$0xff]  ;;  %v117_v12 = vmul.f32 %v380_v1, %v46_v56  ;;  %v118_v15 = vmul.f32 %v380_v1, %v47_v61  ;;  %v119_v16 = vmul.f32 %v380_v1, %v48_v62 }
  0x47   :  { %v52_v8 = vld [vmem:[%s896_s0 + $0x130] sm:$0xff]  ;;  %v120_v17 = vmul.f32 %v380_v1, %v49_v63  ;;  %v121_v19 = vmul.f32 %v380_v1, %v50_v6  ;;  %v122_v20 = vmul.f32 %v380_v1, %v51_v7 }
  0x48   :  { %308 = vst [vmem:[%s899_s3 + $0xc0] sm:$0xff] %v244_v57  ;;  %v188_v18 = vadd.f32 %v385_v2, %v117_v12  ;;  %v123_v21 = vmul.f32 %v380_v1, %v52_v8  ;;  %v189_v22 = vadd.f32 %v385_v2, %v118_v15  ;;  %v190_v23 = vadd.f32 %v385_v2, %v119_v16 }
  0x49   :  { %v191_v24 = vadd.f32 %v385_v2, %v120_v17  ;;  %v192_v28 = vadd.f32 %v385_v2, %v121_v19  ;;  %v193_v29 = vadd.f32 %v385_v2, %v122_v20 }
  0x4a   :  { %v252_v27 = vmax.f32 %v188_v18, 0.0  ;;  %v194_v30 = vadd.f32 %v385_v2, %v123_v21  ;;  %v253_v34 = vmax.f32 %v189_v22, 0.0  ;;  %v254_v35 = vmax.f32 %v190_v23, 0.0 }
  0x4b   :  { %v255_v36 = vmax.f32 %v191_v24, 0.0  ;;  %v256_v41 = vmax.f32 %v192_v28, 0.0  ;;  %v257_v42 = vmax.f32 %v193_v29, 0.0 }
  0x4c   :  { %v258_v43 = vmax.f32 %v194_v30, 0.0 }
  0x4f   :  { %v53_v13 = vld [vmem:[%s896_s0 + $0x138] sm:$0xff] }
  0x50   :  { %309 = vst [vmem:[%s899_s3 + $0xc8] sm:$0xff] %v245_v0  ;;  %310 = vst [vmem:[%s899_s3 + $0xd0] sm:$0xff] %v246_v3  ;;  %v124_v25 = vmul.f32 %v380_v1, %v53_v13 }
  0x51   :  { %311 = vst [vmem:[%s899_s3 + $0xd8] sm:$0xff] %v247_v4  ;;  %312 = vst [vmem:[%s899_s3 + $0xe0] sm:$0xff] %v248_v9 }
  0x52   :  { %313 = vst [vmem:[%s899_s3 + $0xe8] sm:$0xff] %v249_v10  ;;  %314 = vst [vmem:[%s899_s3 + $0xf0] sm:$0xff] %v250_v11  ;;  %v195_v37 = vadd.f32 %v385_v2, %v124_v25 }
  0x53   :  { %315 = vst [vmem:[%s899_s3 + $0xf8] sm:$0xff] %v251_v14 }
  0x54   :  { %v259_v46 = vmax.f32 %v195_v37, 0.0 }
  0x5a   :  { %v54_v26 = vld [vmem:[%s896_s0 + $0x140] sm:$0xff]  ;;  %v55_v31 = vld [vmem:[%s896_s0 + $0x148] sm:$0xff]  ;;  %v56_v32 = vld [vmem:[%s896_s0 + $0x150] sm:$0xff] }
  0x5b   :  { %v57_v33 = vld [vmem:[%s896_s0 + $0x158] sm:$0xff]  ;;  %v58_v38 = vld [vmem:[%s896_s0 + $0x160] sm:$0xff]  ;;  %v59_v39 = vld [vmem:[%s896_s0 + $0x168] sm:$0xff]  ;;  %v125_v44 = vmul.f32 %v380_v1, %v54_v26  ;;  %v126_v47 = vmul.f32 %v380_v1, %v55_v31  ;;  %v127_v48 = vmul.f32 %v380_v1, %v56_v32 }
  0x5c   :  { %v60_v40 = vld [vmem:[%s896_s0 + $0x170] sm:$0xff]  ;;  %v128_v49 = vmul.f32 %v380_v1, %v57_v33  ;;  %v129_v51 = vmul.f32 %v380_v1, %v58_v38  ;;  %v130_v52 = vmul.f32 %v380_v1, %v59_v39 }
  0x5d   :  { %316 = vst [vmem:[%s899_s3 + $0x100] sm:$0xff] %v252_v27  ;;  %v196_v50 = vadd.f32 %v385_v2, %v125_v44  ;;  %v131_v53 = vmul.f32 %v380_v1, %v60_v40  ;;  %v197_v54 = vadd.f32 %v385_v2, %v126_v47  ;;  %v198_v55 = vadd.f32 %v385_v2, %v127_v48 }
  0x5e   :  { %v199_v56 = vadd.f32 %v385_v2, %v128_v49  ;;  %v200_v60 = vadd.f32 %v385_v2, %v129_v51  ;;  %v201_v61 = vadd.f32 %v385_v2, %v130_v52 }
  0x5f   :  { %v260_v59 = vmax.f32 %v196_v50, 0.0  ;;  %v202_v62 = vadd.f32 %v385_v2, %v131_v53  ;;  %v261_v4 = vmax.f32 %v197_v54, 0.0  ;;  %v262_v5 = vmax.f32 %v198_v55, 0.0 }
  0x60   :  { %v263_v6 = vmax.f32 %v199_v56, 0.0  ;;  %v264_v11 = vmax.f32 %v200_v60, 0.0  ;;  %v265_v12 = vmax.f32 %v201_v61, 0.0 }
  0x61   :  { %v266_v13 = vmax.f32 %v202_v62, 0.0 }
  0x64   :  { %v61_v45 = vld [vmem:[%s896_s0 + $0x178] sm:$0xff] }
  0x65   :  { %317 = vst [vmem:[%s899_s3 + $0x108] sm:$0xff] %v253_v34  ;;  %318 = vst [vmem:[%s899_s3 + $0x110] sm:$0xff] %v254_v35  ;;  %v132_v57 = vmul.f32 %v380_v1, %v61_v45 }
  0x66   :  { %319 = vst [vmem:[%s899_s3 + $0x118] sm:$0xff] %v255_v36  ;;  %320 = vst [vmem:[%s899_s3 + $0x120] sm:$0xff] %v256_v41 }
  0x67   :  { %321 = vst [vmem:[%s899_s3 + $0x128] sm:$0xff] %v257_v42  ;;  %322 = vst [vmem:[%s899_s3 + $0x130] sm:$0xff] %v258_v43  ;;  %v203_v7 = vadd.f32 %v385_v2, %v132_v57 }
  0x68   :  { %323 = vst [vmem:[%s899_s3 + $0x138] sm:$0xff] %v259_v46 }
  0x69   :  { %v267_v16 = vmax.f32 %v203_v7, 0.0 }
  0x6f   :  { %v62_v58 = vld [vmem:[%s896_s0 + $0x180] sm:$0xff]  ;;  %v63_v63 = vld [vmem:[%s896_s0 + $0x188] sm:$0xff]  ;;  %v64_v0 = vld [vmem:[%s896_s0 + $0x190] sm:$0xff] }
  0x70   :  { %v65_v3 = vld [vmem:[%s896_s0 + $0x198] sm:$0xff]  ;;  %v66_v8 = vld [vmem:[%s896_s0 + $0x1a0] sm:$0xff]  ;;  %v67_v9 = vld [vmem:[%s896_s0 + $0x1a8] sm:$0xff]  ;;  %v133_v14 = vmul.f32 %v380_v1, %v62_v58  ;;  %v134_v17 = vmul.f32 %v380_v1, %v63_v63  ;;  %v135_v18 = vmul.f32 %v380_v1, %v64_v0 }
  0x71   :  { %v68_v10 = vld [vmem:[%s896_s0 + $0x1b0] sm:$0xff]  ;;  %v136_v19 = vmul.f32 %v380_v1, %v65_v3  ;;  %v137_v21 = vmul.f32 %v380_v1, %v66_v8  ;;  %v138_v22 = vmul.f32 %v380_v1, %v67_v9 }
  0x72   :  { %324 = vst [vmem:[%s899_s3 + $0x140] sm:$0xff] %v260_v59  ;;  %v204_v20 = vadd.f32 %v385_v2, %v133_v14  ;;  %v139_v23 = vmul.f32 %v380_v1, %v68_v10  ;;  %v205_v24 = vadd.f32 %v385_v2, %v134_v17  ;;  %v206_v25 = vadd.f32 %v385_v2, %v135_v18 }
  0x73   :  { %v207_v26 = vadd.f32 %v385_v2, %v136_v19  ;;  %v208_v30 = vadd.f32 %v385_v2, %v137_v21  ;;  %v209_v31 = vadd.f32 %v385_v2, %v138_v22 }
  0x74   :  { %v268_v29 = vmax.f32 %v204_v20, 0.0  ;;  %v210_v32 = vadd.f32 %v385_v2, %v139_v23  ;;  %v269_v36 = vmax.f32 %v205_v24, 0.0  ;;  %v270_v37 = vmax.f32 %v206_v25, 0.0 }
  0x75   :  { %v271_v38 = vmax.f32 %v207_v26, 0.0  ;;  %v272_v43 = vmax.f32 %v208_v30, 0.0  ;;  %v273_v44 = vmax.f32 %v209_v31, 0.0 }
  0x76   :  { %v274_v45 = vmax.f32 %v210_v32, 0.0 }
  0x79   :  { %v69_v15 = vld [vmem:[%s896_s0 + $0x1b8] sm:$0xff] }
  0x7a   :  { %325 = vst [vmem:[%s899_s3 + $0x148] sm:$0xff] %v261_v4  ;;  %326 = vst [vmem:[%s899_s3 + $0x150] sm:$0xff] %v262_v5  ;;  %v140_v27 = vmul.f32 %v380_v1, %v69_v15 }
  0x7b   :  { %327 = vst [vmem:[%s899_s3 + $0x158] sm:$0xff] %v263_v6  ;;  %328 = vst [vmem:[%s899_s3 + $0x160] sm:$0xff] %v264_v11 }
  0x7c   :  { %329 = vst [vmem:[%s899_s3 + $0x168] sm:$0xff] %v265_v12  ;;  %330 = vst [vmem:[%s899_s3 + $0x170] sm:$0xff] %v266_v13  ;;  %v211_v39 = vadd.f32 %v385_v2, %v140_v27 }
  0x7d   :  { %331 = vst [vmem:[%s899_s3 + $0x178] sm:$0xff] %v267_v16 }
  0x7e   :  { %v275_v48 = vmax.f32 %v211_v39, 0.0 }
  0x84   :  { %v70_v28 = vld [vmem:[%s896_s0 + $0x1c0] sm:$0xff]  ;;  %v71_v33 = vld [vmem:[%s896_s0 + $0x1c8] sm:$0xff]  ;;  %v72_v34 = vld [vmem:[%s896_s0 + $0x1d0] sm:$0xff] }
  0x85   :  { %v73_v35 = vld [vmem:[%s896_s0 + $0x1d8] sm:$0xff]  ;;  %v74_v40 = vld [vmem:[%s896_s0 + $0x1e0] sm:$0xff]  ;;  %v75_v41 = vld [vmem:[%s896_s0 + $0x1e8] sm:$0xff]  ;;  %v141_v46 = vmul.f32 %v380_v1, %v70_v28  ;;  %v142_v49 = vmul.f32 %v380_v1, %v71_v33  ;;  %v143_v50 = vmul.f32 %v380_v1, %v72_v34 }
  0x86   :  { %v76_v42 = vld [vmem:[%s896_s0 + $0x1f0] sm:$0xff]  ;;  %v144_v51 = vmul.f32 %v380_v1, %v73_v35  ;;  %v145_v53 = vmul.f32 %v380_v1, %v74_v40  ;;  %v146_v54 = vmul.f32 %v380_v1, %v75_v41 }
  0x87   :  { %332 = vst [vmem:[%s899_s3 + $0x180] sm:$0xff] %v268_v29  ;;  %v212_v52 = vadd.f32 %v385_v2, %v141_v46  ;;  %v147_v55 = vmul.f32 %v380_v1, %v76_v42  ;;  %v213_v56 = vadd.f32 %v385_v2, %v142_v49  ;;  %v214_v57 = vadd.f32 %v385_v2, %v143_v50 }
  0x88   :  { %v215_v58 = vadd.f32 %v385_v2, %v144_v51  ;;  %v216_v61 = vadd.f32 %v385_v2, %v145_v53  ;;  %v217_v62 = vadd.f32 %v385_v2, %v146_v54 }
  0x89   :  { %v276_v60 = vmax.f32 %v212_v52, 0.0  ;;  %v218_v63 = vadd.f32 %v385_v2, %v147_v55  ;;  %v277_v0 = vmax.f32 %v213_v56, 0.0  ;;  %v278_v3 = vmax.f32 %v214_v57, 0.0 }
  0x8a   :  { %v279_v4 = vmax.f32 %v215_v58, 0.0  ;;  %v280_v6 = vmax.f32 %v216_v61, 0.0  ;;  %v281_v7 = vmax.f32 %v217_v62, 0.0 }
  0x8b   :  { %v282_v8 = vmax.f32 %v218_v63, 0.0 }
  0x8e   :  { %v77_v47 = vld [vmem:[%s896_s0 + $0x1f8] sm:$0xff] }
  0x8f   :  { %333 = vst [vmem:[%s899_s3 + $0x188] sm:$0xff] %v269_v36  ;;  %334 = vst [vmem:[%s899_s3 + $0x190] sm:$0xff] %v270_v37  ;;  %v148_v59 = vmul.f32 %v380_v1, %v77_v47 }
  0x90   :  { %335 = vst [vmem:[%s899_s3 + $0x198] sm:$0xff] %v271_v38  ;;  %336 = vst [vmem:[%s899_s3 + $0x1a0] sm:$0xff] %v272_v43 }
  0x91   :  { %337 = vst [vmem:[%s899_s3 + $0x1a8] sm:$0xff] %v273_v44  ;;  %338 = vst [vmem:[%s899_s3 + $0x1b0] sm:$0xff] %v274_v45  ;;  %v219_v5 = vadd.f32 %v385_v2, %v148_v59 }
  0x92   :  { %339 = vst [vmem:[%s899_s3 + $0x1b8] sm:$0xff] %v275_v48  ;;  %340 = vst [vmem:[%s899_s3 + $0x1c0] sm:$0xff] %v276_v60 }
  0x93   :  { %341 = vst [vmem:[%s899_s3 + $0x1c8] sm:$0xff] %v277_v0  ;;  %342 = vst [vmem:[%s899_s3 + $0x1d0] sm:$0xff] %v278_v3  ;;  %v283_v1 = vmax.f32 %v219_v5, 0.0 }
  0x94   :  { %343 = vst [vmem:[%s899_s3 + $0x1d8] sm:$0xff] %v279_v4  ;;  %344 = vst [vmem:[%s899_s3 + $0x1e0] sm:$0xff] %v280_v6 }
  0x95   :  { %345 = vst [vmem:[%s899_s3 + $0x1e8] sm:$0xff] %v281_v7  ;;  %346 = vst [vmem:[%s899_s3 + $0x1f0] sm:$0xff] %v282_v8 }
  0x96   :  { %347 = vst [vmem:[%s899_s3 + $0x1f8] sm:$0xff] %v283_v1 }

// kernel: encoder_decoder_resnet_forward.19
= control target key start
LH: loop header
LB: loop body
LE: loop exit
PB: predicated region body
PF: predicated region fallthrough
CT: control target
= control target key end

     0   :  { %v1393_v0 = vmov 0   ;;  %vm473_vm0 = vcmask 556032   ;;  %vm570_vm1 = vcmask 1041408   ;;  %s2111_s1 = inlined_call_operand.vmem [shape: bf16[196,128], index: 1, kind: input, shape index: {}]   ;;  %s2112_s0 = inlined_call_operand.vmem [shape: bf16[512,196], index: 0, kind: input, shape index: {}]   ;;  %s2113_s2 = inlined_call_operand.vmem [shape: f32[512,128], index: 2, kind: output, shape index: {0}]   ;;  %s2114_s3 = inlined_call_operand.vmem [shape: f32[1,128], index: 3, kind: output, shape index: {1}]   ;;  %s2115_s4 = inlined_call_operand.vmem [shape: f32[1,128], index: 4, kind: output, shape index: {2}]  }
   0x1   :  { %574 = vmatprep.subr.bf16.mxu0 %v1393_v0  ;;  %v1284_v1 = vld [vmem:[%s2111_s1] sm:$0xff]   ;;  %1256 = vmatprep.subr.bf16.mxu1 %v1393_v0  ;;  %v1285_v2 = vld [vmem:[%s2111_s1 + $0x8] sm:$0xff]   ;;  %v1286_v3 = vld [vmem:[%s2111_s1 + $0x10] sm:$0xff]  }
   0x2   :  { %575 = vmatpush1.bf16.msra.mxu0 %v1284_v1  ;;  %1269 = vmatpush1.bf16.msra.mxu1 %v1284_v1  ;;  %v1287_v4 = vld [vmem:[%s2111_s1 + $0x18] sm:$0xff]   ;;  %v1299_v5 = vld [vmem:[%s2112_s0 + $0x4] ss:$8 sps:$4 sm:$0xff]   ;;  %v1290_v8 = vld [vmem:[%s2111_s1 + $0x30] sm:$0xff]  }
   0x3   :  { %576 = vmatprep.subr.bf16.mxu0 %v1393_v0  ;;  %1257 = vmatprep.subr.bf16.mxu1 %v1393_v0  ;;  %v1288_v6 = vld [vmem:[%s2111_s1 + $0x20] sm:$0xff]   ;;  %v1289_v7 = vld [vmem:[%s2111_s1 + $0x28] sm:$0xff]   ;;  %v1291_v10 = vld [vmem:[%s2111_s1 + $0x38] sm:$0xff]  }
   0x4   :  { %1224 = vmatprep.mubr.msk.bf16.mxu0 %vm473_vm0, %v1299_v5  ;;  %v1323_v9 = vld [vmem:[%s2112_s0 + $0x104] ss:$8 sps:$4 sm:$0xff]   ;;  %v1294_v13 = vld [vmem:[%s2111_s1 + $0x50] sm:$0xff]   ;;  %v1295_v14 = vld [vmem:[%s2111_s1 + $0x58] sm:$0xff]  }
   0x5   :  { %1240 = vmatprep.mubr.msk.bf16.mxu1 %vm473_vm0, %v1323_v9  ;;  %v1292_v11 = vld [vmem:[%s2111_s1 + $0x40] sm:$0xff]   ;;  %v1293_v12 = vld [vmem:[%s2111_s1 + $0x48] sm:$0xff]   ;;  %v1300_v18 = vld [vmem:[%s2112_s0 + $0x14] ss:$8 sps:$4 sm:$0xff]  }
   0x6   :  { %577 = vmatpush1.bf16.msra.mxu0 %v1285_v2  ;;  %1270 = vmatpush1.bf16.msra.mxu1 %v1285_v2  ;;  %v1296_v15 = vld [vmem:[%s2111_s1 + $0x60] ss:$0 sps:$4 sm:$0x33]   ;;  %v1327_v20 = vld [vmem:[%s2112_s0 + $0x114] ss:$8 sps:$4 sm:$0xff]  }
   0x7   :  { %578 = vmatprep.subr.bf16.mxu0 %v1393_v0  ;;  %1258 = vmatprep.subr.bf16.mxu1 %v1393_v0  ;;  %v572_v16 = vsel %vm570_vm1, %v1296_v15, 0  ;;  %v1297_v17 = vld [vmem:[%s2112_s0] ss:$8 sps:$4 sm:$0xff]   ;;  %v1302_v21 = vld [vmem:[%s2112_s0 + $0x10] ss:$8 sps:$4 sm:$0xff]  }
   0x8   :  { %v1321_v19 = vld [vmem:[%s2112_s0 + $0x100] ss:$8 sps:$4 sm:$0xff]   ;;  %v1329_v22 = vld [vmem:[%s2112_s0 + $0x110] ss:$8 sps:$4 sm:$0xff]   ;;  %v1303_v23 = vld [vmem:[%s2112_s0 + $0x24] ss:$8 sps:$4 sm:$0xff]  }
   0x9   :  { %v1333_v24 = vld [vmem:[%s2112_s0 + $0x124] ss:$8 sps:$4 sm:$0xff]   ;;  %v1305_v25 = vld [vmem:[%s2112_s0 + $0x20] ss:$8 sps:$4 sm:$0xff]   ;;  %v1306_v27 = vld [vmem:[%s2112_s0 + $0x34] ss:$8 sps:$4 sm:$0xff]  }
   0xa   :  { %579 = vmatpush1.bf16.msra.mxu0 %v1286_v3  ;;  %1271 = vmatpush1.bf16.msra.mxu1 %v1286_v3  ;;  %v1335_v26 = vld [vmem:[%s2112_s0 + $0x120] ss:$8 sps:$4 sm:$0xff]   ;;  %v1339_v28 = vld [vmem:[%s2112_s0 + $0x134] ss:$8 sps:$4 sm:$0xff]   ;;  %v1308_v29 = vld [vmem:[%s2112_s0 + $0x30] ss:$8 sps:$4 sm:$0xff]  }
   0xb   :  { %580 = vmatprep.subr.bf16.mxu0 %v1393_v0  ;;  %1259 = vmatprep.subr.bf16.mxu1 %v1393_v0  ;;  %v1341_v30 = vld [vmem:[%s2112_s0 + $0x130] ss:$8 sps:$4 sm:$0xff]   ;;  %v1309_v31 = vld [vmem:[%s2112_s0 + $0x44] ss:$8 sps:$4 sm:$0xff]   ;;  %v1311_v33 = vld [vmem:[%s2112_s0 + $0x40] ss:$8 sps:$4 sm:$0xff]  }
   0xc   :  { %v1345_v32 = vld [vmem:[%s2112_s0 + $0x144] ss:$8 sps:$4 sm:$0xff]   ;;  %v1347_v34 = vld [vmem:[%s2112_s0 + $0x140] ss:$8 sps:$4 sm:$0xff]   ;;  %v1312_v35 = vld [vmem:[%s2112_s0 + $0x54] ss:$8 sps:$4 sm:$0xff]  }
   0xd   :  { %v1351_v36 = vld [vmem:[%s2112_s0 + $0x154] ss:$8 sps:$4 sm:$0xff]   ;;  %v1314_v37 = vld [vmem:[%s2112_s0 + $0x50] ss:$8 sps:$4 sm:$0xff]   ;;  %v1315_v39 = vld [vmem:[%s2112_s0 + $0x64] ss:$8 sps:$4 sm:$0xff]  }
   0xe   :  { %581 = vmatpush1.bf16.msra.mxu0 %v1287_v4  ;;  %1272 = vmatpush1.bf16.msra.mxu1 %v1287_v4  ;;  %v1353_v38 = vld [vmem:[%s2112_s0 + $0x150] ss:$8 sps:$4 sm:$0xff]   ;;  %v1357_v40 = vld [vmem:[%s2112_s0 + $0x164] ss:$8 sps:$4 sm:$0xff]   ;;  %v1317_v41 = vld [vmem:[%s2112_s0 + $0x60] ss:$8 sps:$4 sm:$0xff]  }
   0xf   :  { %582 = vmatprep.subr.bf16.mxu0 %v1393_v0  ;;  %1260 = vmatprep.subr.bf16.mxu1 %v1393_v0  ;;  %v1359_v42 = vld [vmem:[%s2112_s0 + $0x160] ss:$8 sps:$4 sm:$0xff]   ;;  %v1318_v43 = vld [vmem:[%s2112_s0 + $0x74] ss:$8 sps:$4 sm:$0xff]   ;;  %v1320_v45 = vld [vmem:[%s2112_s0 + $0x70] ss:$8 sps:$4 sm:$0xff]  }
  0x10   :  { %v1363_v44 = vld [vmem:[%s2112_s0 + $0x174] ss:$8 sps:$4 sm:$0xff]   ;;  %v1365_v46 = vld [vmem:[%s2112_s0 + $0x170] ss:$8 sps:$4 sm:$0xff]   ;;  %v1324_v47 = vld [vmem:[%s2112_s0 + $0x84] ss:$8 sps:$4 sm:$0xff]  }
  0x11   :  { %v1369_v48 = vld [vmem:[%s2112_s0 + $0x184] ss:$8 sps:$4 sm:$0xff]   ;;  %v1326_v49 = vld [vmem:[%s2112_s0 + $0x80] ss:$8 sps:$4 sm:$0xff]   ;;  %v1330_v51 = vld [vmem:[%s2112_s0 + $0x94] ss:$8 sps:$4 sm:$0xff]  }
  0x12   :  { %583 = vmatpush1.bf16.msra.mxu0 %v1288_v6  ;;  %1273 = vmatpush1.bf16.msra.mxu1 %v1288_v6  ;;  %v1371_v50 = vld [vmem:[%s2112_s0 + $0x180] ss:$8 sps:$4 sm:$0xff]   ;;  %v1372_v52 = vld [vmem:[%s2112_s0 + $0x194] ss:$8 sps:$4 sm:$0xff]   ;;  %v1332_v53 = vld [vmem:[%s2112_s0 + $0x90] ss:$8 sps:$4 sm:$0xff]  }
  0x13   :  { %584 = vmatprep.subr.bf16.mxu0 %v1393_v0  ;;  %1261 = vmatprep.subr.bf16.mxu1 %v1393_v0  ;;  %v1374_v54 = vld [vmem:[%s2112_s0 + $0x190] ss:$8 sps:$4 sm:$0xff]   ;;  %v1336_v55 = vld [vmem:[%s2112_s0 + $0xa4] ss:$8 sps:$4 sm:$0xff]   ;;  %v1338_v57 = vld [vmem:[%s2112_s0 + $0xa0] ss:$8 sps:$4 sm:$0xff]  }
  0x14   :  { %v1375_v56 = vld [vmem:[%s2112_s0 + $0x1a4] ss:$8 sps:$4 sm:$0xff]   ;;  %v1377_v58 = vld [vmem:[%s2112_s0 + $0x1a0] ss:$8 sps:$4 sm:$0xff]   ;;  %v1342_v59 = vld [vmem:[%s2112_s0 + $0xb4] ss:$8 sps:$4 sm:$0xff]  }
  0x15   :  { %v1378_v60 = vld [vmem:[%s2112_s0 + $0x1b4] ss:$8 sps:$4 sm:$0xff]   ;;  %v1344_v61 = vld [vmem:[%s2112_s0 + $0xb0] ss:$8 sps:$4 sm:$0xff]   ;;  %v1348_v63 = vld [vmem:[%s2112_s0 + $0xc4] ss:$8 sps:$4 sm:$0xff]  }
  0x16   :  { %585 = vmatpush1.bf16.msra.mxu0 %v1289_v7  ;;  %1274 = vmatpush1.bf16.msra.mxu1 %v1289_v7  ;;  %v1380_v62 = vld [vmem:[%s2112_s0 + $0x1b0] ss:$8 sps:$4 sm:$0xff]   ;;  %v1350_v1 = vld [vmem:[%s2112_s0 + $0xc0] ss:$8 sps:$4 sm:$0xff]   ;;  %v1354_v3 = vld [vmem:[%s2112_s0 + $0xd4] ss:$8 sps:$4 sm:$0xff]  }
  0x17   :  { %586 = vmatprep.subr.bf16.mxu0 %v1393_v0  ;;  %1262 = vmatprep.subr.bf16.mxu1 %v1393_v0  ;;  %v1383_v2 = vld [vmem:[%s2112_s0 + $0x1c0] ss:$8 sps:$4 sm:$0xff]   ;;  %v1384_v4 = vld [vmem:[%s2112_s0 + $0x1d4] ss:$8 sps:$4 sm:$0xff]   ;;  %v1356_v5 = vld [vmem:[%s2112_s0 + $0xd0] ss:$8 sps:$4 sm:$0xff]  }
  0x18   :  { %v1386_v6 = vld [vmem:[%s2112_s0 + $0x1d0] ss:$8 sps:$4 sm:$0xff]   ;;  %v1360_v7 = vld [vmem:[%s2112_s0 + $0xe4] ss:$8 sps:$4 sm:$0xff]   ;;  %v1362_v9 = vld [vmem:[%s2112_s0 + $0xe0] ss:$8 sps:$4 sm:$0xff]  }
  0x1a   :  { %587 = vmatpush1.bf16.msra.mxu0 %v1290_v8  ;;  %1275 = vmatpush1.bf16.msra.mxu1 %v1290_v8  ;;  %v1387_v8 = vld [vmem:[%s2112_s0 + $0x1e4] ss:$8 sps:$4 sm:$0xff]  }
  0x1b   :  { %588 = vmatprep.subr.bf16.mxu0 %v1393_v0  ;;  %1263 = vmatprep.subr.bf16.mxu1 %v1393_v0 }
  0x1e   :  { %589 = vmatpush1.bf16.msra.mxu0 %v1291_v10  ;;  %1276 = vmatpush1.bf16.msra.mxu1 %v1291_v10  ;;  %v1389_v10 = vld [vmem:[%s2112_s0 + $0x1e0] ss:$8 sps:$4 sm:$0xff]  }
  0x1f   :  { %590 = vmatprep.subr.bf16.mxu0 %v1393_v0  ;;  %1264 = vmatprep.subr.bf16.mxu1 %v1393_v0 }
  0x22   :  { %591 = vmatpush1.bf16.msra.mxu0 %v1292_v11  ;;  %1277 = vmatpush1.bf16.msra.mxu1 %v1292_v11  ;;  %v1366_v11 = vld [vmem:[%s2112_s0 + $0xf4] ss:$8 sps:$4 sm:$0xff]  }
  0x23   :  { %592 = vmatprep.subr.bf16.mxu0 %v1393_v0  ;;  %1265 = vmatprep.subr.bf16.mxu1 %v1393_v0 }
  0x26   :  { %593 = vmatpush1.bf16.msra.mxu0 %v1293_v12  ;;  %1278 = vmatpush1.bf16.msra.mxu1 %v1293_v12  ;;  %v1390_v12 = vld [vmem:[%s2112_s0 + $0x1f4] ss:$8 sps:$4 sm:$0xff]  }
  0x27   :  { %594 = vmatprep.subr.bf16.mxu0 %v1393_v0  ;;  %1266 = vmatprep.subr.bf16.mxu1 %v1393_v0 }
  0x2a   :  { %595 = vmatpush1.bf16.msra.mxu0 %v1294_v13  ;;  %1279 = vmatpush1.bf16.msra.mxu1 %v1294_v13  ;;  %v1368_v13 = vld [vmem:[%s2112_s0 + $0xf0] ss:$8 sps:$4 sm:$0xff]  }
  0x2b   :  { %596 = vmatprep.subr.bf16.mxu0 %v1393_v0  ;;  %1267 = vmatprep.subr.bf16.mxu1 %v1393_v0 }
  0x2e   :  { %597 = vmatpush1.bf16.msra.mxu0 %v1295_v14  ;;  %1280 = vmatpush1.bf16.msra.mxu1 %v1295_v14  ;;  %v1392_v14 = vld [vmem:[%s2112_s0 + $0x1f0] ss:$8 sps:$4 sm:$0xff]  }
  0x2f   :  { %598 = vmatprep.subr.bf16.mxu0 %v1393_v0  ;;  %1268 = vmatprep.subr.bf16.mxu1 %v1393_v0  ;;  %v1381_v0 = vld [vmem:[%s2112_s0 + $0x1c4] ss:$8 sps:$4 sm:$0xff]  }
  0x32   :  { %599 = vmatpush1.bf16.msra.mxu0 %v572_v16  ;;  %1281 = vmatpush1.bf16.msra.mxu1 %v572_v16 }
  0x35   :  { %607 = vmatmul.mubr.bf16.vlgmr.msra.gmra.mrb[0].mxu0 %v1297_v17  ;;  %735 = vmatmul.mubr.bf16.vlgmr.msra.gmra.mrb[0].mxu1 %v1321_v19 }
  0x36   :  { %1225 = vmatprep.mubr.msk.bf16.mxu0 %vm473_vm0, %v1300_v18  ;;  %1241 = vmatprep.mubr.msk.bf16.mxu1 %vm473_vm0, %v1327_v20 }
  0x3d   :  { %615 = vmatmul.mubr.bf16.gmra.mrb[4].mxu0 %v1302_v21  ;;  %743 = vmatmul.mubr.bf16.gmra.mrb[4].mxu1 %v1329_v22 }
  0x3e   :  { %1226 = vmatprep.mubr.msk.bf16.mxu0 %vm473_vm0, %v1303_v23  ;;  %1242 = vmatprep.mubr.msk.bf16.mxu1 %vm473_vm0, %v1333_v24 }
  0x45   :  { %623 = vmatmul.mubr.bf16.gmra.mrb[8].mxu0 %v1305_v25  ;;  %751 = vmatmul.mubr.bf16.gmra.mrb[8].mxu1 %v1335_v26 }
  0x46   :  { %1227 = vmatprep.mubr.msk.bf16.mxu0 %vm473_vm0, %v1306_v27  ;;  %1243 = vmatprep.mubr.msk.bf16.mxu1 %vm473_vm0, %v1339_v28 }
  0x4d   :  { %631 = vmatmul.mubr.bf16.gmra.mrb[12].mxu0 %v1308_v29  ;;  %759 = vmatmul.mubr.bf16.gmra.mrb[12].mxu1 %v1341_v30 }
  0x4e   :  { %1228 = vmatprep.mubr.msk.bf16.mxu0 %vm473_vm0, %v1309_v31  ;;  %1244 = vmatprep.mubr.msk.bf16.mxu1 %vm473_vm0, %v1345_v32 }
  0x55   :  { %639 = vmatmul.mubr.bf16.gmra.mrb[16].mxu0 %v1311_v33  ;;  %767 = vmatmul.mubr.bf16.gmra.mrb[16].mxu1 %v1347_v34 }
  0x56   :  { %1229 = vmatprep.mubr.msk.bf16.mxu0 %vm473_vm0, %v1312_v35  ;;  %1245 = vmatprep.mubr.msk.bf16.mxu1 %vm473_vm0, %v1351_v36 }
  0x5d   :  { %647 = vmatmul.mubr.bf16.gmra.mrb[20].mxu0 %v1314_v37  ;;  %775 = vmatmul.mubr.bf16.gmra.mrb[20].mxu1 %v1353_v38 }
  0x5e   :  { %1230 = vmatprep.mubr.msk.bf16.mxu0 %vm473_vm0, %v1315_v39  ;;  %1246 = vmatprep.mubr.msk.bf16.mxu1 %vm473_vm0, %v1357_v40 }
  0x65   :  { %655 = vmatmul.mubr.bf16.gmra.mrb[24].mxu0 %v1317_v41  ;;  %783 = vmatmul.mubr.bf16.gmra.mrb[24].mxu1 %v1359_v42 }
  0x66   :  { %1231 = vmatprep.mubr.msk.bf16.mxu0 %vm473_vm0, %v1318_v43  ;;  %1247 = vmatprep.mubr.msk.bf16.mxu1 %vm473_vm0, %v1363_v44 }
  0x6d   :  { %663 = vmatmul.mubr.bf16.gmra.mrb[28].mxu0 %v1320_v45  ;;  %791 = vmatmul.mubr.bf16.gmra.mrb[28].mxu1 %v1365_v46 }
  0x6e   :  { %1232 = vmatprep.mubr.msk.bf16.mxu0 %vm473_vm0, %v1324_v47  ;;  %1248 = vmatprep.mubr.msk.bf16.mxu1 %vm473_vm0, %v1369_v48 }
  0x75   :  { %671 = vmatmul.mubr.bf16.gmra.mrb[32].mxu0 %v1326_v49  ;;  %799 = vmatmul.mubr.bf16.gmra.mrb[32].mxu1 %v1371_v50 }
  0x76   :  { %1233 = vmatprep.mubr.msk.bf16.mxu0 %vm473_vm0, %v1330_v51  ;;  %1249 = vmatprep.mubr.msk.bf16.mxu1 %vm473_vm0, %v1372_v52 }
  0x7d   :  { %679 = vmatmul.mubr.bf16.gmra.mrb[36].mxu0 %v1332_v53  ;;  %807 = vmatmul.mubr.bf16.gmra.mrb[36].mxu1 %v1374_v54 }
  0x7e   :  { %1234 = vmatprep.mubr.msk.bf16.mxu0 %vm473_vm0, %v1336_v55  ;;  %1250 = vmatprep.mubr.msk.bf16.mxu1 %vm473_vm0, %v1375_v56 }
  0x85   :  { %687 = vmatmul.mubr.bf16.gmra.mrb[40].mxu0 %v1338_v57  ;;  %815 = vmatmul.mubr.bf16.gmra.mrb[40].mxu1 %v1377_v58 }
  0x86   :  { %1235 = vmatprep.mubr.msk.bf16.mxu0 %vm473_vm0, %v1342_v59  ;;  %1251 = vmatprep.mubr.msk.bf16.mxu1 %vm473_vm0, %v1378_v60 }
  0x8d   :  { %695 = vmatmul.mubr.bf16.gmra.mrb[44].mxu0 %v1344_v61  ;;  %823 = vmatmul.mubr.bf16.gmra.mrb[44].mxu1 %v1380_v62 }
  0x8e   :  { %1236 = vmatprep.mubr.msk.bf16.mxu0 %vm473_vm0, %v1348_v63  ;;  %1252 = vmatprep.mubr.msk.bf16.mxu1 %vm473_vm0, %v1381_v0 }
  0x95   :  { %703 = vmatmul.mubr.bf16.gmra.mrb[48].mxu0 %v1350_v1  ;;  %831 = vmatmul.mubr.bf16.gmra.mrb[48].mxu1 %v1383_v2 }
  0x96   :  { %1237 = vmatprep.mubr.msk.bf16.mxu0 %vm473_vm0, %v1354_v3  ;;  %1253 = vmatprep.mubr.msk.bf16.mxu1 %vm473_vm0, %v1384_v4 }
  0x9d   :  { %711 = vmatmul.mubr.bf16.gmra.mrb[52].mxu0 %v1356_v5  ;;  %839 = vmatmul.mubr.bf16.gmra.mrb[52].mxu1 %v1386_v6 }
  0x9e   :  { %1238 = vmatprep.mubr.msk.bf16.mxu0 %vm473_vm0, %v1360_v7  ;;  %1254 = vmatprep.mubr.msk.bf16.mxu1 %vm473_vm0, %v1387_v8 }
  0xa5   :  { %719 = vmatmul.mubr.bf16.gmra.mrb[56].mxu0 %v1362_v9  ;;  %847 = vmatmul.mubr.bf16.gmra.mrb[56].mxu1 %v1389_v10 }
  0xa6   :  { %1239 = vmatprep.mubr.msk.bf16.mxu0 %vm473_vm0, %v1366_v11  ;;  %1255 = vmatprep.mubr.msk.bf16.mxu1 %vm473_vm0, %v1390_v12 }
  0xad   :  { %727 = vmatmul.mubr.bf16.gmra.mrb[60].mxu0 %v1368_v13  ;;  %855 = vmatmul.mubr.bf16.gmra.mrb[60].mxu1 %v1392_v14 }
 0x108   :  { %v608_v15 = vpop.f32.mrb[0].mxu0  ;;  %v1709_v16 = vpop.f32.mrb[0].mxu1 }
 0x109   :  { %863 = vst [vmem:[%s2113_s2] sm:$0xff] %v608_v15  ;;  %v610_v17 = vpop.f32.mrb[1].mxu0  ;;  %895 = vst [vmem:[%s2113_s2 + $0x100] sm:$0xff] %v1709_v16  ;;  %v738_v18 = vpop.f32.mrb[1].mxu1  ;;  %v1000_v21 = vmul.f32 %v608_v15, %v608_v15 }
 0x10a   :  { %v611_v19 = vpop.f32.mrb[2].mxu0  ;;  %v1718_v20 = vpop.f32.mrb[2].mxu1 }
 0x10b   :  { %864 = vst [vmem:[%s2113_s2 + $0x8] sm:$0xff] %v611_v19  ;;  %v928_v22 = vadd.f32 %v611_v19, %v608_v15  ;;  %v1001_v23 = vmul.f32 %v611_v19, %v611_v19  ;;  %v613_v24 = vpop.f32.mrb[3].mxu0  ;;  %896 = vst [vmem:[%s2113_s2 + $0x108] sm:$0xff] %v1718_v20  ;;  %v741_v25 = vpop.f32.mrb[3].mxu1 }
 0x10d   :  { %v1064_v26 = vadd.f32 %v1001_v23, %v1000_v21 }
 0x110   :  { %v616_v27 = vpop.f32.mrb[4].mxu0  ;;  %v1727_v28 = vpop.f32.mrb[4].mxu1 }
 0x111   :  { %865 = vst [vmem:[%s2113_s2 + $0x10] sm:$0xff] %v616_v27  ;;  %v929_v29 = vadd.f32 %v928_v22, %v616_v27  ;;  %v1002_v30 = vmul.f32 %v616_v27, %v616_v27  ;;  %v618_v31 = vpop.f32.mrb[5].mxu0  ;;  %897 = vst [vmem:[%s2113_s2 + $0x110] sm:$0xff] %v1727_v28  ;;  %v746_v32 = vpop.f32.mrb[5].mxu1 }
 0x112   :  { %v619_v33 = vpop.f32.mrb[6].mxu0  ;;  %v1736_v34 = vpop.f32.mrb[6].mxu1 }
 0x113   :  { %v1065_v35 = vadd.f32 %v1064_v26, %v1002_v30  ;;  %866 = vst [vmem:[%s2113_s2 + $0x18] sm:$0xff] %v619_v33  ;;  %v930_v36 = vadd.f32 %v929_v29, %v619_v33  ;;  %v1003_v37 = vmul.f32 %v619_v33, %v619_v33  ;;  %v621_v38 = vpop.f32.mrb[7].mxu0  ;;  %898 = vst [vmem:[%s2113_s2 + $0x118] sm:$0xff] %v1736_v34  ;;  %v749_v39 = vpop.f32.mrb[7].mxu1 }
 0x115   :  { %v1066_v40 = vadd.f32 %v1065_v35, %v1003_v37 }
 0x118   :  { %v624_v41 = vpop.f32.mrb[8].mxu0  ;;  %v1745_v42 = vpop.f32.mrb[8].mxu1 }
 0x119   :  { %867 = vst [vmem:[%s2113_s2 + $0x20] sm:$0xff] %v624_v41  ;;  %v931_v43 = vadd.f32 %v930_v36, %v624_v41  ;;  %v1004_v44 = vmul.f32 %v624_v41, %v624_v41  ;;  %v626_v45 = vpop.f32.mrb[9].mxu0  ;;  %899 = vst [vmem:[%s2113_s2 + $0x120] sm:$0xff] %v1745_v42  ;;  %v754_v46 = vpop.f32.mrb[9].mxu1 }
 0x11a   :  { %v627_v47 = vpop.f32.mrb[10].mxu0  ;;  %v1754_v48 = vpop.f32.mrb[10].mxu1 }
 0x11b   :  { %v1067_v49 = vadd.f32 %v1066_v40, %v1004_v44  ;;  %868 = vst [vmem:[%s2113_s2 + $0x28] sm:$0xff] %v627_v47  ;;  %v932_v50 = vadd.f32 %v931_v43, %v627_v47  ;;  %v1005_v51 = vmul.f32 %v627_v47, %v627_v47  ;;  %v629_v52 = vpop.f32.mrb[11].mxu0  ;;  %900 = vst [vmem:[%s2113_s2 + $0x128] sm:$0xff] %v1754_v48  ;;  %v757_v53 = vpop.f32.mrb[11].mxu1 }
 0x11d   :  { %v1068_v54 = vadd.f32 %v1067_v49, %v1005_v51 }
 0x120   :  { %v632_v55 = vpop.f32.mrb[12].mxu0  ;;  %v1763_v56 = vpop.f32.mrb[12].mxu1 }
 0x121   :  { %869 = vst [vmem:[%s2113_s2 + $0x30] sm:$0xff] %v632_v55  ;;  %v933_v57 = vadd.f32 %v932_v50, %v632_v55  ;;  %v1006_v58 = vmul.f32 %v632_v55, %v632_v55  ;;  %v634_v59 = vpop.f32.mrb[13].mxu0  ;;  %901 = vst [vmem:[%s2113_s2 + $0x130] sm:$0xff] %v1763_v56  ;;  %v762_v60 = vpop.f32.mrb[13].mxu1 }
 0x122   :  { %v635_v61 = vpop.f32.mrb[14].mxu0  ;;  %v1772_v62 = vpop.f32.mrb[14].mxu1 }
 0x123   :  { %v1069_v63 = vadd.f32 %v1068_v54, %v1006_v58  ;;  %870 = vst [vmem:[%s2113_s2 + $0x38] sm:$0xff] %v635_v61  ;;  %v934_v0 = vadd.f32 %v933_v57, %v635_v61  ;;  %v1007_v1 = vmul.f32 %v635_v61, %v635_v61  ;;  %v637_v2 = vpop.f32.mrb[15].mxu0  ;;  %902 = vst [vmem:[%s2113_s2 + $0x138] sm:$0xff] %v1772_v62  ;;  %v765_v3 = vpop.f32.mrb[15].mxu1 }
 0x125   :  { %v1070_v4 = vadd.f32 %v1069_v63, %v1007_v1 }
 0x128   :  { %v640_v5 = vpop.f32.mrb[16].mxu0  ;;  %v1781_v6 = vpop.f32.mrb[16].mxu1 }
 0x129   :  { %871 = vst [vmem:[%s2113_s2 + $0x40] sm:$0xff] %v640_v5  ;;  %v935_v7 = vadd.f32 %v934_v0, %v640_v5  ;;  %v1008_v8 = vmul.f32 %v640_v5, %v640_v5  ;;  %v642_v9 = vpop.f32.mrb[17].mxu0  ;;  %903 = vst [vmem:[%s2113_s2 + $0x140] sm:$0xff] %v1781_v6  ;;  %v770_v10 = vpop.f32.mrb[17].mxu1  ;;  %v1394_v5 = vmov 0.0  }
 0x12a   :  { %v643_v11 = vpop.f32.mrb[18].mxu0  ;;  %v1790_v12 = vpop.f32.mrb[18].mxu1  ;;  %19 = vst [vmem:[%s2114_s3] sm:$0x1] %v1394_v5  ;;  %20 = vst [vmem:[%s2115_s4] sm:$0x1] %v1394_v5 }
 0x12b   :  { %v1071_v13 = vadd.f32 %v1070_v4, %v1008_v8  ;;  %872 = vst [vmem:[%s2113_s2 + $0x48] sm:$0xff] %v643_v11  ;;  %v936_v14 = vadd.f32 %v935_v7, %v643_v11  ;;  %v1009_v15 = vmul.f32 %v643_v11, %v643_v11  ;;  %v645_v17 = vpop.f32.mrb[19].mxu0  ;;  %904 = vst [vmem:[%s2113_s2 + $0x148] sm:$0xff] %v1790_v12  ;;  %v773_v18 = vpop.f32.mrb[19].mxu1 }
 0x12d   :  { %v1072_v19 = vadd.f32 %v1071_v13, %v1009_v15 }
 0x130   :  { %v648_v21 = vpop.f32.mrb[20].mxu0  ;;  %v1799_v22 = vpop.f32.mrb[20].mxu1 }
 0x131   :  { %873 = vst [vmem:[%s2113_s2 + $0x50] sm:$0xff] %v648_v21  ;;  %v937_v23 = vadd.f32 %v936_v14, %v648_v21  ;;  %v1010_v24 = vmul.f32 %v648_v21, %v648_v21  ;;  %v650_v25 = vpop.f32.mrb[21].mxu0  ;;  %905 = vst [vmem:[%s2113_s2 + $0x150] sm:$0xff] %v1799_v22  ;;  %v778_v26 = vpop.f32.mrb[21].mxu1 }
 0x132   :  { %v651_v27 = vpop.f32.mrb[22].mxu0  ;;  %v1808_v29 = vpop.f32.mrb[22].mxu1 }
 0x133   :  { %v1073_v30 = vadd.f32 %v1072_v19, %v1010_v24  ;;  %874 = vst [vmem:[%s2113_s2 + $0x58] sm:$0xff] %v651_v27  ;;  %v938_v31 = vadd.f32 %v937_v23, %v651_v27  ;;  %v1011_v32 = vmul.f32 %v651_v27, %v651_v27  ;;  %v653_v33 = vpop.f32.mrb[23].mxu0  ;;  %906 = vst [vmem:[%s2113_s2 + $0x158] sm:$0xff] %v1808_v29  ;;  %v781_v35 = vpop.f32.mrb[23].mxu1 }
 0x135   :  { %v1074_v36 = vadd.f32 %v1073_v30, %v1011_v32 }
 0x138   :  { %v656_v37 = vpop.f32.mrb[24].mxu0  ;;  %v1817_v38 = vpop.f32.mrb[24].mxu1 }
 0x139   :  { %875 = vst [vmem:[%s2113_s2 + $0x60] sm:$0xff] %v656_v37  ;;  %v939_v39 = vadd.f32 %v938_v31, %v656_v37  ;;  %v1012_v40 = vmul.f32 %v656_v37, %v656_v37  ;;  %v658_v41 = vpop.f32.mrb[25].mxu0  ;;  %907 = vst [vmem:[%s2113_s2 + $0x160] sm:$0xff] %v1817_v38  ;;  %v786_v43 = vpop.f32.mrb[25].mxu1 }
 0x13a   :  { %v659_v44 = vpop.f32.mrb[26].mxu0  ;;  %v1826_v45 = vpop.f32.mrb[26].mxu1 }
 0x13b   :  { %v1075_v46 = vadd.f32 %v1074_v36, %v1012_v40  ;;  %876 = vst [vmem:[%s2113_s2 + $0x68] sm:$0xff] %v659_v44  ;;  %v940_v47 = vadd.f32 %v939_v39, %v659_v44  ;;  %v1013_v49 = vmul.f32 %v659_v44, %v659_v44  ;;  %v661_v50 = vpop.f32.mrb[27].mxu0  ;;  %908 = vst [vmem:[%s2113_s2 + $0x168] sm:$0xff] %v1826_v45  ;;  %v789_v51 = vpop.f32.mrb[27].mxu1 }
 0x13d   :  { %v1076_v52 = vadd.f32 %v1075_v46, %v1013_v49 }
 0x140   :  { %v664_v53 = vpop.f32.mrb[28].mxu0  ;;  %v1835_v54 = vpop.f32.mrb[28].mxu1 }
 0x141   :  { %877 = vst [vmem:[%s2113_s2 + $0x70] sm:$0xff] %v664_v53  ;;  %v941_v55 = vadd.f32 %v940_v47, %v664_v53  ;;  %v1014_v57 = vmul.f32 %v664_v53, %v664_v53  ;;  %v666_v58 = vpop.f32.mrb[29].mxu0  ;;  %909 = vst [vmem:[%s2113_s2 + $0x170] sm:$0xff] %v1835_v54  ;;  %v794_v59 = vpop.f32.mrb[29].mxu1 }
 0x142   :  { %v667_v60 = vpop.f32.mrb[30].mxu0  ;;  %v1844_v61 = vpop.f32.mrb[30].mxu1 }
 0x143   :  { %v1077_v63 = vadd.f32 %v1076_v52, %v1014_v57  ;;  %878 = vst [vmem:[%s2113_s2 + $0x78] sm:$0xff] %v667_v60  ;;  %v942_v0 = vadd.f32 %v941_v55, %v667_v60  ;;  %v1015_v1 = vmul.f32 %v667_v60, %v667_v60  ;;  %v669_v2 = vpop.f32.mrb[31].mxu0  ;;  %910 = vst [vmem:[%s2113_s2 + $0x178] sm:$0xff] %v1844_v61  ;;  %v797_v3 = vpop.f32.mrb[31].mxu1 }
 0x145   :  { %v1078_v4 = vadd.f32 %v1077_v63, %v1015_v1 }
 0x148   :  { %v672_v7 = vpop.f32.mrb[32].mxu0  ;;  %v1859_v8 = vpop.f32.mrb[32].mxu1 }
 0x149   :  { %879 = vst [vmem:[%s2113_s2 + $0x80] sm:$0xff] %v672_v7  ;;  %v943_v9 = vadd.f32 %v942_v0, %v672_v7  ;;  %v1016_v10 = vmul.f32 %v672_v7, %v672_v7  ;;  %v674_v11 = vpop.f32.mrb[33].mxu0  ;;  %911 = vst [vmem:[%s2113_s2 + $0x180] sm:$0xff] %v1859_v8  ;;  %v802_v13 = vpop.f32.mrb[33].mxu1 }
 0x14a   :  { %v675_v14 = vpop.f32.mrb[34].mxu0  ;;  %v1868_v15 = vpop.f32.mrb[34].mxu1 }
 0x14b   :  { %v1079_v17 = vadd.f32 %v1078_v4, %v1016_v10  ;;  %880 = vst [vmem:[%s2113_s2 + $0x88] sm:$0xff] %v675_v14  ;;  %v944_v18 = vadd.f32 %v943_v9, %v675_v14  ;;  %v1017_v19 = vmul.f32 %v675_v14, %v675_v14  ;;  %v677_v21 = vpop.f32.mrb[35].mxu0  ;;  %912 = vst [vmem:[%s2113_s2 + $0x188] sm:$0xff] %v1868_v15  ;;  %v805_v23 = vpop.f32.mrb[35].mxu1 }
 0x14d   :  { %v1080_v24 = vadd.f32 %v1079_v17, %v1017_v19 }
 0x150   :  { %v680_v25 = vpop.f32.mrb[36].mxu0  ;;  %v1877_v26 = vpop.f32.mrb[36].mxu1 }
 0x151   :  { %881 = vst [vmem:[%s2113_s2 + $0x90] sm:$0xff] %v680_v25  ;;  %v945_v27 = vadd.f32 %v944_v18, %v680_v25  ;;  %v1018_v30 = vmul.f32 %v680_v25, %v680_v25  ;;  %v682_v31 = vpop.f32.mrb[37].mxu0  ;;  %913 = vst [vmem:[%s2113_s2 + $0x190] sm:$0xff] %v1877_v26  ;;  %v810_v32 = vpop.f32.mrb[37].mxu1 }
 0x152   :  { %v683_v33 = vpop.f32.mrb[38].mxu0  ;;  %v1886_v35 = vpop.f32.mrb[38].mxu1 }
 0x153   :  { %v1081_v36 = vadd.f32 %v1080_v24, %v1018_v30  ;;  %882 = vst [vmem:[%s2113_s2 + $0x98] sm:$0xff] %v683_v33  ;;  %v946_v37 = vadd.f32 %v945_v27, %v683_v33  ;;  %v1019_v39 = vmul.f32 %v683_v33, %v683_v33  ;;  %v685_v40 = vpop.f32.mrb[39].mxu0  ;;  %914 = vst [vmem:[%s2113_s2 + $0x198] sm:$0xff] %v1886_v35  ;;  %v813_v41 = vpop.f32.mrb[39].mxu1 }
 0x155   :  { %v1082_v43 = vadd.f32 %v1081_v36, %v1019_v39 }
 0x158   :  { %v688_v44 = vpop.f32.mrb[40].mxu0  ;;  %v1895_v46 = vpop.f32.mrb[40].mxu1 }
 0x159   :  { %883 = vst [vmem:[%s2113_s2 + $0xa0] sm:$0xff] %v688_v44  ;;  %v947_v47 = vadd.f32 %v946_v37, %v688_v44  ;;  %v1020_v49 = vmul.f32 %v688_v44, %v688_v44  ;;  %v690_v50 = vpop.f32.mrb[41].mxu0  ;;  %915 = vst [vmem:[%s2113_s2 + $0x1a0] sm:$0xff] %v1895_v46  ;;  %v818_v51 = vpop.f32.mrb[41].mxu1 }
 0x15a   :  { %v691_v52 = vpop.f32.mrb[42].mxu0  ;;  %v1904_v53 = vpop.f32.mrb[42].mxu1 }
 0x15b   :  { %v1083_v55 = vadd.f32 %v1082_v43, %v1020_v49  ;;  %884 = vst [vmem:[%s2113_s2 + $0xa8] sm:$0xff] %v691_v52  ;;  %v948_v57 = vadd.f32 %v947_v47, %v691_v52  ;;  %v1021_v58 = vmul.f32 %v691_v52, %v691_v52  ;;  %v693_v59 = vpop.f32.mrb[43].mxu0  ;;  %916 = vst [vmem:[%s2113_s2 + $0x1a8] sm:$0xff] %v1904_v53  ;;  %v821_v60 = vpop.f32.mrb[43].mxu1 }
 0x15d   :  { %v1084_v63 = vadd.f32 %v1083_v55, %v1021_v58 }
 0x160   :  { %v696_v0 = vpop.f32.mrb[44].mxu0  ;;  %v1913_v1 = vpop.f32.mrb[44].mxu1 }
 0x161   :  { %885 = vst [vmem:[%s2113_s2 + $0xb0] sm:$0xff] %v696_v0  ;;  %v949_v2 = vadd.f32 %v948_v57, %v696_v0  ;;  %v1022_v3 = vmul.f32 %v696_v0, %v696_v0  ;;  %v698_v4 = vpop.f32.mrb[45].mxu0  ;;  %917 = vst [vmem:[%s2113_s2 + $0x1b0] sm:$0xff] %v1913_v1  ;;  %v826_v5 = vpop.f32.mrb[45].mxu1 }
 0x162   :  { %v699_v7 = vpop.f32.mrb[46].mxu0  ;;  %v1922_v9 = vpop.f32.mrb[46].mxu1 }
 0x163   :  { %v1085_v10 = vadd.f32 %v1084_v63, %v1022_v3  ;;  %886 = vst [vmem:[%s2113_s2 + $0xb8] sm:$0xff] %v699_v7  ;;  %v950_v11 = vadd.f32 %v949_v2, %v699_v7  ;;  %v1023_v13 = vmul.f32 %v699_v7, %v699_v7  ;;  %v701_v14 = vpop.f32.mrb[47].mxu0  ;;  %918 = vst [vmem:[%s2113_s2 + $0x1b8] sm:$0xff] %v1922_v9  ;;  %v829_v17 = vpop.f32.mrb[47].mxu1 }
 0x165   :  { %v1086_v18 = vadd.f32 %v1085_v10, %v1023_v13 }
 0x168   :  { %v704_v19 = vpop.f32.mrb[48].mxu0  ;;  %v1931_v21 = vpop.f32.mrb[48].mxu1 }
 0x169   :  { %887 = vst [vmem:[%s2113_s2 + $0xc0] sm:$0xff] %v704_v19  ;;  %v951_v23 = vadd.f32 %v950_v11, %v704_v19  ;;  %v1024_v24 = vmul.f32 %v704_v19, %v704_v19  ;;  %v706_v25 = vpop.f32.mrb[49].mxu0  ;;  %919 = vst [vmem:[%s2113_s2 + $0x1c0] sm:$0xff] %v1931_v21  ;;  %v834_v27 = vpop.f32.mrb[49].mxu1 }
 0x16a   :  { %v707_v30 = vpop.f32.mrb[50].mxu0  ;;  %v1940_v31 = vpop.f32.mrb[50].mxu1 }
 0x16b   :  { %v1087_v32 = vadd.f32 %v1086_v18, %v1024_v24  ;;  %888 = vst [vmem:[%s2113_s2 + $0xc8] sm:$0xff] %v707_v30  ;;  %v952_v33 = vadd.f32 %v951_v23, %v707_v30  ;;  %v1025_v36 = vmul.f32 %v707_v30, %v707_v30  ;;  %v709_v37 = vpop.f32.mrb[51].mxu0  ;;  %920 = vst [vmem:[%s2113_s2 + $0x1c8] sm:$0xff] %v1940_v31  ;;  %v837_v39 = vpop.f32.mrb[51].mxu1 }
 0x16d   :  { %v1088_v40 = vadd.f32 %v1087_v32, %v1025_v36 }
 0x170   :  { %v712_v41 = vpop.f32.mrb[52].mxu0  ;;  %v1949_v43 = vpop.f32.mrb[52].mxu1 }
 0x171   :  { %889 = vst [vmem:[%s2113_s2 + $0xd0] sm:$0xff] %v712_v41  ;;  %v953_v44 = vadd.f32 %v952_v33, %v712_v41  ;;  %v1026_v47 = vmul.f32 %v712_v41, %v712_v41  ;;  %v714_v49 = vpop.f32.mrb[53].mxu0  ;;  %921 = vst [vmem:[%s2113_s2 + $0x1d0] sm:$0xff] %v1949_v43  ;;  %v842_v50 = vpop.f32.mrb[53].mxu1 }
 0x172   :  { %v715_v51 = vpop.f32.mrb[54].mxu0  ;;  %v1958_v52 = vpop.f32.mrb[54].mxu1  ;;  %v1032_v49 = vmul.f32 %v1709_v16, %v1709_v16 }
 0x173   :  { %v1089_v55 = vadd.f32 %v1088_v40, %v1026_v47  ;;  %890 = vst [vmem:[%s2113_s2 + $0xd8] sm:$0xff] %v715_v51  ;;  %v954_v57 = vadd.f32 %v953_v44, %v715_v51  ;;  %v1027_v58 = vmul.f32 %v715_v51, %v715_v51  ;;  %v717_v59 = vpop.f32.mrb[55].mxu0  ;;  %922 = vst [vmem:[%s2113_s2 + $0x1d8] sm:$0xff] %v1958_v52  ;;  %v845_v60 = vpop.f32.mrb[55].mxu1 }
 0x174   :  { %v1034_v59 = vmul.f32 %v1727_v28, %v1727_v28 }
 0x175   :  { %v1090_v63 = vadd.f32 %v1089_v55, %v1027_v58  ;;  %v1033_v55 = vmul.f32 %v1718_v20, %v1718_v20 }
 0x178   :  { %v720_v0 = vpop.f32.mrb[56].mxu0  ;;  %v1967_v2 = vpop.f32.mrb[56].mxu1 }
 0x179   :  { %891 = vst [vmem:[%s2113_s2 + $0xe0] sm:$0xff] %v720_v0  ;;  %v955_v3 = vadd.f32 %v954_v57, %v720_v0  ;;  %v1028_v4 = vmul.f32 %v720_v0, %v720_v0  ;;  %v722_v5 = vpop.f32.mrb[57].mxu0  ;;  %923 = vst [vmem:[%s2113_s2 + $0x1e0] sm:$0xff] %v1967_v2  ;;  %v850_v7 = vpop.f32.mrb[57].mxu1  ;;  %v1035_v0 = vmul.f32 %v1736_v34, %v1736_v34 }
 0x17a   :  { %v723_v10 = vpop.f32.mrb[58].mxu0  ;;  %v1976_v11 = vpop.f32.mrb[58].mxu1 }
 0x17b   :  { %v1091_v13 = vadd.f32 %v1090_v63, %v1028_v4  ;;  %892 = vst [vmem:[%s2113_s2 + $0xe8] sm:$0xff] %v723_v10  ;;  %v956_v14 = vadd.f32 %v955_v3, %v723_v10  ;;  %v1029_v17 = vmul.f32 %v723_v10, %v723_v10  ;;  %v725_v18 = vpop.f32.mrb[59].mxu0  ;;  %924 = vst [vmem:[%s2113_s2 + $0x1e8] sm:$0xff] %v1976_v11  ;;  %v853_v19 = vpop.f32.mrb[59].mxu1 }
 0x17d   :  { %v1092_v23 = vadd.f32 %v1091_v13, %v1029_v17 }
 0x180   :  { %v728_v24 = vpop.f32.mrb[60].mxu0  ;;  %v1985_v25 = vpop.f32.mrb[60].mxu1 }
 0x181   :  { %893 = vst [vmem:[%s2113_s2 + $0xf0] sm:$0xff] %v728_v24  ;;  %v957_v27 = vadd.f32 %v956_v14, %v728_v24  ;;  %v1030_v30 = vmul.f32 %v728_v24, %v728_v24  ;;  %v730_v32 = vpop.f32.mrb[61].mxu0  ;;  %925 = vst [vmem:[%s2113_s2 + $0x1f0] sm:$0xff] %v1985_v25  ;;  %v858_v33 = vpop.f32.mrb[61].mxu1 }
 0x182   :  { %v731_v36 = vpop.f32.mrb[62].mxu0  ;;  %v1994_v37 = vpop.f32.mrb[62].mxu1 }
 0x183   :  { %v1093_v39 = vadd.f32 %v1092_v23, %v1030_v30  ;;  %894 = vst [vmem:[%s2113_s2 + $0xf8] sm:$0xff] %v731_v36  ;;  %v958_v40 = vadd.f32 %v957_v27, %v731_v36  ;;  %v1031_v41 = vmul.f32 %v731_v36, %v731_v36  ;;  %v733_v44 = vpop.f32.mrb[63].mxu0  ;;  %926 = vst [vmem:[%s2113_s2 + $0x1f8] sm:$0xff] %v1994_v37  ;;  %v861_v47 = vpop.f32.mrb[63].mxu1 }
 0x185   :  { %v959_v50 = vadd.f32 %v958_v40, %v1709_v16  ;;  %v1094_v51 = vadd.f32 %v1093_v39, %v1031_v41  ;;  %v1036_v16 = vmul.f32 %v1745_v42, %v1745_v42 }
 0x187   :  { %v960_v57 = vadd.f32 %v959_v50, %v1718_v20  ;;  %v1095_v58 = vadd.f32 %v1094_v51, %v1032_v49  ;;  %v1037_v20 = vmul.f32 %v1754_v48, %v1754_v48 }
 0x189   :  { %v961_v60 = vadd.f32 %v960_v57, %v1727_v28  ;;  %v1096_v63 = vadd.f32 %v1095_v58, %v1033_v55  ;;  %v1038_v28 = vmul.f32 %v1763_v56, %v1763_v56  ;;  %v1048_v57 = vmul.f32 %v1859_v8, %v1859_v8 }
 0x18b   :  { %v962_v3 = vadd.f32 %v961_v60, %v1736_v34  ;;  %v1097_v4 = vadd.f32 %v1096_v63, %v1034_v59  ;;  %v1039_v34 = vmul.f32 %v1772_v62, %v1772_v62  ;;  %v1049_v60 = vmul.f32 %v1868_v15, %v1868_v15 }
 0x18d   :  { %v963_v5 = vadd.f32 %v962_v3, %v1745_v42  ;;  %v1098_v7 = vadd.f32 %v1097_v4, %v1035_v0  ;;  %v1040_v42 = vmul.f32 %v1781_v6, %v1781_v6  ;;  %v1050_v0 = vmul.f32 %v1877_v26, %v1877_v26 }
 0x18e   :  { %v1051_v4 = vmul.f32 %v1886_v35, %v1886_v35 }
 0x18f   :  { %v964_v10 = vadd.f32 %v963_v5, %v1754_v48  ;;  %v1099_v13 = vadd.f32 %v1098_v7, %v1036_v16  ;;  %v1041_v48 = vmul.f32 %v1790_v12, %v1790_v12  ;;  %v1052_v5 = vmul.f32 %v1895_v46, %v1895_v46 }
 0x191   :  { %v965_v14 = vadd.f32 %v964_v10, %v1763_v56  ;;  %v1100_v17 = vadd.f32 %v1099_v13, %v1037_v20  ;;  %v1042_v56 = vmul.f32 %v1799_v22, %v1799_v22  ;;  %v1053_v20 = vmul.f32 %v1904_v53, %v1904_v53 }
 0x192   :  { %v1054_v13 = vmul.f32 %v1913_v1, %v1913_v1 }
 0x193   :  { %v966_v18 = vadd.f32 %v965_v14, %v1772_v62  ;;  %v1101_v19 = vadd.f32 %v1100_v17, %v1038_v28  ;;  %v1043_v62 = vmul.f32 %v1808_v29, %v1808_v29  ;;  %v1055_v14 = vmul.f32 %v1922_v9, %v1922_v9 }
 0x195   :  { %v1102_v23 = vadd.f32 %v1101_v19, %v1039_v34  ;;  %v967_v24 = vadd.f32 %v966_v18, %v1781_v6  ;;  %v1044_v6 = vmul.f32 %v1817_v38, %v1817_v38  ;;  %v1056_v34 = vmul.f32 %v1931_v21, %v1931_v21 }
 0x196   :  { %v1057_v19 = vmul.f32 %v1940_v31, %v1940_v31 }
 0x197   :  { %v968_v27 = vadd.f32 %v967_v24, %v1790_v12  ;;  %v1103_v30 = vadd.f32 %v1102_v23, %v1040_v42  ;;  %v1045_v12 = vmul.f32 %v1826_v45, %v1826_v45  ;;  %v1058_v23 = vmul.f32 %v1949_v43, %v1949_v43 }
 0x199   :  { %v969_v32 = vadd.f32 %v968_v27, %v1799_v22  ;;  %v1104_v33 = vadd.f32 %v1103_v30, %v1041_v48  ;;  %v1046_v22 = vmul.f32 %v1835_v54, %v1835_v54  ;;  %v1059_v48 = vmul.f32 %v1958_v52, %v1958_v52 }
 0x19a   :  { %v1060_v30 = vmul.f32 %v1967_v2, %v1967_v2 }
 0x19b   :  { %v970_v36 = vadd.f32 %v969_v32, %v1808_v29  ;;  %v1105_v39 = vadd.f32 %v1104_v33, %v1042_v56  ;;  %v1047_v29 = vmul.f32 %v1844_v61, %v1844_v61  ;;  %v1061_v32 = vmul.f32 %v1976_v11, %v1976_v11 }
 0x19d   :  { %v971_v40 = vadd.f32 %v970_v36, %v1817_v38  ;;  %v1106_v41 = vadd.f32 %v1105_v39, %v1043_v62  ;;  %v1063_v39 = vmul.f32 %v1994_v37, %v1994_v37 }
 0x19f   :  { %v972_v44 = vadd.f32 %v971_v40, %v1826_v45  ;;  %v1107_v47 = vadd.f32 %v1106_v41, %v1044_v6 }
 0x1a1   :  { %v973_v49 = vadd.f32 %v972_v44, %v1835_v54  ;;  %v1108_v50 = vadd.f32 %v1107_v47, %v1045_v12 }
 0x1a3   :  { %v974_v51 = vadd.f32 %v973_v49, %v1844_v61  ;;  %v1109_v55 = vadd.f32 %v1108_v50, %v1046_v22 }
 0x1a5   :  { %v975_v38 = vadd.f32 %v974_v51, %v1859_v8  ;;  %v1110_v58 = vadd.f32 %v1109_v55, %v1047_v29 }
 0x1a7   :  { %v1111_v45 = vadd.f32 %v1110_v58, %v1048_v57  ;;  %v976_v59 = vadd.f32 %v975_v38, %v1868_v15 }
 0x1a9   :  { %v1112_v54 = vadd.f32 %v1111_v45, %v1049_v60  ;;  %v977_v63 = vadd.f32 %v976_v59, %v1877_v26 }
 0x1ab   :  { %v1113_v61 = vadd.f32 %v1112_v54, %v1050_v0  ;;  %v978_v3 = vadd.f32 %v977_v63, %v1886_v35 }
 0x1ad   :  { %v1114_v8 = vadd.f32 %v1113_v61, %v1051_v4  ;;  %v979_v16 = vadd.f32 %v978_v3, %v1895_v46 }
 0x1af   :  { %v1115_v7 = vadd.f32 %v1114_v8, %v1052_v5  ;;  %v980_v15 = vadd.f32 %v979_v16, %v1904_v53 }
 0x1b1   :  { %v1116_v10 = vadd.f32 %v1115_v7, %v1053_v20  ;;  %v981_v26 = vadd.f32 %v980_v15, %v1913_v1 }
 0x1b3   :  { %v1117_v28 = vadd.f32 %v1116_v10, %v1054_v13  ;;  %v982_v35 = vadd.f32 %v981_v26, %v1922_v9 }
 0x1b5   :  { %v1118_v17 = vadd.f32 %v1117_v28, %v1055_v14  ;;  %v983_v46 = vadd.f32 %v982_v35, %v1931_v21 }
 0x1b7   :  { %v1119_v18 = vadd.f32 %v1118_v17, %v1056_v34  ;;  %v984_v53 = vadd.f32 %v983_v46, %v1940_v31 }
 0x1b9   :  { %v1120_v42 = vadd.f32 %v1119_v18, %v1057_v19  ;;  %v985_v1 = vadd.f32 %v984_v53, %v1949_v43  ;;  %v1062_v43 = vmul.f32 %v1985_v25, %v1985_v25 }
 0x1bb   :  { %v1121_v24 = vadd.f32 %v1120_v42, %v1058_v23  ;;  %v986_v9 = vadd.f32 %v985_v1, %v1958_v52 }
 0x1bd   :  { %v1122_v27 = vadd.f32 %v1121_v24, %v1059_v48  ;;  %v987_v21 = vadd.f32 %v986_v9, %v1967_v2 }
 0x1bf   :  { %v1123_v56 = vadd.f32 %v1122_v27, %v1060_v30  ;;  %v988_v31 = vadd.f32 %v987_v21, %v1976_v11 }
 0x1c1   :  { %v1124_v33 = vadd.f32 %v1123_v56, %v1061_v32  ;;  %v989_v62 = vadd.f32 %v988_v31, %v1985_v25  ;;  %v927_v25 = vld [vmem:[%s2114_s3] sm:$0x1] }
 0x1c3   :  { %v1125_v36 = vadd.f32 %v1124_v33, %v1062_v43  ;;  %v990_v52 = vadd.f32 %v989_v62, %v1994_v37  ;;  %v999_v37 = vld [vmem:[%s2115_s4] sm:$0x1] }
 0x1c5   :  { %v991_v6 = vrot.slane %v990_v52, 4  ;;  %v1126_v2 = vadd.f32 %v1125_v36, %v1063_v39 }
 0x1c7   :  { %v992_v40 = vadd.f32 %v991_v6, %v990_v52  ;;  %v1127_v41 = vrot.slane %v1126_v2, 4 }
 0x1c9   :  { %v993_v12 = vrot.slane %v992_v40, 2  ;;  %v1128_v44 = vadd.f32 %v1127_v41, %v1126_v2 }
 0x1cb   :  { %v994_v47 = vadd.f32 %v993_v12, %v992_v40  ;;  %v1129_v11 = vrot.slane %v1128_v44, 2 }
 0x1cd   :  { %v995_v22 = vrot.slane %v994_v47, 1  ;;  %v1130_v49 = vadd.f32 %v1129_v11, %v1128_v44 }
 0x1cf   :  { %v996_v50 = vadd.f32 %v995_v22, %v994_v47  ;;  %v1131_v29 = vrot.slane %v1130_v49, 1 }
 0x1d1   :  { %v997_v51 = vadd.f32 %v996_v50, %v927_v25  ;;  %v1132_v55 = vadd.f32 %v1131_v29, %v1130_v49 }
 0x1d3   :  { %998 = vst [vmem:[%s2114_s3] sm:$0x1] %v997_v51  ;;  %v1133_v38 = vadd.f32 %v1132_v55, %v999_v37 }
 0x1d5   :  { %1134 = vst [vmem:[%s2115_s4] sm:$0x1] %v1133_v38 }

// kernel: encoder_decoder_resnet_forward.22
= control target key start
LH: loop header
LB: loop body
LE: loop exit
PB: predicated region body
PF: predicated region fallthrough
CT: control target
= control target key end

     0   :  { %s254_s0 = inlined_call_operand.vmem [shape: f32[128,128], index: 0, kind: input, shape index: {}, may-alias: {0,3}]   ;;  %s255_s1 = inlined_call_operand.vmem [shape: f32[1,128], index: 1, kind: input, shape index: {}]   ;;  %s256_s2 = inlined_call_operand.vmem [shape: f32[1,128], index: 2, kind: input, shape index: {}]   ;;  %s257_s3 = inlined_call_operand.vmem [shape: f32[128,128], index: 3, kind: output, shape index: {}, may-alias: {0,3}]  }
   0x1   :  { %v14_v0 = vld [vmem:[%s254_s0] sm:$0xff]  ;;  %v15_v4 = vld [vmem:[%s254_s0 + $0x8] sm:$0xff]  ;;  %v16_v5 = vld [vmem:[%s254_s0 + $0x10] sm:$0xff] }
   0x2   :  { %v112_v1 = vld [vmem:[%s255_s1] ss:$0 sm:$0xff]  ;;  %v17_v6 = vld [vmem:[%s254_s0 + $0x18] sm:$0xff]  ;;  %v19_v11 = vld [vmem:[%s254_s0 + $0x28] sm:$0xff] }
   0x3   :  { %v143_v2 = vld [vmem:[%s256_s2] ss:$0 sm:$0xff]  ;;  %v37_v3 = vmul.f32 %v112_v1, %v14_v0  ;;  %v38_v7 = vmul.f32 %v112_v1, %v15_v4  ;;  %v39_v8 = vmul.f32 %v112_v1, %v16_v5  ;;  %v40_v9 = vmul.f32 %v112_v1, %v17_v6  ;;  %v20_v12 = vld [vmem:[%s254_s0 + $0x30] sm:$0xff]  ;;  %v21_v17 = vld [vmem:[%s254_s0 + $0x38] sm:$0xff] }
   0x4   :  { %v18_v10 = vld [vmem:[%s254_s0 + $0x20] sm:$0xff]  ;;  %v42_v15 = vmul.f32 %v112_v1, %v19_v11  ;;  %v43_v16 = vmul.f32 %v112_v1, %v20_v12  ;;  %v44_v21 = vmul.f32 %v112_v1, %v21_v17  ;;  %v23_v27 = vld [vmem:[%s254_s0 + $0x48] sm:$0xff]  ;;  %v24_v28 = vld [vmem:[%s254_s0 + $0x50] sm:$0xff] }
   0x5   :  { %v60_v13 = vadd.f32 %v143_v2, %v37_v3  ;;  %v41_v14 = vmul.f32 %v112_v1, %v18_v10  ;;  %v61_v18 = vadd.f32 %v143_v2, %v38_v7  ;;  %v62_v19 = vadd.f32 %v143_v2, %v39_v8  ;;  %v22_v22 = vld [vmem:[%s254_s0 + $0x40] sm:$0xff]  ;;  %v25_v29 = vld [vmem:[%s254_s0 + $0x58] sm:$0xff]  ;;  %v27_v35 = vld [vmem:[%s254_s0 + $0x68] sm:$0xff] }
   0x6   :  { %v63_v20 = vadd.f32 %v143_v2, %v40_v9  ;;  %v65_v25 = vadd.f32 %v143_v2, %v42_v15  ;;  %v66_v26 = vadd.f32 %v143_v2, %v43_v16  ;;  %v67_v33 = vadd.f32 %v143_v2, %v44_v21  ;;  %v26_v34 = vld [vmem:[%s254_s0 + $0x60] sm:$0xff]  ;;  %v28_v36 = vld [vmem:[%s254_s0 + $0x70] sm:$0xff] }
   0x7   :  { %v76_v23 = vmax.f32 %v60_v13, 0.0  ;;  %v64_v24 = vadd.f32 %v143_v2, %v41_v14  ;;  %v77_v30 = vmax.f32 %v61_v18, 0.0  ;;  %v78_v31 = vmax.f32 %v62_v19, 0.0 }
   0x8   :  { %v79_v32 = vmax.f32 %v63_v20, 0.0  ;;  %v81_v38 = vmax.f32 %v65_v25, 0.0  ;;  %v82_v39 = vmax.f32 %v66_v26, 0.0  ;;  %v45_v40 = vmul.f32 %v112_v1, %v22_v22 }
   0x9   :  { %92 = vst [vmem:[%s257_s3] sm:$0xff] %v76_v23  ;;  %v80_v37 = vmax.f32 %v64_v24, 0.0  ;;  %v83_v42 = vmax.f32 %v67_v33, 0.0  ;;  %v46_v43 = vmul.f32 %v112_v1, %v23_v27  ;;  %v47_v44 = vmul.f32 %v112_v1, %v24_v28 }
   0xa   :  { %v48_v45 = vmul.f32 %v112_v1, %v25_v29  ;;  %v68_v46 = vadd.f32 %v143_v2, %v45_v40  ;;  %v49_v47 = vmul.f32 %v112_v1, %v26_v34  ;;  %v50_v48 = vmul.f32 %v112_v1, %v27_v35 }
   0xb   :  { %v51_v49 = vmul.f32 %v112_v1, %v28_v36  ;;  %v69_v50 = vadd.f32 %v143_v2, %v46_v43  ;;  %v70_v51 = vadd.f32 %v143_v2, %v47_v44 }
   0xc   :  { %v71_v52 = vadd.f32 %v143_v2, %v48_v45  ;;  %v84_v54 = vmax.f32 %v68_v46, 0.0  ;;  %v72_v55 = vadd.f32 %v143_v2, %v49_v47  ;;  %v73_v56 = vadd.f32 %v143_v2, %v50_v48 }
   0xd   :  { %v74_v57 = vadd.f32 %v143_v2, %v51_v49  ;;  %v85_v58 = vmax.f32 %v69_v50, 0.0  ;;  %v86_v59 = vmax.f32 %v70_v51, 0.0 }
   0xe   :  { %v87_v60 = vmax.f32 %v71_v52, 0.0  ;;  %v88_v62 = vmax.f32 %v72_v55, 0.0  ;;  %v89_v63 = vmax.f32 %v73_v56, 0.0 }
   0xf   :  { %v90_v0 = vmax.f32 %v74_v57, 0.0 }
  0x10   :  { %v29_v41 = vld [vmem:[%s254_s0 + $0x78] sm:$0xff] }
  0x11   :  { %93 = vst [vmem:[%s257_s3 + $0x8] sm:$0xff] %v77_v30  ;;  %94 = vst [vmem:[%s257_s3 + $0x10] sm:$0xff] %v78_v31  ;;  %v52_v53 = vmul.f32 %v112_v1, %v29_v41 }
  0x12   :  { %95 = vst [vmem:[%s257_s3 + $0x18] sm:$0xff] %v79_v32  ;;  %96 = vst [vmem:[%s257_s3 + $0x20] sm:$0xff] %v80_v37 }
  0x13   :  { %97 = vst [vmem:[%s257_s3 + $0x28] sm:$0xff] %v81_v38  ;;  %98 = vst [vmem:[%s257_s3 + $0x30] sm:$0xff] %v82_v39  ;;  %v75_v61 = vadd.f32 %v143_v2, %v52_v53 }
  0x14   :  { %99 = vst [vmem:[%s257_s3 + $0x38] sm:$0xff] %v83_v42  ;;  %100 = vst [vmem:[%s257_s3 + $0x40] sm:$0xff] %v84_v54 }
  0x15   :  { %101 = vst [vmem:[%s257_s3 + $0x48] sm:$0xff] %v85_v58  ;;  %102 = vst [vmem:[%s257_s3 + $0x50] sm:$0xff] %v86_v59  ;;  %v91_v1 = vmax.f32 %v75_v61, 0.0 }
  0x16   :  { %103 = vst [vmem:[%s257_s3 + $0x58] sm:$0xff] %v87_v60  ;;  %104 = vst [vmem:[%s257_s3 + $0x60] sm:$0xff] %v88_v62 }
  0x17   :  { %105 = vst [vmem:[%s257_s3 + $0x68] sm:$0xff] %v89_v63  ;;  %106 = vst [vmem:[%s257_s3 + $0x70] sm:$0xff] %v90_v0 }
  0x18   :  { %107 = vst [vmem:[%s257_s3 + $0x78] sm:$0xff] %v91_v1 }

// kernel: encoder_decoder_resnet_forward.21
= control target key start
LH: loop header
LB: loop body
LE: loop exit
PB: predicated region body
PF: predicated region fallthrough
CT: control target
= control target key end

     0   :  { %vm97_vm0 = vcmask 293888   ;;  %vm122_vm1 = vcmask 1041408   ;;  %v387_v12 = vmov 0.0   ;;  %s520_s1 = inlined_call_operand.vmem [shape: bf16[36,128], index: 1, kind: input, shape index: {}]   ;;  %s521_s0 = inlined_call_operand.vmem [shape: bf16[128,36], index: 0, kind: input, shape index: {}]   ;;  %s522_s3 = inlined_call_operand.vmem [shape: f32[1,128], index: 3, kind: output, shape index: {1}]   ;;  %s523_s4 = inlined_call_operand.vmem [shape: f32[1,128], index: 4, kind: output, shape index: {2}]   ;;  %s524_s2 = inlined_call_operand.vmem [shape: f32[128,128], index: 2, kind: output, shape index: {0}]  }
   0x1   :  { %v376_v0 = vld [vmem:[%s520_s1] sm:$0xff]   ;;  %v377_v1 = vld [vmem:[%s520_s1 + $0x8] sm:$0xff]   ;;  %v378_v2 = vld [vmem:[%s520_s1 + $0x10] ss:$0 sps:$4 sm:$0x33]   ;;  %19 = vst [vmem:[%s522_s3] sm:$0x1] %v387_v12 }
   0x2   :  { %345 = vmatprep.subr.bf16.mxu0 %v376_v0  ;;  %v379_v3 = vld [vmem:[%s521_s0] sm:$0xff]   ;;  %367 = vmatprep.subr.bf16.mxu1 %v376_v0  ;;  %v124_v5 = vsel %vm122_vm1, %v378_v2, 0  ;;  %v380_v6 = vld [vmem:[%s521_s0 + $0x8] sm:$0xff]   ;;  %v381_v8 = vld [vmem:[%s521_s0 + $0x10] sm:$0xff]   ;;  %20 = vst [vmem:[%s523_s4] sm:$0x1] %v387_v12 }
   0x3   :  { %346 = vmatpush3.bf16.msra.mxu0 %v376_v0  ;;  %370 = vmatpush3.bf16.msra.mxu1 %v376_v0  ;;  %v383_v4 = vld [vmem:[%s521_s0 + $0x20] sm:$0xff]   ;;  %v384_v7 = vld [vmem:[%s521_s0 + $0x28] sm:$0xff]   ;;  %v385_v9 = vld [vmem:[%s521_s0 + $0x30] sm:$0xff]  }
   0x4   :  { %347 = vmatprep.subr.bf16.mxu0 %v377_v1  ;;  %351 = vmatprep.mubr.msk.bf16.mxu0 %vm97_vm0, %v379_v3  ;;  %v382_v10 = vld [vmem:[%s521_s0 + $0x18] sm:$0xff]  }
   0x5   :  { %368 = vmatprep.subr.bf16.mxu1 %v377_v1  ;;  %359 = vmatprep.mubr.msk.bf16.mxu1 %vm97_vm0, %v383_v4  ;;  %v386_v11 = vld [vmem:[%s521_s0 + $0x38] sm:$0xff]  }
   0x7   :  { %348 = vmatpush3.bf16.msra.mxu0 %v377_v1  ;;  %371 = vmatpush3.bf16.msra.mxu1 %v377_v1 }
   0x8   :  { %373 = vmatprep.subr.msk.bf16.mxu0 %vm122_vm1, %v378_v2  ;;  %374 = vmatprep.subr.msk.bf16.mxu1 %vm122_vm1, %v378_v2 }
   0xb   :  { %350 = vmatpush3.bf16.msra.mxu0 %v124_v5  ;;  %372 = vmatpush3.bf16.msra.mxu1 %v124_v5 }
   0xe   :  { %352 = vmatmul.mubr.msk.bf16.vlgmr.msra.gmra.mrb[0].mxu0 %vm97_vm0, %v380_v6  ;;  %360 = vmatmul.mubr.msk.bf16.vlgmr.msra.gmra.mrb[0].mxu1 %vm97_vm0, %v384_v7 }
   0xf   :  { %355 = vmatprep.mubr.msk.bf16.mxu0 %vm97_vm0, %v381_v8  ;;  %363 = vmatprep.mubr.msk.bf16.mxu1 %vm97_vm0, %v385_v9 }
  0x16   :  { %356 = vmatmul.mubr.msk.bf16.gmra.mrb[4].mxu0 %vm97_vm0, %v382_v10  ;;  %364 = vmatmul.mubr.msk.bf16.gmra.mrb[4].mxu1 %vm97_vm0, %v386_v11 }
  0xe1   :  { %v353_v13 = vpop.f32.mrb[0].mxu0  ;;  %v361_v14 = vpop.f32.mrb[0].mxu1 }
  0xe2   :  { %225 = vst [vmem:[%s524_s2 + $0x10] sm:$0xff] %v353_v13  ;;  %v160_v15 = vpop.f32.mrb[1].mxu0  ;;  %233 = vst [vmem:[%s524_s2 + $0x50] sm:$0xff] %v361_v14  ;;  %v192_v16 = vpop.f32.mrb[1].mxu1  ;;  %v266_v24 = vmul.f32 %v353_v13, %v353_v13  ;;  %v274_v56 = vmul.f32 %v361_v14, %v361_v14 }
  0xe3   :  { %223 = vst [vmem:[%s524_s2] sm:$0xff] %v160_v15  ;;  %v354_v17 = vpop.f32.mrb[2].mxu0  ;;  %231 = vst [vmem:[%s524_s2 + $0x40] sm:$0xff] %v192_v16  ;;  %v362_v18 = vpop.f32.mrb[2].mxu1  ;;  %v264_v21 = vmul.f32 %v160_v15, %v160_v15  ;;  %v272_v50 = vmul.f32 %v192_v16, %v192_v16 }
  0xe4   :  { %226 = vst [vmem:[%s524_s2 + $0x18] sm:$0xff] %v354_v17  ;;  %v163_v19 = vpop.f32.mrb[3].mxu0  ;;  %234 = vst [vmem:[%s524_s2 + $0x58] sm:$0xff] %v362_v18  ;;  %v195_v20 = vpop.f32.mrb[3].mxu1  ;;  %v267_v27 = vmul.f32 %v354_v17, %v354_v17  ;;  %v275_v59 = vmul.f32 %v362_v18, %v362_v18 }
  0xe5   :  { %224 = vst [vmem:[%s524_s2 + $0x8] sm:$0xff] %v163_v19  ;;  %v240_v22 = vadd.f32 %v163_v19, %v160_v15  ;;  %v265_v23 = vmul.f32 %v163_v19, %v163_v19  ;;  %232 = vst [vmem:[%s524_s2 + $0x48] sm:$0xff] %v195_v20  ;;  %v273_v55 = vmul.f32 %v195_v20, %v195_v20 }
  0xe7   :  { %v241_v25 = vadd.f32 %v353_v13, %v240_v22  ;;  %v280_v26 = vadd.f32 %v265_v23, %v264_v21  ;;  %v263_v23 = vld [vmem:[%s523_s4] sm:$0x1] }
  0xe9   :  { %v281_v28 = vadd.f32 %v280_v26, %v266_v24  ;;  %v357_v29 = vpop.f32.mrb[4].mxu0  ;;  %v242_v30 = vadd.f32 %v354_v17, %v241_v25  ;;  %v365_v31 = vpop.f32.mrb[4].mxu1 }
  0xea   :  { %229 = vst [vmem:[%s524_s2 + $0x30] sm:$0xff] %v357_v29  ;;  %v176_v32 = vpop.f32.mrb[5].mxu0  ;;  %237 = vst [vmem:[%s524_s2 + $0x70] sm:$0xff] %v365_v31  ;;  %v208_v33 = vpop.f32.mrb[5].mxu1  ;;  %v270_v44 = vmul.f32 %v357_v29, %v357_v29  ;;  %v278_v4 = vmul.f32 %v365_v31, %v365_v31 }
  0xeb   :  { %227 = vst [vmem:[%s524_s2 + $0x20] sm:$0xff] %v176_v32  ;;  %v243_v34 = vadd.f32 %v242_v30, %v176_v32  ;;  %v268_v35 = vmul.f32 %v176_v32, %v176_v32  ;;  %v282_v36 = vadd.f32 %v281_v28, %v267_v27  ;;  %v358_v37 = vpop.f32.mrb[6].mxu0  ;;  %235 = vst [vmem:[%s524_s2 + $0x60] sm:$0xff] %v208_v33  ;;  %v366_v38 = vpop.f32.mrb[6].mxu1 }
  0xec   :  { %230 = vst [vmem:[%s524_s2 + $0x38] sm:$0xff] %v358_v37  ;;  %v179_v39 = vpop.f32.mrb[7].mxu0  ;;  %238 = vst [vmem:[%s524_s2 + $0x78] sm:$0xff] %v366_v38  ;;  %v211_v40 = vpop.f32.mrb[7].mxu1  ;;  %v271_v47 = vmul.f32 %v358_v37, %v358_v37  ;;  %v276_v62 = vmul.f32 %v208_v33, %v208_v33  ;;  %v279_v7 = vmul.f32 %v366_v38, %v366_v38 }
  0xed   :  { %v283_v41 = vadd.f32 %v282_v36, %v268_v35  ;;  %228 = vst [vmem:[%s524_s2 + $0x28] sm:$0xff] %v179_v39  ;;  %v244_v42 = vadd.f32 %v243_v34, %v179_v39  ;;  %v269_v43 = vmul.f32 %v179_v39, %v179_v39  ;;  %236 = vst [vmem:[%s524_s2 + $0x68] sm:$0xff] %v211_v40 }
  0xee   :  { %v277_v3 = vmul.f32 %v211_v40, %v211_v40 }
  0xef   :  { %v245_v45 = vadd.f32 %v357_v29, %v244_v42  ;;  %v284_v46 = vadd.f32 %v283_v41, %v269_v43 }
  0xf1   :  { %v285_v48 = vadd.f32 %v284_v46, %v270_v44  ;;  %v246_v49 = vadd.f32 %v358_v37, %v245_v45 }
  0xf3   :  { %v247_v51 = vadd.f32 %v246_v49, %v192_v16  ;;  %v286_v52 = vadd.f32 %v285_v48, %v271_v47 }
  0xf5   :  { %v287_v53 = vadd.f32 %v286_v52, %v272_v50  ;;  %v248_v54 = vadd.f32 %v247_v51, %v195_v20  ;;  %v239_v20 = vld [vmem:[%s522_s3] sm:$0x1] }
  0xf7   :  { %v249_v57 = vadd.f32 %v361_v14, %v248_v54  ;;  %v288_v58 = vadd.f32 %v287_v53, %v273_v55 }
  0xf9   :  { %v289_v60 = vadd.f32 %v288_v58, %v274_v56  ;;  %v250_v61 = vadd.f32 %v362_v18, %v249_v57 }
  0xfb   :  { %v251_v63 = vadd.f32 %v250_v61, %v208_v33  ;;  %v290_v0 = vadd.f32 %v289_v60, %v275_v59 }
  0xfd   :  { %v291_v1 = vadd.f32 %v290_v0, %v276_v62  ;;  %v252_v2 = vadd.f32 %v251_v63, %v211_v40 }
  0xff   :  { %v253_v5 = vadd.f32 %v365_v31, %v252_v2  ;;  %v292_v6 = vadd.f32 %v291_v1, %v277_v3 }
 0x101   :  { %v254_v8 = vadd.f32 %v366_v38, %v253_v5  ;;  %v293_v9 = vadd.f32 %v292_v6, %v278_v4 }
 0x103   :  { %v255_v10 = vrot.slane %v254_v8, 4  ;;  %v294_v11 = vadd.f32 %v293_v9, %v279_v7 }
 0x105   :  { %v256_v12 = vadd.f32 %v255_v10, %v254_v8  ;;  %v295_v13 = vrot.slane %v294_v11, 4 }
 0x107   :  { %v257_v14 = vrot.slane %v256_v12, 2  ;;  %v296_v15 = vadd.f32 %v295_v13, %v294_v11 }
 0x109   :  { %v258_v16 = vadd.f32 %v257_v14, %v256_v12  ;;  %v297_v17 = vrot.slane %v296_v15, 2 }
 0x10b   :  { %v259_v18 = vrot.slane %v258_v16, 1  ;;  %v298_v19 = vadd.f32 %v297_v17, %v296_v15 }
 0x10d   :  { %v260_v21 = vadd.f32 %v259_v18, %v258_v16  ;;  %v299_v22 = vrot.slane %v298_v19, 1 }
 0x10f   :  { %v261_v24 = vadd.f32 %v260_v21, %v239_v20  ;;  %v300_v25 = vadd.f32 %v299_v22, %v298_v19 }
 0x111   :  { %262 = vst [vmem:[%s522_s3] sm:$0x1] %v261_v24  ;;  %v301_v26 = vadd.f32 %v300_v25, %v263_v23 }
 0x113   :  { %302 = vst [vmem:[%s523_s4] sm:$0x1] %v301_v26 }

// kernel: encoder_decoder_resnet_forward.24
= control target key start
LH: loop header
LB: loop body
LE: loop exit
PB: predicated region body
PF: predicated region fallthrough
CT: control target
= control target key end

     0   :  { %s104_s0 = inlined_call_operand.vmem [shape: f32[32,128], index: 0, kind: input, shape index: {}, may-alias: {0,3}]   ;;  %s105_s1 = inlined_call_operand.vmem [shape: f32[1,128], index: 1, kind: input, shape index: {}]   ;;  %s106_s2 = inlined_call_operand.vmem [shape: f32[1,128], index: 2, kind: input, shape index: {}]   ;;  %s107_s3 = inlined_call_operand.vmem [shape: f32[32,128], index: 3, kind: output, shape index: {}, may-alias: {0,3}]  }
   0x1   :  { %v14_v0 = vld [vmem:[%s104_s0] sm:$0xff]  ;;  %v15_v4 = vld [vmem:[%s104_s0 + $0x8] sm:$0xff]  ;;  %v16_v5 = vld [vmem:[%s104_s0 + $0x10] sm:$0xff] }
   0x2   :  { %v52_v1 = vld [vmem:[%s105_s1] ss:$0 sm:$0xff]  ;;  %v17_v6 = vld [vmem:[%s104_s0 + $0x18] sm:$0xff] }
   0x3   :  { %v53_v2 = vld [vmem:[%s106_s2] ss:$0 sm:$0xff]  ;;  %v25_v3 = vmul.f32 %v52_v1, %v14_v0  ;;  %v26_v7 = vmul.f32 %v52_v1, %v15_v4  ;;  %v27_v8 = vmul.f32 %v52_v1, %v16_v5  ;;  %v28_v9 = vmul.f32 %v52_v1, %v17_v6 }
   0x5   :  { %v36_v10 = vadd.f32 %v53_v2, %v25_v3  ;;  %v37_v11 = vadd.f32 %v53_v2, %v26_v7  ;;  %v38_v12 = vadd.f32 %v53_v2, %v27_v8  ;;  %v39_v13 = vadd.f32 %v53_v2, %v28_v9 }
   0x7   :  { %v40_v14 = vmax.f32 %v36_v10, 0.0  ;;  %v41_v15 = vmax.f32 %v37_v11, 0.0  ;;  %v42_v16 = vmax.f32 %v38_v12, 0.0  ;;  %v43_v17 = vmax.f32 %v39_v13, 0.0 }
   0x9   :  { %44 = vst [vmem:[%s107_s3] sm:$0xff] %v40_v14  ;;  %45 = vst [vmem:[%s107_s3 + $0x8] sm:$0xff] %v41_v15 }
   0xa   :  { %46 = vst [vmem:[%s107_s3 + $0x10] sm:$0xff] %v42_v16  ;;  %47 = vst [vmem:[%s107_s3 + $0x18] sm:$0xff] %v43_v17 }

// kernel: encoder_decoder_resnet_forward.23
= control target key start
LH: loop header
LB: loop body
LE: loop exit
PB: predicated region body
PF: predicated region fallthrough
CT: control target
= control target key end

     0   :  { %vm71_vm0 = vcmask 588800   ;;  %vm78_vm1 = vcmask 1043456   ;;  %v214_v8 = vmov 0.0   ;;  %s291_s1 = inlined_call_operand.vmem [shape: bf16[72,128], index: 1, kind: input, shape index: {}]   ;;  %s292_s0 = inlined_call_operand.vmem [shape: bf16[32,72], index: 0, kind: input, shape index: {}]   ;;  %s293_s3 = inlined_call_operand.vmem [shape: f32[1,128], index: 3, kind: output, shape index: {1}]   ;;  %s294_s4 = inlined_call_operand.vmem [shape: f32[1,128], index: 4, kind: output, shape index: {2}]   ;;  %s295_s2 = inlined_call_operand.vmem [shape: f32[32,128], index: 2, kind: output, shape index: {0}]  }
   0x1   :  { %v207_v0 = vld [vmem:[%s291_s1] sm:$0xff]   ;;  %v208_v1 = vld [vmem:[%s291_s1 + $0x8] sm:$0xff]   ;;  %v209_v2 = vld [vmem:[%s291_s1 + $0x10] sm:$0xff]   ;;  %19 = vst [vmem:[%s293_s3] sm:$0x1] %v214_v8 }
   0x2   :  { %191 = vmatprep.subr.bf16.mxu0 %v207_v0  ;;  %v212_v3 = vld [vmem:[%s292_s0] sm:$0xff]   ;;  %v210_v4 = vld [vmem:[%s291_s1 + $0x18] sm:$0xff]   ;;  %v213_v7 = vld [vmem:[%s292_s0 + $0x8] sm:$0xff]   ;;  %20 = vst [vmem:[%s294_s4] sm:$0x1] %v214_v8 }
   0x3   :  { %192 = vmatpush3.bf16.msra.mxu0 %v207_v0  ;;  %201 = vmatprep.mubr.msk.bf16.mxu0 %vm71_vm0, %v212_v3  ;;  %v211_v5 = vld [vmem:[%s291_s1 + $0x20] ss:$0 sps:$4 sm:$0xff]  }
   0x4   :  { %193 = vmatprep.subr.bf16.mxu0 %v208_v1  ;;  %v80_v6 = vsel %vm78_vm1, %v211_v5, 0 }
   0x7   :  { %194 = vmatpush3.bf16.msra.mxu0 %v208_v1 }
   0x8   :  { %195 = vmatprep.subr.bf16.mxu0 %v209_v2  ;;  %v135_v32 = vld [vmem:[%s293_s3] sm:$0x1] }
   0x9   :  { %v147_v35 = vld [vmem:[%s294_s4] sm:$0x1] }
   0xb   :  { %196 = vmatpush3.bf16.msra.mxu0 %v209_v2 }
   0xc   :  { %197 = vmatprep.subr.bf16.mxu0 %v210_v4 }
   0xf   :  { %198 = vmatpush3.bf16.msra.mxu0 %v210_v4 }
  0x10   :  { %205 = vmatprep.subr.msk.bf16.mxu0 %vm78_vm1, %v211_v5 }
  0x13   :  { %200 = vmatpush3.bf16.msra.mxu0 %v80_v6 }
  0x16   :  { %202 = vmatmul.mubr.msk.bf16.vlgmr.msra.gmra.mrb[0].mxu0 %vm71_vm0, %v213_v7 }
  0xe9   :  { %v203_v9 = vpop.f32.mrb[0].mxu0 }
  0xea   :  { %133 = vst [vmem:[%s295_s2 + $0x10] sm:$0xff] %v203_v9  ;;  %v116_v10 = vpop.f32.mrb[1].mxu0  ;;  %v150_v16 = vmul.f32 %v203_v9, %v203_v9 }
  0xeb   :  { %131 = vst [vmem:[%s295_s2] sm:$0xff] %v116_v10  ;;  %v204_v11 = vpop.f32.mrb[2].mxu0  ;;  %v148_v13 = vmul.f32 %v116_v10, %v116_v10 }
  0xec   :  { %134 = vst [vmem:[%s295_s2 + $0x18] sm:$0xff] %v204_v11  ;;  %v119_v12 = vpop.f32.mrb[3].mxu0  ;;  %v151_v19 = vmul.f32 %v204_v11, %v204_v11 }
  0xed   :  { %132 = vst [vmem:[%s295_s2 + $0x8] sm:$0xff] %v119_v12  ;;  %v136_v14 = vadd.f32 %v119_v12, %v116_v10  ;;  %v149_v15 = vmul.f32 %v119_v12, %v119_v12 }
  0xef   :  { %v137_v17 = vadd.f32 %v203_v9, %v136_v14  ;;  %v152_v18 = vadd.f32 %v149_v15, %v148_v13 }
  0xf1   :  { %v138_v20 = vadd.f32 %v204_v11, %v137_v17  ;;  %v153_v21 = vadd.f32 %v152_v18, %v150_v16 }
  0xf3   :  { %v139_v22 = vrot.slane %v138_v20, 4  ;;  %v154_v23 = vadd.f32 %v153_v21, %v151_v19 }
  0xf5   :  { %v140_v24 = vadd.f32 %v139_v22, %v138_v20  ;;  %v155_v25 = vrot.slane %v154_v23, 4 }
  0xf7   :  { %v141_v26 = vrot.slane %v140_v24, 2  ;;  %v156_v27 = vadd.f32 %v155_v25, %v154_v23 }
  0xf9   :  { %v142_v28 = vadd.f32 %v141_v26, %v140_v24  ;;  %v157_v29 = vrot.slane %v156_v27, 2 }
  0xfb   :  { %v143_v30 = vrot.slane %v142_v28, 1  ;;  %v158_v31 = vadd.f32 %v157_v29, %v156_v27 }
  0xfd   :  { %v144_v33 = vadd.f32 %v143_v30, %v142_v28  ;;  %v159_v34 = vrot.slane %v158_v31, 1 }
  0xff   :  { %v145_v36 = vadd.f32 %v144_v33, %v135_v32  ;;  %v160_v37 = vadd.f32 %v159_v34, %v158_v31 }
 0x101   :  { %146 = vst [vmem:[%s293_s3] sm:$0x1] %v145_v36  ;;  %v161_v38 = vadd.f32 %v160_v37, %v147_v35 }
 0x103   :  { %162 = vst [vmem:[%s294_s4] sm:$0x1] %v161_v38 }

// kernel: encoder_decoder_resnet_forward.25
= control target key start
LH: loop header
LB: loop body
LE: loop exit
PB: predicated region body
PF: predicated region fallthrough
CT: control target
= control target key end

     0   :  { %v265_v0 = vmov 0   ;;  %vm115_vm0 = vcmask 130048   ;;  %v266_v14 = vmov 0.0   ;;  %s361_s1 = inlined_call_operand.vmem [shape: bf16[144,128], index: 1, kind: input, shape index: {}]   ;;  %s362_s0 = inlined_call_operand.vmem [shape: bf16[32,144], index: 0, kind: input, shape index: {}]   ;;  %s363_s3 = inlined_call_operand.vmem [shape: f32[1,128], index: 3, kind: output, shape index: {1}]   ;;  %s364_s4 = inlined_call_operand.vmem [shape: f32[1,128], index: 4, kind: output, shape index: {2}]   ;;  %s365_s2 = inlined_call_operand.vmem [shape: f32[32,128], index: 2, kind: output, shape index: {0}]  }
   0x1   :  { %122 = vmatprep.subr.bf16.mxu0 %v265_v0  ;;  %230 = vmatprep.subr.bf16.mxu1 %v265_v0  ;;  %v250_v1 = vld [vmem:[%s361_s1] sm:$0xff]   ;;  %v251_v2 = vld [vmem:[%s361_s1 + $0x8] sm:$0xff]   ;;  %v252_v3 = vld [vmem:[%s361_s1 + $0x10] sm:$0xff]   ;;  %19 = vst [vmem:[%s363_s3] sm:$0x1] %v266_v14 }
   0x2   :  { %123 = vmatpush1.bf16.msra.mxu0 %v250_v1  ;;  %239 = vmatpush1.bf16.msra.mxu1 %v250_v1  ;;  %v253_v4 = vld [vmem:[%s361_s1 + $0x18] sm:$0xff]   ;;  %v261_v5 = vld [vmem:[%s362_s0 + $0x4] ss:$8 sps:$4 sm:$0xff]   ;;  %v256_v9 = vld [vmem:[%s361_s1 + $0x30] sm:$0xff]   ;;  %20 = vst [vmem:[%s364_s4] sm:$0x1] %v266_v14 }
   0x3   :  { %124 = vmatprep.subr.bf16.mxu0 %v265_v0  ;;  %231 = vmatprep.subr.bf16.mxu1 %v265_v0  ;;  %v264_v6 = vld [vmem:[%s362_s0 + $0x14] ss:$8 sps:$4 sm:$0xff]   ;;  %v254_v7 = vld [vmem:[%s361_s1 + $0x20] sm:$0xff]   ;;  %v255_v8 = vld [vmem:[%s361_s1 + $0x28] sm:$0xff]  }
   0x4   :  { %228 = vmatprep.mubr.msk.bf16.mxu0 %vm115_vm0, %v261_v5  ;;  %229 = vmatprep.mubr.msk.bf16.mxu1 %vm115_vm0, %v264_v6  ;;  %v257_v10 = vld [vmem:[%s361_s1 + $0x38] sm:$0xff]   ;;  %v258_v11 = vld [vmem:[%s361_s1 + $0x40] sm:$0xff]  }
   0x5   :  { %v259_v12 = vld [vmem:[%s362_s0] ss:$8 sps:$4 sm:$0xff]   ;;  %v262_v13 = vld [vmem:[%s362_s0 + $0x10] ss:$8 sps:$4 sm:$0xff]  }
   0x6   :  { %125 = vmatpush1.bf16.msra.mxu0 %v251_v2  ;;  %240 = vmatpush1.bf16.msra.mxu1 %v251_v2 }
   0x7   :  { %126 = vmatprep.subr.bf16.mxu0 %v265_v0  ;;  %232 = vmatprep.subr.bf16.mxu1 %v265_v0 }
   0x8   :  { %v175_v42 = vld [vmem:[%s363_s3] sm:$0x1] }
   0x9   :  { %v187_v45 = vld [vmem:[%s364_s4] sm:$0x1] }
   0xa   :  { %127 = vmatpush1.bf16.msra.mxu0 %v252_v3  ;;  %241 = vmatpush1.bf16.msra.mxu1 %v252_v3 }
   0xb   :  { %128 = vmatprep.subr.bf16.mxu0 %v265_v0  ;;  %233 = vmatprep.subr.bf16.mxu1 %v265_v0 }
   0xe   :  { %129 = vmatpush1.bf16.msra.mxu0 %v253_v4  ;;  %242 = vmatpush1.bf16.msra.mxu1 %v253_v4 }
   0xf   :  { %130 = vmatprep.subr.bf16.mxu0 %v265_v0  ;;  %234 = vmatprep.subr.bf16.mxu1 %v265_v0 }
  0x12   :  { %131 = vmatpush1.bf16.msra.mxu0 %v254_v7  ;;  %243 = vmatpush1.bf16.msra.mxu1 %v254_v7 }
  0x13   :  { %132 = vmatprep.subr.bf16.mxu0 %v265_v0  ;;  %235 = vmatprep.subr.bf16.mxu1 %v265_v0 }
  0x16   :  { %133 = vmatpush1.bf16.msra.mxu0 %v255_v8  ;;  %244 = vmatpush1.bf16.msra.mxu1 %v255_v8 }
  0x17   :  { %134 = vmatprep.subr.bf16.mxu0 %v265_v0  ;;  %236 = vmatprep.subr.bf16.mxu1 %v265_v0 }
  0x1a   :  { %135 = vmatpush1.bf16.msra.mxu0 %v256_v9  ;;  %245 = vmatpush1.bf16.msra.mxu1 %v256_v9 }
  0x1b   :  { %136 = vmatprep.subr.bf16.mxu0 %v265_v0  ;;  %237 = vmatprep.subr.bf16.mxu1 %v265_v0 }
  0x1e   :  { %137 = vmatpush1.bf16.msra.mxu0 %v257_v10  ;;  %246 = vmatpush1.bf16.msra.mxu1 %v257_v10 }
  0x1f   :  { %138 = vmatprep.subr.bf16.mxu0 %v265_v0  ;;  %238 = vmatprep.subr.bf16.mxu1 %v265_v0 }
  0x22   :  { %139 = vmatpush1.bf16.msra.mxu0 %v258_v11  ;;  %247 = vmatpush1.bf16.msra.mxu1 %v258_v11 }
  0x25   :  { %155 = vmatmul.mubr.bf16.vlgmr.msra.gmra.mrb[0].mxu0 %v259_v12  ;;  %163 = vmatmul.mubr.bf16.vlgmr.msra.gmra.mrb[0].mxu1 %v262_v13 }
  0xf8   :  { %v156_v15 = vpop.f32.mrb[0].mxu0  ;;  %v164_v16 = vpop.f32.mrb[0].mxu1 }
  0xf9   :  { %171 = vst [vmem:[%s365_s2] sm:$0xff] %v156_v15  ;;  %v158_v17 = vpop.f32.mrb[1].mxu0  ;;  %173 = vst [vmem:[%s365_s2 + $0x10] sm:$0xff] %v164_v16  ;;  %v166_v18 = vpop.f32.mrb[1].mxu1  ;;  %v188_v21 = vmul.f32 %v156_v15, %v156_v15  ;;  %v190_v22 = vmul.f32 %v164_v16, %v164_v16 }
  0xfa   :  { %v159_v19 = vpop.f32.mrb[2].mxu0  ;;  %v167_v20 = vpop.f32.mrb[2].mxu1 }
  0xfb   :  { %172 = vst [vmem:[%s365_s2 + $0x8] sm:$0xff] %v159_v19  ;;  %v176_v23 = vadd.f32 %v159_v19, %v156_v15  ;;  %v189_v24 = vmul.f32 %v159_v19, %v159_v19  ;;  %v161_v25 = vpop.f32.mrb[3].mxu0  ;;  %174 = vst [vmem:[%s365_s2 + $0x18] sm:$0xff] %v167_v20  ;;  %v169_v26 = vpop.f32.mrb[3].mxu1  ;;  %v191_v30 = vmul.f32 %v167_v20, %v167_v20 }
  0xfd   :  { %v192_v27 = vadd.f32 %v189_v24, %v188_v21  ;;  %v177_v28 = vadd.f32 %v176_v23, %v164_v16 }
  0xff   :  { %v178_v29 = vadd.f32 %v177_v28, %v167_v20  ;;  %v193_v31 = vadd.f32 %v192_v27, %v190_v22 }
 0x101   :  { %v179_v32 = vrot.slane %v178_v29, 4  ;;  %v194_v33 = vadd.f32 %v193_v31, %v191_v30 }
 0x103   :  { %v180_v34 = vadd.f32 %v179_v32, %v178_v29  ;;  %v195_v35 = vrot.slane %v194_v33, 4 }
 0x105   :  { %v181_v36 = vrot.slane %v180_v34, 2  ;;  %v196_v37 = vadd.f32 %v195_v35, %v194_v33 }
 0x107   :  { %v182_v38 = vadd.f32 %v181_v36, %v180_v34  ;;  %v197_v39 = vrot.slane %v196_v37, 2 }
 0x109   :  { %v183_v40 = vrot.slane %v182_v38, 1  ;;  %v198_v41 = vadd.f32 %v197_v39, %v196_v37 }
 0x10b   :  { %v184_v43 = vadd.f32 %v183_v40, %v182_v38  ;;  %v199_v44 = vrot.slane %v198_v41, 1 }
 0x10d   :  { %v185_v46 = vadd.f32 %v184_v43, %v175_v42  ;;  %v200_v47 = vadd.f32 %v199_v44, %v198_v41 }
 0x10f   :  { %186 = vst [vmem:[%s363_s3] sm:$0x1] %v185_v46  ;;  %v201_v48 = vadd.f32 %v200_v47, %v187_v45 }
 0x111   :  { %202 = vst [vmem:[%s364_s4] sm:$0x1] %v201_v48 }

// kernel: encoder_decoder_resnet_forward.28
= control target key start
LH: loop header
LB: loop body
LE: loop exit
PB: predicated region body
PF: predicated region fallthrough
CT: control target
= control target key end

     0   :  { %s128_s0 = inlined_call_operand.vmem [shape: f32[32,128], index: 0, kind: input, shape index: {}, may-alias: {0,4}]   ;;  %s129_s1 = inlined_call_operand.vmem [shape: f32[1,128], index: 1, kind: input, shape index: {}]   ;;  %s130_s2 = inlined_call_operand.vmem [shape: f32[1,128], index: 2, kind: input, shape index: {}]   ;;  %s131_s3 = inlined_call_operand.vmem [shape: f32[32,128], index: 3, kind: input, shape index: {}]   ;;  %s132_s4 = inlined_call_operand.vmem [shape: f32[32,128], index: 4, kind: output, shape index: {}, may-alias: {0,4}]  }
   0x1   :  { %v17_v0 = vld [vmem:[%s128_s0] sm:$0xff]  ;;  %v18_v4 = vld [vmem:[%s128_s0 + $0x8] sm:$0xff]  ;;  %v19_v7 = vld [vmem:[%s128_s0 + $0x10] sm:$0xff] }
   0x2   :  { %v59_v1 = vld [vmem:[%s129_s1] ss:$0 sm:$0xff]  ;;  %v20_v8 = vld [vmem:[%s128_s0 + $0x18] sm:$0xff]  ;;  %v44_v10 = vld [vmem:[%s131_s3 + $0x8] sm:$0xff] }
   0x3   :  { %v60_v2 = vld [vmem:[%s130_s2] ss:$0 sm:$0xff]  ;;  %v28_v3 = vmul.f32 %v59_v1, %v17_v0  ;;  %v29_v6 = vmul.f32 %v59_v1, %v18_v4  ;;  %v30_v11 = vmul.f32 %v59_v1, %v19_v7  ;;  %v31_v12 = vmul.f32 %v59_v1, %v20_v8  ;;  %v45_v14 = vld [vmem:[%s131_s3 + $0x10] sm:$0xff]  ;;  %v46_v15 = vld [vmem:[%s131_s3 + $0x18] sm:$0xff] }
   0x4   :  { %v43_v5 = vld [vmem:[%s131_s3] sm:$0xff] }
   0x5   :  { %v39_v9 = vadd.f32 %v60_v2, %v28_v3  ;;  %v40_v13 = vadd.f32 %v60_v2, %v29_v6  ;;  %v41_v17 = vadd.f32 %v60_v2, %v30_v11  ;;  %v42_v18 = vadd.f32 %v60_v2, %v31_v12 }
   0x7   :  { %v47_v16 = vadd.f32 %v43_v5, %v39_v9  ;;  %v48_v19 = vadd.f32 %v44_v10, %v40_v13  ;;  %v49_v20 = vadd.f32 %v45_v14, %v41_v17  ;;  %v50_v21 = vadd.f32 %v46_v15, %v42_v18 }
   0x9   :  { %51 = vst [vmem:[%s132_s4] sm:$0xff] %v47_v16  ;;  %52 = vst [vmem:[%s132_s4 + $0x8] sm:$0xff] %v48_v19 }
   0xa   :  { %53 = vst [vmem:[%s132_s4 + $0x10] sm:$0xff] %v49_v20  ;;  %54 = vst [vmem:[%s132_s4 + $0x18] sm:$0xff] %v50_v21 }

// kernel: encoder_decoder_resnet_forward.33
= control target key start
LH: loop header
LB: loop body
LE: loop exit
PB: predicated region body
PF: predicated region fallthrough
CT: control target
= control target key end

     0   :  { %v481_v0 = vmov 0   ;;  %vm181_vm0 = vcmask 130048   ;;  %v482_v26 = vmov 0.0   ;;  %s669_s1 = inlined_call_operand.vmem [shape: bf16[144,128], index: 1, kind: input, shape index: {}]   ;;  %s670_s0 = inlined_call_operand.vmem [shape: bf16[128,144], index: 0, kind: input, shape index: {}]   ;;  %s671_s3 = inlined_call_operand.vmem [shape: f32[1,128], index: 3, kind: output, shape index: {1}]   ;;  %s672_s4 = inlined_call_operand.vmem [shape: f32[1,128], index: 4, kind: output, shape index: {2}]   ;;  %s673_s2 = inlined_call_operand.vmem [shape: f32[128,128], index: 2, kind: output, shape index: {0}]  }
   0x1   :  { %206 = vmatprep.subr.bf16.mxu0 %v481_v0  ;;  %v448_v1 = vld [vmem:[%s669_s1] sm:$0xff]   ;;  %428 = vmatprep.subr.bf16.mxu1 %v481_v0  ;;  %v449_v2 = vld [vmem:[%s669_s1 + $0x8] sm:$0xff]   ;;  %v450_v3 = vld [vmem:[%s669_s1 + $0x10] sm:$0xff]   ;;  %19 = vst [vmem:[%s671_s3] sm:$0x1] %v482_v26 }
   0x2   :  { %207 = vmatpush1.bf16.msra.mxu0 %v448_v1  ;;  %437 = vmatpush1.bf16.msra.mxu1 %v448_v1  ;;  %v451_v4 = vld [vmem:[%s669_s1 + $0x18] sm:$0xff]   ;;  %v459_v5 = vld [vmem:[%s670_s0 + $0x4] ss:$8 sps:$4 sm:$0xff]   ;;  %v454_v9 = vld [vmem:[%s669_s1 + $0x30] sm:$0xff]   ;;  %20 = vst [vmem:[%s672_s4] sm:$0x1] %v482_v26 }
   0x3   :  { %208 = vmatprep.subr.bf16.mxu0 %v481_v0  ;;  %429 = vmatprep.subr.bf16.mxu1 %v481_v0  ;;  %v465_v6 = vld [vmem:[%s670_s0 + $0x44] ss:$8 sps:$4 sm:$0xff]   ;;  %v455_v10 = vld [vmem:[%s669_s1 + $0x38] sm:$0xff]   ;;  %v457_v12 = vld [vmem:[%s670_s0] ss:$8 sps:$4 sm:$0xff]  }
   0x4   :  { %420 = vmatprep.mubr.msk.bf16.mxu0 %vm181_vm0, %v459_v5  ;;  %v452_v7 = vld [vmem:[%s669_s1 + $0x20] sm:$0xff]   ;;  %424 = vmatprep.mubr.msk.bf16.mxu1 %vm181_vm0, %v465_v6  ;;  %v453_v8 = vld [vmem:[%s669_s1 + $0x28] sm:$0xff]   ;;  %v460_v14 = vld [vmem:[%s670_s0 + $0x14] ss:$8 sps:$4 sm:$0xff]  }
   0x5   :  { %v456_v11 = vld [vmem:[%s669_s1 + $0x40] sm:$0xff]   ;;  %v469_v15 = vld [vmem:[%s670_s0 + $0x54] ss:$8 sps:$4 sm:$0xff]   ;;  %v462_v16 = vld [vmem:[%s670_s0 + $0x10] ss:$8 sps:$4 sm:$0xff]  }
   0x6   :  { %209 = vmatpush1.bf16.msra.mxu0 %v449_v2  ;;  %438 = vmatpush1.bf16.msra.mxu1 %v449_v2  ;;  %v463_v13 = vld [vmem:[%s670_s0 + $0x40] ss:$8 sps:$4 sm:$0xff]   ;;  %v471_v17 = vld [vmem:[%s670_s0 + $0x50] ss:$8 sps:$4 sm:$0xff]   ;;  %v466_v18 = vld [vmem:[%s670_s0 + $0x24] ss:$8 sps:$4 sm:$0xff]  }
   0x7   :  { %210 = vmatprep.subr.bf16.mxu0 %v481_v0  ;;  %430 = vmatprep.subr.bf16.mxu1 %v481_v0  ;;  %v475_v19 = vld [vmem:[%s670_s0 + $0x64] ss:$8 sps:$4 sm:$0xff]   ;;  %v468_v20 = vld [vmem:[%s670_s0 + $0x20] ss:$8 sps:$4 sm:$0xff]   ;;  %v472_v22 = vld [vmem:[%s670_s0 + $0x34] ss:$8 sps:$4 sm:$0xff]  }
   0x8   :  { %v477_v21 = vld [vmem:[%s670_s0 + $0x60] ss:$8 sps:$4 sm:$0xff]   ;;  %v478_v23 = vld [vmem:[%s670_s0 + $0x74] ss:$8 sps:$4 sm:$0xff]   ;;  %v474_v24 = vld [vmem:[%s670_s0 + $0x30] ss:$8 sps:$4 sm:$0xff]  }
   0x9   :  { %v480_v25 = vld [vmem:[%s670_s0 + $0x70] ss:$8 sps:$4 sm:$0xff]  }
   0xa   :  { %211 = vmatpush1.bf16.msra.mxu0 %v450_v3  ;;  %439 = vmatpush1.bf16.msra.mxu1 %v450_v3 }
   0xb   :  { %212 = vmatprep.subr.bf16.mxu0 %v481_v0  ;;  %431 = vmatprep.subr.bf16.mxu1 %v481_v0 }
   0xe   :  { %213 = vmatpush1.bf16.msra.mxu0 %v451_v4  ;;  %440 = vmatpush1.bf16.msra.mxu1 %v451_v4 }
   0xf   :  { %214 = vmatprep.subr.bf16.mxu0 %v481_v0  ;;  %432 = vmatprep.subr.bf16.mxu1 %v481_v0 }
  0x12   :  { %215 = vmatpush1.bf16.msra.mxu0 %v452_v7  ;;  %441 = vmatpush1.bf16.msra.mxu1 %v452_v7 }
  0x13   :  { %216 = vmatprep.subr.bf16.mxu0 %v481_v0  ;;  %433 = vmatprep.subr.bf16.mxu1 %v481_v0 }
  0x16   :  { %217 = vmatpush1.bf16.msra.mxu0 %v453_v8  ;;  %442 = vmatpush1.bf16.msra.mxu1 %v453_v8 }
  0x17   :  { %218 = vmatprep.subr.bf16.mxu0 %v481_v0  ;;  %434 = vmatprep.subr.bf16.mxu1 %v481_v0 }
  0x1a   :  { %219 = vmatpush1.bf16.msra.mxu0 %v454_v9  ;;  %443 = vmatpush1.bf16.msra.mxu1 %v454_v9 }
  0x1b   :  { %220 = vmatprep.subr.bf16.mxu0 %v481_v0  ;;  %435 = vmatprep.subr.bf16.mxu1 %v481_v0 }
  0x1e   :  { %221 = vmatpush1.bf16.msra.mxu0 %v455_v10  ;;  %444 = vmatpush1.bf16.msra.mxu1 %v455_v10 }
  0x1f   :  { %222 = vmatprep.subr.bf16.mxu0 %v481_v0  ;;  %436 = vmatprep.subr.bf16.mxu1 %v481_v0 }
  0x22   :  { %223 = vmatpush1.bf16.msra.mxu0 %v456_v11  ;;  %445 = vmatpush1.bf16.msra.mxu1 %v456_v11 }
  0x25   :  { %239 = vmatmul.mubr.bf16.vlgmr.msra.gmra.mrb[0].mxu0 %v457_v12  ;;  %271 = vmatmul.mubr.bf16.vlgmr.msra.gmra.mrb[0].mxu1 %v463_v13 }
  0x26   :  { %421 = vmatprep.mubr.msk.bf16.mxu0 %vm181_vm0, %v460_v14  ;;  %425 = vmatprep.mubr.msk.bf16.mxu1 %vm181_vm0, %v469_v15 }
  0x2d   :  { %247 = vmatmul.mubr.bf16.gmra.mrb[4].mxu0 %v462_v16  ;;  %279 = vmatmul.mubr.bf16.gmra.mrb[4].mxu1 %v471_v17 }
  0x2e   :  { %422 = vmatprep.mubr.msk.bf16.mxu0 %vm181_vm0, %v466_v18  ;;  %426 = vmatprep.mubr.msk.bf16.mxu1 %vm181_vm0, %v475_v19 }
  0x35   :  { %255 = vmatmul.mubr.bf16.gmra.mrb[8].mxu0 %v468_v20  ;;  %287 = vmatmul.mubr.bf16.gmra.mrb[8].mxu1 %v477_v21 }
  0x36   :  { %423 = vmatprep.mubr.msk.bf16.mxu0 %vm181_vm0, %v472_v22  ;;  %427 = vmatprep.mubr.msk.bf16.mxu1 %vm181_vm0, %v478_v23 }
  0x3d   :  { %263 = vmatmul.mubr.bf16.gmra.mrb[12].mxu0 %v474_v24  ;;  %295 = vmatmul.mubr.bf16.gmra.mrb[12].mxu1 %v480_v25 }
  0xf8   :  { %v240_v27 = vpop.f32.mrb[0].mxu0  ;;  %v597_v28 = vpop.f32.mrb[0].mxu1 }
  0xf9   :  { %303 = vst [vmem:[%s673_s2] sm:$0xff] %v240_v27  ;;  %v242_v29 = vpop.f32.mrb[1].mxu0  ;;  %311 = vst [vmem:[%s673_s2 + $0x40] sm:$0xff] %v597_v28  ;;  %v274_v30 = vpop.f32.mrb[1].mxu1  ;;  %v344_v33 = vmul.f32 %v240_v27, %v240_v27  ;;  %v352_v16 = vmul.f32 %v597_v28, %v597_v28 }
  0xfa   :  { %v243_v31 = vpop.f32.mrb[2].mxu0  ;;  %v606_v32 = vpop.f32.mrb[2].mxu1 }
  0xfb   :  { %304 = vst [vmem:[%s673_s2 + $0x8] sm:$0xff] %v243_v31  ;;  %v320_v34 = vadd.f32 %v243_v31, %v240_v27  ;;  %v345_v35 = vmul.f32 %v243_v31, %v243_v31  ;;  %v245_v36 = vpop.f32.mrb[3].mxu0  ;;  %312 = vst [vmem:[%s673_s2 + $0x48] sm:$0xff] %v606_v32  ;;  %v277_v37 = vpop.f32.mrb[3].mxu1  ;;  %v353_v19 = vmul.f32 %v606_v32, %v606_v32 }
  0xfd   :  { %v360_v38 = vadd.f32 %v345_v35, %v344_v33 }
 0x100   :  { %v248_v39 = vpop.f32.mrb[4].mxu0  ;;  %v280_v40 = vpop.f32.mrb[4].mxu1 }
 0x101   :  { %305 = vst [vmem:[%s673_s2 + $0x10] sm:$0xff] %v248_v39  ;;  %v321_v41 = vadd.f32 %v320_v34, %v248_v39  ;;  %v346_v42 = vmul.f32 %v248_v39, %v248_v39  ;;  %v250_v43 = vpop.f32.mrb[5].mxu0  ;;  %313 = vst [vmem:[%s673_s2 + $0x50] sm:$0xff] %v280_v40  ;;  %v282_v44 = vpop.f32.mrb[5].mxu1  ;;  %v354_v22 = vmul.f32 %v280_v40, %v280_v40 }
 0x102   :  { %v251_v45 = vpop.f32.mrb[6].mxu0  ;;  %v283_v46 = vpop.f32.mrb[6].mxu1 }
 0x103   :  { %v361_v47 = vadd.f32 %v360_v38, %v346_v42  ;;  %306 = vst [vmem:[%s673_s2 + $0x18] sm:$0xff] %v251_v45  ;;  %v322_v48 = vadd.f32 %v321_v41, %v251_v45  ;;  %v347_v49 = vmul.f32 %v251_v45, %v251_v45  ;;  %v253_v50 = vpop.f32.mrb[7].mxu0  ;;  %314 = vst [vmem:[%s673_s2 + $0x58] sm:$0xff] %v283_v46  ;;  %v285_v51 = vpop.f32.mrb[7].mxu1 }
 0x104   :  { %v355_v25 = vmul.f32 %v283_v46, %v283_v46  ;;  %v319_v50 = vld [vmem:[%s671_s3] sm:$0x1] }
 0x105   :  { %v362_v52 = vadd.f32 %v361_v47, %v347_v49 }
 0x108   :  { %v256_v53 = vpop.f32.mrb[8].mxu0  ;;  %v288_v54 = vpop.f32.mrb[8].mxu1 }
 0x109   :  { %307 = vst [vmem:[%s673_s2 + $0x20] sm:$0xff] %v256_v53  ;;  %v323_v55 = vadd.f32 %v322_v48, %v256_v53  ;;  %v348_v56 = vmul.f32 %v256_v53, %v256_v53  ;;  %v258_v57 = vpop.f32.mrb[9].mxu0  ;;  %315 = vst [vmem:[%s673_s2 + $0x60] sm:$0xff] %v288_v54  ;;  %v290_v58 = vpop.f32.mrb[9].mxu1  ;;  %v356_v30 = vmul.f32 %v288_v54, %v288_v54  ;;  %v343_v53 = vld [vmem:[%s672_s4] sm:$0x1] }
 0x10a   :  { %v259_v59 = vpop.f32.mrb[10].mxu0  ;;  %v291_v60 = vpop.f32.mrb[10].mxu1 }
 0x10b   :  { %v363_v61 = vadd.f32 %v362_v52, %v348_v56  ;;  %308 = vst [vmem:[%s673_s2 + $0x28] sm:$0xff] %v259_v59  ;;  %v324_v62 = vadd.f32 %v323_v55, %v259_v59  ;;  %v349_v63 = vmul.f32 %v259_v59, %v259_v59  ;;  %v261_v0 = vpop.f32.mrb[11].mxu0  ;;  %316 = vst [vmem:[%s673_s2 + $0x68] sm:$0xff] %v291_v60  ;;  %v293_v1 = vpop.f32.mrb[11].mxu1 }
 0x10c   :  { %v357_v35 = vmul.f32 %v291_v60, %v291_v60 }
 0x10d   :  { %v364_v2 = vadd.f32 %v363_v61, %v349_v63 }
 0x110   :  { %v264_v3 = vpop.f32.mrb[12].mxu0  ;;  %v296_v4 = vpop.f32.mrb[12].mxu1 }
 0x111   :  { %309 = vst [vmem:[%s673_s2 + $0x30] sm:$0xff] %v264_v3  ;;  %v325_v5 = vadd.f32 %v324_v62, %v264_v3  ;;  %v350_v6 = vmul.f32 %v264_v3, %v264_v3  ;;  %v266_v7 = vpop.f32.mrb[13].mxu0  ;;  %317 = vst [vmem:[%s673_s2 + $0x70] sm:$0xff] %v296_v4  ;;  %v298_v8 = vpop.f32.mrb[13].mxu1 }
 0x112   :  { %v267_v9 = vpop.f32.mrb[14].mxu0  ;;  %v299_v10 = vpop.f32.mrb[14].mxu1 }
 0x113   :  { %v365_v11 = vadd.f32 %v364_v2, %v350_v6  ;;  %310 = vst [vmem:[%s673_s2 + $0x38] sm:$0xff] %v267_v9  ;;  %v326_v12 = vadd.f32 %v325_v5, %v267_v9  ;;  %v351_v13 = vmul.f32 %v267_v9, %v267_v9  ;;  %v269_v14 = vpop.f32.mrb[15].mxu0  ;;  %318 = vst [vmem:[%s673_s2 + $0x78] sm:$0xff] %v299_v10  ;;  %v301_v15 = vpop.f32.mrb[15].mxu1 }
 0x114   :  { %v359_v41 = vmul.f32 %v299_v10, %v299_v10 }
 0x115   :  { %v327_v17 = vadd.f32 %v326_v12, %v597_v28  ;;  %v366_v18 = vadd.f32 %v365_v11, %v351_v13  ;;  %v358_v28 = vmul.f32 %v296_v4, %v296_v4 }
 0x117   :  { %v328_v20 = vadd.f32 %v327_v17, %v606_v32  ;;  %v367_v21 = vadd.f32 %v366_v18, %v352_v16 }
 0x119   :  { %v368_v23 = vadd.f32 %v367_v21, %v353_v19  ;;  %v329_v24 = vadd.f32 %v328_v20, %v280_v40 }
 0x11b   :  { %v330_v26 = vadd.f32 %v329_v24, %v283_v46  ;;  %v369_v27 = vadd.f32 %v368_v23, %v354_v22 }
 0x11d   :  { %v331_v29 = vadd.f32 %v330_v26, %v288_v54  ;;  %v370_v31 = vadd.f32 %v369_v27, %v355_v25 }
 0x11f   :  { %v371_v33 = vadd.f32 %v370_v31, %v356_v30  ;;  %v332_v34 = vadd.f32 %v331_v29, %v291_v60 }
 0x121   :  { %v372_v36 = vadd.f32 %v371_v33, %v357_v35  ;;  %v333_v37 = vadd.f32 %v332_v34, %v296_v4 }
 0x123   :  { %v373_v38 = vadd.f32 %v372_v36, %v358_v28  ;;  %v334_v39 = vadd.f32 %v333_v37, %v299_v10 }
 0x125   :  { %v335_v32 = vrot.slane %v334_v39, 4  ;;  %v374_v42 = vadd.f32 %v373_v38, %v359_v41 }
 0x127   :  { %v336_v43 = vadd.f32 %v335_v32, %v334_v39  ;;  %v375_v44 = vrot.slane %v374_v42, 4 }
 0x129   :  { %v337_v40 = vrot.slane %v336_v43, 2  ;;  %v376_v45 = vadd.f32 %v375_v44, %v374_v42 }
 0x12b   :  { %v338_v46 = vadd.f32 %v337_v40, %v336_v43  ;;  %v377_v47 = vrot.slane %v376_v45, 2 }
 0x12d   :  { %v339_v48 = vrot.slane %v338_v46, 1  ;;  %v378_v49 = vadd.f32 %v377_v47, %v376_v45 }
 0x12f   :  { %v340_v51 = vadd.f32 %v339_v48, %v338_v46  ;;  %v379_v52 = vrot.slane %v378_v49, 1 }
 0x131   :  { %v341_v54 = vadd.f32 %v340_v51, %v319_v50  ;;  %v380_v55 = vadd.f32 %v379_v52, %v378_v49 }
 0x133   :  { %342 = vst [vmem:[%s671_s3] sm:$0x1] %v341_v54  ;;  %v381_v56 = vadd.f32 %v380_v55, %v343_v53 }
 0x135   :  { %382 = vst [vmem:[%s672_s4] sm:$0x1] %v381_v56 }

// kernel: encoder_decoder_resnet_forward.35
= control target key start
LH: loop header
LB: loop body
LE: loop exit
PB: predicated region body
PF: predicated region fallthrough
CT: control target
= control target key end

     0   :  { %v1345_v0 = vmov 0   ;;  %vm445_vm0 = vcmask 130048   ;;  %s2025_s1 = inlined_call_operand.vmem [shape: bf16[144,128], index: 1, kind: input, shape index: {}]   ;;  %s2026_s0 = inlined_call_operand.vmem [shape: bf16[512,144], index: 0, kind: input, shape index: {}]   ;;  %s2027_s2 = inlined_call_operand.vmem [shape: f32[512,128], index: 2, kind: output, shape index: {0}]   ;;  %s2028_s3 = inlined_call_operand.vmem [shape: f32[1,128], index: 3, kind: output, shape index: {1}]   ;;  %s2029_s4 = inlined_call_operand.vmem [shape: f32[1,128], index: 4, kind: output, shape index: {2}]  }
   0x1   :  { %542 = vmatprep.subr.bf16.mxu0 %v1345_v0  ;;  %v1240_v1 = vld [vmem:[%s2025_s1] sm:$0xff]   ;;  %1220 = vmatprep.subr.bf16.mxu1 %v1345_v0  ;;  %v1241_v2 = vld [vmem:[%s2025_s1 + $0x8] sm:$0xff]   ;;  %v1242_v3 = vld [vmem:[%s2025_s1 + $0x10] sm:$0xff]  }
   0x2   :  { %543 = vmatpush1.bf16.msra.mxu0 %v1240_v1  ;;  %1229 = vmatpush1.bf16.msra.mxu1 %v1240_v1  ;;  %v1243_v4 = vld [vmem:[%s2025_s1 + $0x18] sm:$0xff]   ;;  %v1251_v5 = vld [vmem:[%s2026_s0 + $0x4] ss:$8 sps:$4 sm:$0xff]   ;;  %v1246_v9 = vld [vmem:[%s2025_s1 + $0x30] sm:$0xff]  }
   0x3   :  { %544 = vmatprep.subr.bf16.mxu0 %v1345_v0  ;;  %1221 = vmatprep.subr.bf16.mxu1 %v1345_v0  ;;  %v1244_v6 = vld [vmem:[%s2025_s1 + $0x20] sm:$0xff]   ;;  %v1245_v7 = vld [vmem:[%s2025_s1 + $0x28] sm:$0xff]   ;;  %v1247_v10 = vld [vmem:[%s2025_s1 + $0x38] sm:$0xff]  }
   0x4   :  { %1188 = vmatprep.mubr.msk.bf16.mxu0 %vm445_vm0, %v1251_v5  ;;  %v1275_v8 = vld [vmem:[%s2026_s0 + $0x104] ss:$8 sps:$4 sm:$0xff]   ;;  %v1249_v12 = vld [vmem:[%s2026_s0] ss:$8 sps:$4 sm:$0xff]   ;;  %v1252_v13 = vld [vmem:[%s2026_s0 + $0x14] ss:$8 sps:$4 sm:$0xff]  }
   0x5   :  { %1204 = vmatprep.mubr.msk.bf16.mxu1 %vm445_vm0, %v1275_v8  ;;  %v1248_v11 = vld [vmem:[%s2025_s1 + $0x40] sm:$0xff]   ;;  %v1279_v15 = vld [vmem:[%s2026_s0 + $0x114] ss:$8 sps:$4 sm:$0xff]   ;;  %v1254_v16 = vld [vmem:[%s2026_s0 + $0x10] ss:$8 sps:$4 sm:$0xff]  }
   0x6   :  { %545 = vmatpush1.bf16.msra.mxu0 %v1241_v2  ;;  %1230 = vmatpush1.bf16.msra.mxu1 %v1241_v2  ;;  %v1273_v14 = vld [vmem:[%s2026_s0 + $0x100] ss:$8 sps:$4 sm:$0xff]   ;;  %v1255_v17 = vld [vmem:[%s2026_s0 + $0x24] ss:$8 sps:$4 sm:$0xff]   ;;  %v1281_v18 = vld [vmem:[%s2026_s0 + $0x110] ss:$8 sps:$4 sm:$0xff]  }
   0x7   :  { %546 = vmatprep.subr.bf16.mxu0 %v1345_v0  ;;  %1222 = vmatprep.subr.bf16.mxu1 %v1345_v0  ;;  %v1285_v19 = vld [vmem:[%s2026_s0 + $0x124] ss:$8 sps:$4 sm:$0xff]   ;;  %v1257_v20 = vld [vmem:[%s2026_s0 + $0x20] ss:$8 sps:$4 sm:$0xff]   ;;  %v1258_v21 = vld [vmem:[%s2026_s0 + $0x34] ss:$8 sps:$4 sm:$0xff]  }
   0x8   :  { %v1287_v22 = vld [vmem:[%s2026_s0 + $0x120] ss:$8 sps:$4 sm:$0xff]   ;;  %v1291_v23 = vld [vmem:[%s2026_s0 + $0x134] ss:$8 sps:$4 sm:$0xff]   ;;  %v1260_v24 = vld [vmem:[%s2026_s0 + $0x30] ss:$8 sps:$4 sm:$0xff]  }
   0x9   :  { %v1293_v25 = vld [vmem:[%s2026_s0 + $0x130] ss:$8 sps:$4 sm:$0xff]   ;;  %v1261_v26 = vld [vmem:[%s2026_s0 + $0x44] ss:$8 sps:$4 sm:$0xff]   ;;  %v1263_v28 = vld [vmem:[%s2026_s0 + $0x40] ss:$8 sps:$4 sm:$0xff]  }
   0xa   :  { %547 = vmatpush1.bf16.msra.mxu0 %v1242_v3  ;;  %1231 = vmatpush1.bf16.msra.mxu1 %v1242_v3  ;;  %v1297_v27 = vld [vmem:[%s2026_s0 + $0x144] ss:$8 sps:$4 sm:$0xff]   ;;  %v1299_v29 = vld [vmem:[%s2026_s0 + $0x140] ss:$8 sps:$4 sm:$0xff]   ;;  %v1264_v30 = vld [vmem:[%s2026_s0 + $0x54] ss:$8 sps:$4 sm:$0xff]  }
   0xb   :  { %548 = vmatprep.subr.bf16.mxu0 %v1345_v0  ;;  %1223 = vmatprep.subr.bf16.mxu1 %v1345_v0  ;;  %v1303_v31 = vld [vmem:[%s2026_s0 + $0x154] ss:$8 sps:$4 sm:$0xff]   ;;  %v1266_v32 = vld [vmem:[%s2026_s0 + $0x50] ss:$8 sps:$4 sm:$0xff]   ;;  %v1267_v34 = vld [vmem:[%s2026_s0 + $0x64] ss:$8 sps:$4 sm:$0xff]  }
   0xc   :  { %v1305_v33 = vld [vmem:[%s2026_s0 + $0x150] ss:$8 sps:$4 sm:$0xff]   ;;  %v1309_v35 = vld [vmem:[%s2026_s0 + $0x164] ss:$8 sps:$4 sm:$0xff]   ;;  %v1269_v36 = vld [vmem:[%s2026_s0 + $0x60] ss:$8 sps:$4 sm:$0xff]  }
   0xd   :  { %v1311_v37 = vld [vmem:[%s2026_s0 + $0x160] ss:$8 sps:$4 sm:$0xff]   ;;  %v1270_v38 = vld [vmem:[%s2026_s0 + $0x74] ss:$8 sps:$4 sm:$0xff]   ;;  %v1272_v40 = vld [vmem:[%s2026_s0 + $0x70] ss:$8 sps:$4 sm:$0xff]  }
   0xe   :  { %549 = vmatpush1.bf16.msra.mxu0 %v1243_v4  ;;  %1232 = vmatpush1.bf16.msra.mxu1 %v1243_v4  ;;  %v1315_v39 = vld [vmem:[%s2026_s0 + $0x174] ss:$8 sps:$4 sm:$0xff]   ;;  %v1317_v41 = vld [vmem:[%s2026_s0 + $0x170] ss:$8 sps:$4 sm:$0xff]   ;;  %v1276_v42 = vld [vmem:[%s2026_s0 + $0x84] ss:$8 sps:$4 sm:$0xff]  }
   0xf   :  { %550 = vmatprep.subr.bf16.mxu0 %v1345_v0  ;;  %1224 = vmatprep.subr.bf16.mxu1 %v1345_v0  ;;  %v1321_v43 = vld [vmem:[%s2026_s0 + $0x184] ss:$8 sps:$4 sm:$0xff]   ;;  %v1278_v44 = vld [vmem:[%s2026_s0 + $0x80] ss:$8 sps:$4 sm:$0xff]   ;;  %v1282_v46 = vld [vmem:[%s2026_s0 + $0x94] ss:$8 sps:$4 sm:$0xff]  }
  0x10   :  { %v1323_v45 = vld [vmem:[%s2026_s0 + $0x180] ss:$8 sps:$4 sm:$0xff]   ;;  %v1324_v47 = vld [vmem:[%s2026_s0 + $0x194] ss:$8 sps:$4 sm:$0xff]   ;;  %v1284_v48 = vld [vmem:[%s2026_s0 + $0x90] ss:$8 sps:$4 sm:$0xff]  }
  0x11   :  { %v1326_v49 = vld [vmem:[%s2026_s0 + $0x190] ss:$8 sps:$4 sm:$0xff]   ;;  %v1288_v50 = vld [vmem:[%s2026_s0 + $0xa4] ss:$8 sps:$4 sm:$0xff]   ;;  %v1290_v52 = vld [vmem:[%s2026_s0 + $0xa0] ss:$8 sps:$4 sm:$0xff]  }
  0x12   :  { %551 = vmatpush1.bf16.msra.mxu0 %v1244_v6  ;;  %1233 = vmatpush1.bf16.msra.mxu1 %v1244_v6  ;;  %v1327_v51 = vld [vmem:[%s2026_s0 + $0x1a4] ss:$8 sps:$4 sm:$0xff]   ;;  %v1329_v53 = vld [vmem:[%s2026_s0 + $0x1a0] ss:$8 sps:$4 sm:$0xff]   ;;  %v1294_v54 = vld [vmem:[%s2026_s0 + $0xb4] ss:$8 sps:$4 sm:$0xff]  }
  0x13   :  { %552 = vmatprep.subr.bf16.mxu0 %v1345_v0  ;;  %1225 = vmatprep.subr.bf16.mxu1 %v1345_v0  ;;  %v1330_v55 = vld [vmem:[%s2026_s0 + $0x1b4] ss:$8 sps:$4 sm:$0xff]   ;;  %v1296_v56 = vld [vmem:[%s2026_s0 + $0xb0] ss:$8 sps:$4 sm:$0xff]   ;;  %v1300_v58 = vld [vmem:[%s2026_s0 + $0xc4] ss:$8 sps:$4 sm:$0xff]  }
  0x14   :  { %v1332_v57 = vld [vmem:[%s2026_s0 + $0x1b0] ss:$8 sps:$4 sm:$0xff]   ;;  %v1333_v59 = vld [vmem:[%s2026_s0 + $0x1c4] ss:$8 sps:$4 sm:$0xff]   ;;  %v1302_v60 = vld [vmem:[%s2026_s0 + $0xc0] ss:$8 sps:$4 sm:$0xff]  }
  0x15   :  { %v1335_v61 = vld [vmem:[%s2026_s0 + $0x1c0] ss:$8 sps:$4 sm:$0xff]   ;;  %v1306_v62 = vld [vmem:[%s2026_s0 + $0xd4] ss:$8 sps:$4 sm:$0xff]   ;;  %v1338_v1 = vld [vmem:[%s2026_s0 + $0x1d0] ss:$8 sps:$4 sm:$0xff]  }
  0x16   :  { %553 = vmatpush1.bf16.msra.mxu0 %v1245_v7  ;;  %1234 = vmatpush1.bf16.msra.mxu1 %v1245_v7  ;;  %v1336_v63 = vld [vmem:[%s2026_s0 + $0x1d4] ss:$8 sps:$4 sm:$0xff]   ;;  %v1312_v2 = vld [vmem:[%s2026_s0 + $0xe4] ss:$8 sps:$4 sm:$0xff]   ;;  %v1314_v4 = vld [vmem:[%s2026_s0 + $0xe0] ss:$8 sps:$4 sm:$0xff]  }
  0x17   :  { %554 = vmatprep.subr.bf16.mxu0 %v1345_v0  ;;  %1226 = vmatprep.subr.bf16.mxu1 %v1345_v0  ;;  %v1339_v3 = vld [vmem:[%s2026_s0 + $0x1e4] ss:$8 sps:$4 sm:$0xff]   ;;  %v1341_v5 = vld [vmem:[%s2026_s0 + $0x1e0] ss:$8 sps:$4 sm:$0xff]   ;;  %v1318_v6 = vld [vmem:[%s2026_s0 + $0xf4] ss:$8 sps:$4 sm:$0xff]  }
  0x18   :  { %v1342_v7 = vld [vmem:[%s2026_s0 + $0x1f4] ss:$8 sps:$4 sm:$0xff]   ;;  %v1320_v8 = vld [vmem:[%s2026_s0 + $0xf0] ss:$8 sps:$4 sm:$0xff]  }
  0x1a   :  { %555 = vmatpush1.bf16.msra.mxu0 %v1246_v9  ;;  %1235 = vmatpush1.bf16.msra.mxu1 %v1246_v9  ;;  %v1344_v9 = vld [vmem:[%s2026_s0 + $0x1f0] ss:$8 sps:$4 sm:$0xff]  }
  0x1b   :  { %556 = vmatprep.subr.bf16.mxu0 %v1345_v0  ;;  %1227 = vmatprep.subr.bf16.mxu1 %v1345_v0 }
  0x1e   :  { %557 = vmatpush1.bf16.msra.mxu0 %v1247_v10  ;;  %1236 = vmatpush1.bf16.msra.mxu1 %v1247_v10 }
  0x1f   :  { %558 = vmatprep.subr.bf16.mxu0 %v1345_v0  ;;  %1228 = vmatprep.subr.bf16.mxu1 %v1345_v0  ;;  %v1308_v0 = vld [vmem:[%s2026_s0 + $0xd0] ss:$8 sps:$4 sm:$0xff]  }
  0x22   :  { %559 = vmatpush1.bf16.msra.mxu0 %v1248_v11  ;;  %1237 = vmatpush1.bf16.msra.mxu1 %v1248_v11 }
  0x25   :  { %575 = vmatmul.mubr.bf16.vlgmr.msra.gmra.mrb[0].mxu0 %v1249_v12  ;;  %703 = vmatmul.mubr.bf16.vlgmr.msra.gmra.mrb[0].mxu1 %v1273_v14 }
  0x26   :  { %1189 = vmatprep.mubr.msk.bf16.mxu0 %vm445_vm0, %v1252_v13  ;;  %1205 = vmatprep.mubr.msk.bf16.mxu1 %vm445_vm0, %v1279_v15 }
  0x2d   :  { %583 = vmatmul.mubr.bf16.gmra.mrb[4].mxu0 %v1254_v16  ;;  %711 = vmatmul.mubr.bf16.gmra.mrb[4].mxu1 %v1281_v18 }
  0x2e   :  { %1190 = vmatprep.mubr.msk.bf16.mxu0 %vm445_vm0, %v1255_v17  ;;  %1206 = vmatprep.mubr.msk.bf16.mxu1 %vm445_vm0, %v1285_v19 }
  0x35   :  { %591 = vmatmul.mubr.bf16.gmra.mrb[8].mxu0 %v1257_v20  ;;  %719 = vmatmul.mubr.bf16.gmra.mrb[8].mxu1 %v1287_v22 }
  0x36   :  { %1191 = vmatprep.mubr.msk.bf16.mxu0 %vm445_vm0, %v1258_v21  ;;  %1207 = vmatprep.mubr.msk.bf16.mxu1 %vm445_vm0, %v1291_v23 }
  0x3d   :  { %599 = vmatmul.mubr.bf16.gmra.mrb[12].mxu0 %v1260_v24  ;;  %727 = vmatmul.mubr.bf16.gmra.mrb[12].mxu1 %v1293_v25 }
  0x3e   :  { %1192 = vmatprep.mubr.msk.bf16.mxu0 %vm445_vm0, %v1261_v26  ;;  %1208 = vmatprep.mubr.msk.bf16.mxu1 %vm445_vm0, %v1297_v27 }
  0x45   :  { %607 = vmatmul.mubr.bf16.gmra.mrb[16].mxu0 %v1263_v28  ;;  %735 = vmatmul.mubr.bf16.gmra.mrb[16].mxu1 %v1299_v29 }
  0x46   :  { %1193 = vmatprep.mubr.msk.bf16.mxu0 %vm445_vm0, %v1264_v30  ;;  %1209 = vmatprep.mubr.msk.bf16.mxu1 %vm445_vm0, %v1303_v31 }
  0x4d   :  { %615 = vmatmul.mubr.bf16.gmra.mrb[20].mxu0 %v1266_v32  ;;  %743 = vmatmul.mubr.bf16.gmra.mrb[20].mxu1 %v1305_v33 }
  0x4e   :  { %1194 = vmatprep.mubr.msk.bf16.mxu0 %vm445_vm0, %v1267_v34  ;;  %1210 = vmatprep.mubr.msk.bf16.mxu1 %vm445_vm0, %v1309_v35 }
  0x55   :  { %623 = vmatmul.mubr.bf16.gmra.mrb[24].mxu0 %v1269_v36  ;;  %751 = vmatmul.mubr.bf16.gmra.mrb[24].mxu1 %v1311_v37 }
  0x56   :  { %1195 = vmatprep.mubr.msk.bf16.mxu0 %vm445_vm0, %v1270_v38  ;;  %1211 = vmatprep.mubr.msk.bf16.mxu1 %vm445_vm0, %v1315_v39 }
  0x5d   :  { %631 = vmatmul.mubr.bf16.gmra.mrb[28].mxu0 %v1272_v40  ;;  %759 = vmatmul.mubr.bf16.gmra.mrb[28].mxu1 %v1317_v41 }
  0x5e   :  { %1196 = vmatprep.mubr.msk.bf16.mxu0 %vm445_vm0, %v1276_v42  ;;  %1212 = vmatprep.mubr.msk.bf16.mxu1 %vm445_vm0, %v1321_v43 }
  0x65   :  { %639 = vmatmul.mubr.bf16.gmra.mrb[32].mxu0 %v1278_v44  ;;  %767 = vmatmul.mubr.bf16.gmra.mrb[32].mxu1 %v1323_v45 }
  0x66   :  { %1197 = vmatprep.mubr.msk.bf16.mxu0 %vm445_vm0, %v1282_v46  ;;  %1213 = vmatprep.mubr.msk.bf16.mxu1 %vm445_vm0, %v1324_v47 }
  0x6d   :  { %647 = vmatmul.mubr.bf16.gmra.mrb[36].mxu0 %v1284_v48  ;;  %775 = vmatmul.mubr.bf16.gmra.mrb[36].mxu1 %v1326_v49 }
  0x6e   :  { %1198 = vmatprep.mubr.msk.bf16.mxu0 %vm445_vm0, %v1288_v50  ;;  %1214 = vmatprep.mubr.msk.bf16.mxu1 %vm445_vm0, %v1327_v51 }
  0x75   :  { %655 = vmatmul.mubr.bf16.gmra.mrb[40].mxu0 %v1290_v52  ;;  %783 = vmatmul.mubr.bf16.gmra.mrb[40].mxu1 %v1329_v53 }
  0x76   :  { %1199 = vmatprep.mubr.msk.bf16.mxu0 %vm445_vm0, %v1294_v54  ;;  %1215 = vmatprep.mubr.msk.bf16.mxu1 %vm445_vm0, %v1330_v55 }
  0x7d   :  { %663 = vmatmul.mubr.bf16.gmra.mrb[44].mxu0 %v1296_v56  ;;  %791 = vmatmul.mubr.bf16.gmra.mrb[44].mxu1 %v1332_v57 }
  0x7e   :  { %1200 = vmatprep.mubr.msk.bf16.mxu0 %vm445_vm0, %v1300_v58  ;;  %1216 = vmatprep.mubr.msk.bf16.mxu1 %vm445_vm0, %v1333_v59 }
  0x85   :  { %671 = vmatmul.mubr.bf16.gmra.mrb[48].mxu0 %v1302_v60  ;;  %799 = vmatmul.mubr.bf16.gmra.mrb[48].mxu1 %v1335_v61 }
  0x86   :  { %1201 = vmatprep.mubr.msk.bf16.mxu0 %vm445_vm0, %v1306_v62  ;;  %1217 = vmatprep.mubr.msk.bf16.mxu1 %vm445_vm0, %v1336_v63 }
  0x8d   :  { %679 = vmatmul.mubr.bf16.gmra.mrb[52].mxu0 %v1308_v0  ;;  %807 = vmatmul.mubr.bf16.gmra.mrb[52].mxu1 %v1338_v1 }
  0x8e   :  { %1202 = vmatprep.mubr.msk.bf16.mxu0 %vm445_vm0, %v1312_v2  ;;  %1218 = vmatprep.mubr.msk.bf16.mxu1 %vm445_vm0, %v1339_v3 }
  0x95   :  { %687 = vmatmul.mubr.bf16.gmra.mrb[56].mxu0 %v1314_v4  ;;  %815 = vmatmul.mubr.bf16.gmra.mrb[56].mxu1 %v1341_v5 }
  0x96   :  { %1203 = vmatprep.mubr.msk.bf16.mxu0 %vm445_vm0, %v1318_v6  ;;  %1219 = vmatprep.mubr.msk.bf16.mxu1 %vm445_vm0, %v1342_v7 }
  0x9d   :  { %695 = vmatmul.mubr.bf16.gmra.mrb[60].mxu0 %v1320_v8  ;;  %823 = vmatmul.mubr.bf16.gmra.mrb[60].mxu1 %v1344_v9 }
  0xf8   :  { %v576_v10 = vpop.f32.mrb[0].mxu0  ;;  %v1623_v11 = vpop.f32.mrb[0].mxu1 }
  0xf9   :  { %831 = vst [vmem:[%s2027_s2] sm:$0xff] %v576_v10  ;;  %v578_v12 = vpop.f32.mrb[1].mxu0  ;;  %863 = vst [vmem:[%s2027_s2 + $0x100] sm:$0xff] %v1623_v11  ;;  %v706_v13 = vpop.f32.mrb[1].mxu1  ;;  %v968_v16 = vmul.f32 %v576_v10, %v576_v10 }
  0xfa   :  { %v579_v14 = vpop.f32.mrb[2].mxu0  ;;  %v1632_v15 = vpop.f32.mrb[2].mxu1 }
  0xfb   :  { %832 = vst [vmem:[%s2027_s2 + $0x8] sm:$0xff] %v579_v14  ;;  %v896_v17 = vadd.f32 %v579_v14, %v576_v10  ;;  %v969_v18 = vmul.f32 %v579_v14, %v579_v14  ;;  %v581_v19 = vpop.f32.mrb[3].mxu0  ;;  %864 = vst [vmem:[%s2027_s2 + $0x108] sm:$0xff] %v1632_v15  ;;  %v709_v20 = vpop.f32.mrb[3].mxu1 }
  0xfd   :  { %v1032_v21 = vadd.f32 %v969_v18, %v968_v16 }
 0x100   :  { %v584_v22 = vpop.f32.mrb[4].mxu0  ;;  %v1641_v23 = vpop.f32.mrb[4].mxu1 }
 0x101   :  { %833 = vst [vmem:[%s2027_s2 + $0x10] sm:$0xff] %v584_v22  ;;  %v897_v24 = vadd.f32 %v896_v17, %v584_v22  ;;  %v970_v25 = vmul.f32 %v584_v22, %v584_v22  ;;  %v586_v26 = vpop.f32.mrb[5].mxu0  ;;  %865 = vst [vmem:[%s2027_s2 + $0x110] sm:$0xff] %v1641_v23  ;;  %v714_v27 = vpop.f32.mrb[5].mxu1 }
 0x102   :  { %v587_v28 = vpop.f32.mrb[6].mxu0  ;;  %v1650_v29 = vpop.f32.mrb[6].mxu1 }
 0x103   :  { %v1033_v30 = vadd.f32 %v1032_v21, %v970_v25  ;;  %834 = vst [vmem:[%s2027_s2 + $0x18] sm:$0xff] %v587_v28  ;;  %v898_v31 = vadd.f32 %v897_v24, %v587_v28  ;;  %v971_v32 = vmul.f32 %v587_v28, %v587_v28  ;;  %v589_v33 = vpop.f32.mrb[7].mxu0  ;;  %866 = vst [vmem:[%s2027_s2 + $0x118] sm:$0xff] %v1650_v29  ;;  %v717_v34 = vpop.f32.mrb[7].mxu1 }
 0x105   :  { %v1034_v35 = vadd.f32 %v1033_v30, %v971_v32 }
 0x108   :  { %v592_v36 = vpop.f32.mrb[8].mxu0  ;;  %v1659_v37 = vpop.f32.mrb[8].mxu1 }
 0x109   :  { %835 = vst [vmem:[%s2027_s2 + $0x20] sm:$0xff] %v592_v36  ;;  %v899_v38 = vadd.f32 %v898_v31, %v592_v36  ;;  %v972_v39 = vmul.f32 %v592_v36, %v592_v36  ;;  %v594_v40 = vpop.f32.mrb[9].mxu0  ;;  %867 = vst [vmem:[%s2027_s2 + $0x120] sm:$0xff] %v1659_v37  ;;  %v722_v41 = vpop.f32.mrb[9].mxu1 }
 0x10a   :  { %v595_v42 = vpop.f32.mrb[10].mxu0  ;;  %v1668_v43 = vpop.f32.mrb[10].mxu1 }
 0x10b   :  { %v1035_v44 = vadd.f32 %v1034_v35, %v972_v39  ;;  %836 = vst [vmem:[%s2027_s2 + $0x28] sm:$0xff] %v595_v42  ;;  %v900_v45 = vadd.f32 %v899_v38, %v595_v42  ;;  %v973_v46 = vmul.f32 %v595_v42, %v595_v42  ;;  %v597_v47 = vpop.f32.mrb[11].mxu0  ;;  %868 = vst [vmem:[%s2027_s2 + $0x128] sm:$0xff] %v1668_v43  ;;  %v725_v48 = vpop.f32.mrb[11].mxu1 }
 0x10d   :  { %v1036_v49 = vadd.f32 %v1035_v44, %v973_v46 }
 0x110   :  { %v600_v50 = vpop.f32.mrb[12].mxu0  ;;  %v1677_v51 = vpop.f32.mrb[12].mxu1 }
 0x111   :  { %837 = vst [vmem:[%s2027_s2 + $0x30] sm:$0xff] %v600_v50  ;;  %v901_v52 = vadd.f32 %v900_v45, %v600_v50  ;;  %v974_v53 = vmul.f32 %v600_v50, %v600_v50  ;;  %v602_v54 = vpop.f32.mrb[13].mxu0  ;;  %869 = vst [vmem:[%s2027_s2 + $0x130] sm:$0xff] %v1677_v51  ;;  %v730_v55 = vpop.f32.mrb[13].mxu1 }
 0x112   :  { %v603_v56 = vpop.f32.mrb[14].mxu0  ;;  %v1686_v57 = vpop.f32.mrb[14].mxu1 }
 0x113   :  { %v1037_v58 = vadd.f32 %v1036_v49, %v974_v53  ;;  %838 = vst [vmem:[%s2027_s2 + $0x38] sm:$0xff] %v603_v56  ;;  %v902_v59 = vadd.f32 %v901_v52, %v603_v56  ;;  %v975_v60 = vmul.f32 %v603_v56, %v603_v56  ;;  %v605_v61 = vpop.f32.mrb[15].mxu0  ;;  %870 = vst [vmem:[%s2027_s2 + $0x138] sm:$0xff] %v1686_v57  ;;  %v733_v62 = vpop.f32.mrb[15].mxu1 }
 0x115   :  { %v1038_v63 = vadd.f32 %v1037_v58, %v975_v60 }
 0x118   :  { %v608_v0 = vpop.f32.mrb[16].mxu0  ;;  %v1695_v1 = vpop.f32.mrb[16].mxu1 }
 0x119   :  { %839 = vst [vmem:[%s2027_s2 + $0x40] sm:$0xff] %v608_v0  ;;  %v903_v2 = vadd.f32 %v902_v59, %v608_v0  ;;  %v976_v3 = vmul.f32 %v608_v0, %v608_v0  ;;  %v610_v4 = vpop.f32.mrb[17].mxu0  ;;  %871 = vst [vmem:[%s2027_s2 + $0x140] sm:$0xff] %v1695_v1  ;;  %v738_v5 = vpop.f32.mrb[17].mxu1  ;;  %v1346_v0 = vmov 0.0  }
 0x11a   :  { %v611_v6 = vpop.f32.mrb[18].mxu0  ;;  %v1704_v7 = vpop.f32.mrb[18].mxu1  ;;  %19 = vst [vmem:[%s2028_s3] sm:$0x1] %v1346_v0  ;;  %20 = vst [vmem:[%s2029_s4] sm:$0x1] %v1346_v0 }
 0x11b   :  { %v1039_v8 = vadd.f32 %v1038_v63, %v976_v3  ;;  %840 = vst [vmem:[%s2027_s2 + $0x48] sm:$0xff] %v611_v6  ;;  %v904_v9 = vadd.f32 %v903_v2, %v611_v6  ;;  %v977_v10 = vmul.f32 %v611_v6, %v611_v6  ;;  %v613_v12 = vpop.f32.mrb[19].mxu0  ;;  %872 = vst [vmem:[%s2027_s2 + $0x148] sm:$0xff] %v1704_v7  ;;  %v741_v13 = vpop.f32.mrb[19].mxu1 }
 0x11d   :  { %v1040_v14 = vadd.f32 %v1039_v8, %v977_v10 }
 0x120   :  { %v616_v16 = vpop.f32.mrb[20].mxu0  ;;  %v1713_v17 = vpop.f32.mrb[20].mxu1 }
 0x121   :  { %841 = vst [vmem:[%s2027_s2 + $0x50] sm:$0xff] %v616_v16  ;;  %v905_v18 = vadd.f32 %v904_v9, %v616_v16  ;;  %v978_v19 = vmul.f32 %v616_v16, %v616_v16  ;;  %v618_v20 = vpop.f32.mrb[21].mxu0  ;;  %873 = vst [vmem:[%s2027_s2 + $0x150] sm:$0xff] %v1713_v17  ;;  %v746_v21 = vpop.f32.mrb[21].mxu1 }
 0x122   :  { %v619_v22 = vpop.f32.mrb[22].mxu0  ;;  %v1722_v24 = vpop.f32.mrb[22].mxu1 }
 0x123   :  { %v1041_v25 = vadd.f32 %v1040_v14, %v978_v19  ;;  %842 = vst [vmem:[%s2027_s2 + $0x58] sm:$0xff] %v619_v22  ;;  %v906_v26 = vadd.f32 %v905_v18, %v619_v22  ;;  %v979_v27 = vmul.f32 %v619_v22, %v619_v22  ;;  %v621_v28 = vpop.f32.mrb[23].mxu0  ;;  %874 = vst [vmem:[%s2027_s2 + $0x158] sm:$0xff] %v1722_v24  ;;  %v749_v30 = vpop.f32.mrb[23].mxu1 }
 0x125   :  { %v1042_v31 = vadd.f32 %v1041_v25, %v979_v27 }
 0x128   :  { %v624_v32 = vpop.f32.mrb[24].mxu0  ;;  %v1731_v33 = vpop.f32.mrb[24].mxu1 }
 0x129   :  { %843 = vst [vmem:[%s2027_s2 + $0x60] sm:$0xff] %v624_v32  ;;  %v907_v34 = vadd.f32 %v906_v26, %v624_v32  ;;  %v980_v35 = vmul.f32 %v624_v32, %v624_v32  ;;  %v626_v36 = vpop.f32.mrb[25].mxu0  ;;  %875 = vst [vmem:[%s2027_s2 + $0x160] sm:$0xff] %v1731_v33  ;;  %v754_v38 = vpop.f32.mrb[25].mxu1 }
 0x12a   :  { %v627_v39 = vpop.f32.mrb[26].mxu0  ;;  %v1740_v40 = vpop.f32.mrb[26].mxu1 }
 0x12b   :  { %v1043_v41 = vadd.f32 %v1042_v31, %v980_v35  ;;  %844 = vst [vmem:[%s2027_s2 + $0x68] sm:$0xff] %v627_v39  ;;  %v908_v42 = vadd.f32 %v907_v34, %v627_v39  ;;  %v981_v44 = vmul.f32 %v627_v39, %v627_v39  ;;  %v629_v45 = vpop.f32.mrb[27].mxu0  ;;  %876 = vst [vmem:[%s2027_s2 + $0x168] sm:$0xff] %v1740_v40  ;;  %v757_v46 = vpop.f32.mrb[27].mxu1 }
 0x12d   :  { %v1044_v47 = vadd.f32 %v1043_v41, %v981_v44 }
 0x130   :  { %v632_v48 = vpop.f32.mrb[28].mxu0  ;;  %v1749_v49 = vpop.f32.mrb[28].mxu1 }
 0x131   :  { %845 = vst [vmem:[%s2027_s2 + $0x70] sm:$0xff] %v632_v48  ;;  %v909_v50 = vadd.f32 %v908_v42, %v632_v48  ;;  %v982_v52 = vmul.f32 %v632_v48, %v632_v48  ;;  %v634_v53 = vpop.f32.mrb[29].mxu0  ;;  %877 = vst [vmem:[%s2027_s2 + $0x170] sm:$0xff] %v1749_v49  ;;  %v762_v54 = vpop.f32.mrb[29].mxu1 }
 0x132   :  { %v635_v55 = vpop.f32.mrb[30].mxu0  ;;  %v1758_v56 = vpop.f32.mrb[30].mxu1 }
 0x133   :  { %v1045_v58 = vadd.f32 %v1044_v47, %v982_v52  ;;  %846 = vst [vmem:[%s2027_s2 + $0x78] sm:$0xff] %v635_v55  ;;  %v910_v59 = vadd.f32 %v909_v50, %v635_v55  ;;  %v983_v60 = vmul.f32 %v635_v55, %v635_v55  ;;  %v637_v61 = vpop.f32.mrb[31].mxu0  ;;  %878 = vst [vmem:[%s2027_s2 + $0x178] sm:$0xff] %v1758_v56  ;;  %v765_v62 = vpop.f32.mrb[31].mxu1 }
 0x135   :  { %v1046_v63 = vadd.f32 %v1045_v58, %v983_v60 }
 0x138   :  { %v640_v2 = vpop.f32.mrb[32].mxu0  ;;  %v1773_v3 = vpop.f32.mrb[32].mxu1 }
 0x139   :  { %847 = vst [vmem:[%s2027_s2 + $0x80] sm:$0xff] %v640_v2  ;;  %v911_v4 = vadd.f32 %v910_v59, %v640_v2  ;;  %v984_v5 = vmul.f32 %v640_v2, %v640_v2  ;;  %v642_v6 = vpop.f32.mrb[33].mxu0  ;;  %879 = vst [vmem:[%s2027_s2 + $0x180] sm:$0xff] %v1773_v3  ;;  %v770_v8 = vpop.f32.mrb[33].mxu1 }
 0x13a   :  { %v643_v9 = vpop.f32.mrb[34].mxu0  ;;  %v1782_v10 = vpop.f32.mrb[34].mxu1 }
 0x13b   :  { %v1047_v12 = vadd.f32 %v1046_v63, %v984_v5  ;;  %848 = vst [vmem:[%s2027_s2 + $0x88] sm:$0xff] %v643_v9  ;;  %v912_v13 = vadd.f32 %v911_v4, %v643_v9  ;;  %v985_v14 = vmul.f32 %v643_v9, %v643_v9  ;;  %v645_v16 = vpop.f32.mrb[35].mxu0  ;;  %880 = vst [vmem:[%s2027_s2 + $0x188] sm:$0xff] %v1782_v10  ;;  %v773_v18 = vpop.f32.mrb[35].mxu1 }
 0x13d   :  { %v1048_v19 = vadd.f32 %v1047_v12, %v985_v14 }
 0x140   :  { %v648_v20 = vpop.f32.mrb[36].mxu0  ;;  %v1791_v21 = vpop.f32.mrb[36].mxu1 }
 0x141   :  { %849 = vst [vmem:[%s2027_s2 + $0x90] sm:$0xff] %v648_v20  ;;  %v913_v22 = vadd.f32 %v912_v13, %v648_v20  ;;  %v986_v25 = vmul.f32 %v648_v20, %v648_v20  ;;  %v650_v26 = vpop.f32.mrb[37].mxu0  ;;  %881 = vst [vmem:[%s2027_s2 + $0x190] sm:$0xff] %v1791_v21  ;;  %v778_v27 = vpop.f32.mrb[37].mxu1 }
 0x142   :  { %v651_v28 = vpop.f32.mrb[38].mxu0  ;;  %v1800_v30 = vpop.f32.mrb[38].mxu1 }
 0x143   :  { %v1049_v31 = vadd.f32 %v1048_v19, %v986_v25  ;;  %850 = vst [vmem:[%s2027_s2 + $0x98] sm:$0xff] %v651_v28  ;;  %v914_v32 = vadd.f32 %v913_v22, %v651_v28  ;;  %v987_v34 = vmul.f32 %v651_v28, %v651_v28  ;;  %v653_v35 = vpop.f32.mrb[39].mxu0  ;;  %882 = vst [vmem:[%s2027_s2 + $0x198] sm:$0xff] %v1800_v30  ;;  %v781_v36 = vpop.f32.mrb[39].mxu1 }
 0x145   :  { %v1050_v38 = vadd.f32 %v1049_v31, %v987_v34 }
 0x148   :  { %v656_v39 = vpop.f32.mrb[40].mxu0  ;;  %v1809_v41 = vpop.f32.mrb[40].mxu1 }
 0x149   :  { %851 = vst [vmem:[%s2027_s2 + $0xa0] sm:$0xff] %v656_v39  ;;  %v915_v42 = vadd.f32 %v914_v32, %v656_v39  ;;  %v988_v44 = vmul.f32 %v656_v39, %v656_v39  ;;  %v658_v45 = vpop.f32.mrb[41].mxu0  ;;  %883 = vst [vmem:[%s2027_s2 + $0x1a0] sm:$0xff] %v1809_v41  ;;  %v786_v46 = vpop.f32.mrb[41].mxu1 }
 0x14a   :  { %v659_v47 = vpop.f32.mrb[42].mxu0  ;;  %v1818_v48 = vpop.f32.mrb[42].mxu1 }
 0x14b   :  { %v1051_v50 = vadd.f32 %v1050_v38, %v988_v44  ;;  %852 = vst [vmem:[%s2027_s2 + $0xa8] sm:$0xff] %v659_v47  ;;  %v916_v52 = vadd.f32 %v915_v42, %v659_v47  ;;  %v989_v53 = vmul.f32 %v659_v47, %v659_v47  ;;  %v661_v54 = vpop.f32.mrb[43].mxu0  ;;  %884 = vst [vmem:[%s2027_s2 + $0x1a8] sm:$0xff] %v1818_v48  ;;  %v789_v55 = vpop.f32.mrb[43].mxu1 }
 0x14d   :  { %v1052_v58 = vadd.f32 %v1051_v50, %v989_v53 }
 0x150   :  { %v664_v59 = vpop.f32.mrb[44].mxu0  ;;  %v1827_v60 = vpop.f32.mrb[44].mxu1 }
 0x151   :  { %853 = vst [vmem:[%s2027_s2 + $0xb0] sm:$0xff] %v664_v59  ;;  %v917_v61 = vadd.f32 %v916_v52, %v664_v59  ;;  %v990_v62 = vmul.f32 %v664_v59, %v664_v59  ;;  %v666_v63 = vpop.f32.mrb[45].mxu0  ;;  %885 = vst [vmem:[%s2027_s2 + $0x1b0] sm:$0xff] %v1827_v60  ;;  %v794_v0 = vpop.f32.mrb[45].mxu1 }
 0x152   :  { %v667_v2 = vpop.f32.mrb[46].mxu0  ;;  %v1836_v4 = vpop.f32.mrb[46].mxu1 }
 0x153   :  { %v1053_v5 = vadd.f32 %v1052_v58, %v990_v62  ;;  %854 = vst [vmem:[%s2027_s2 + $0xb8] sm:$0xff] %v667_v2  ;;  %v918_v6 = vadd.f32 %v917_v61, %v667_v2  ;;  %v991_v8 = vmul.f32 %v667_v2, %v667_v2  ;;  %v669_v9 = vpop.f32.mrb[47].mxu0  ;;  %886 = vst [vmem:[%s2027_s2 + $0x1b8] sm:$0xff] %v1836_v4  ;;  %v797_v12 = vpop.f32.mrb[47].mxu1 }
 0x155   :  { %v1054_v13 = vadd.f32 %v1053_v5, %v991_v8 }
 0x158   :  { %v672_v14 = vpop.f32.mrb[48].mxu0  ;;  %v1845_v16 = vpop.f32.mrb[48].mxu1 }
 0x159   :  { %855 = vst [vmem:[%s2027_s2 + $0xc0] sm:$0xff] %v672_v14  ;;  %v919_v18 = vadd.f32 %v918_v6, %v672_v14  ;;  %v992_v19 = vmul.f32 %v672_v14, %v672_v14  ;;  %v674_v20 = vpop.f32.mrb[49].mxu0  ;;  %887 = vst [vmem:[%s2027_s2 + $0x1c0] sm:$0xff] %v1845_v16  ;;  %v802_v22 = vpop.f32.mrb[49].mxu1 }
 0x15a   :  { %v675_v25 = vpop.f32.mrb[50].mxu0  ;;  %v1854_v26 = vpop.f32.mrb[50].mxu1 }
 0x15b   :  { %v1055_v27 = vadd.f32 %v1054_v13, %v992_v19  ;;  %856 = vst [vmem:[%s2027_s2 + $0xc8] sm:$0xff] %v675_v25  ;;  %v920_v28 = vadd.f32 %v919_v18, %v675_v25  ;;  %v993_v31 = vmul.f32 %v675_v25, %v675_v25  ;;  %v677_v32 = vpop.f32.mrb[51].mxu0  ;;  %888 = vst [vmem:[%s2027_s2 + $0x1c8] sm:$0xff] %v1854_v26  ;;  %v805_v34 = vpop.f32.mrb[51].mxu1 }
 0x15d   :  { %v1056_v35 = vadd.f32 %v1055_v27, %v993_v31 }
 0x160   :  { %v680_v36 = vpop.f32.mrb[52].mxu0  ;;  %v1863_v38 = vpop.f32.mrb[52].mxu1 }
 0x161   :  { %857 = vst [vmem:[%s2027_s2 + $0xd0] sm:$0xff] %v680_v36  ;;  %v921_v39 = vadd.f32 %v920_v28, %v680_v36  ;;  %v994_v42 = vmul.f32 %v680_v36, %v680_v36  ;;  %v682_v44 = vpop.f32.mrb[53].mxu0  ;;  %889 = vst [vmem:[%s2027_s2 + $0x1d0] sm:$0xff] %v1863_v38  ;;  %v810_v45 = vpop.f32.mrb[53].mxu1 }
 0x162   :  { %v683_v46 = vpop.f32.mrb[54].mxu0  ;;  %v1872_v47 = vpop.f32.mrb[54].mxu1  ;;  %v1000_v44 = vmul.f32 %v1623_v11, %v1623_v11 }
 0x163   :  { %v1057_v50 = vadd.f32 %v1056_v35, %v994_v42  ;;  %858 = vst [vmem:[%s2027_s2 + $0xd8] sm:$0xff] %v683_v46  ;;  %v922_v52 = vadd.f32 %v921_v39, %v683_v46  ;;  %v995_v53 = vmul.f32 %v683_v46, %v683_v46  ;;  %v685_v54 = vpop.f32.mrb[55].mxu0  ;;  %890 = vst [vmem:[%s2027_s2 + $0x1d8] sm:$0xff] %v1872_v47  ;;  %v813_v55 = vpop.f32.mrb[55].mxu1 }
 0x164   :  { %v1002_v54 = vmul.f32 %v1641_v23, %v1641_v23 }
 0x165   :  { %v1058_v58 = vadd.f32 %v1057_v50, %v995_v53  ;;  %v1001_v50 = vmul.f32 %v1632_v15, %v1632_v15 }
 0x168   :  { %v688_v59 = vpop.f32.mrb[56].mxu0  ;;  %v1881_v61 = vpop.f32.mrb[56].mxu1 }
 0x169   :  { %859 = vst [vmem:[%s2027_s2 + $0xe0] sm:$0xff] %v688_v59  ;;  %v923_v62 = vadd.f32 %v922_v52, %v688_v59  ;;  %v996_v63 = vmul.f32 %v688_v59, %v688_v59  ;;  %v690_v0 = vpop.f32.mrb[57].mxu0  ;;  %891 = vst [vmem:[%s2027_s2 + $0x1e0] sm:$0xff] %v1881_v61  ;;  %v818_v2 = vpop.f32.mrb[57].mxu1  ;;  %v1003_v59 = vmul.f32 %v1650_v29, %v1650_v29 }
 0x16a   :  { %v691_v5 = vpop.f32.mrb[58].mxu0  ;;  %v1890_v6 = vpop.f32.mrb[58].mxu1 }
 0x16b   :  { %v1059_v8 = vadd.f32 %v1058_v58, %v996_v63  ;;  %860 = vst [vmem:[%s2027_s2 + $0xe8] sm:$0xff] %v691_v5  ;;  %v924_v9 = vadd.f32 %v923_v62, %v691_v5  ;;  %v997_v12 = vmul.f32 %v691_v5, %v691_v5  ;;  %v693_v13 = vpop.f32.mrb[59].mxu0  ;;  %892 = vst [vmem:[%s2027_s2 + $0x1e8] sm:$0xff] %v1890_v6  ;;  %v821_v14 = vpop.f32.mrb[59].mxu1 }
 0x16d   :  { %v1060_v18 = vadd.f32 %v1059_v8, %v997_v12 }
 0x170   :  { %v696_v19 = vpop.f32.mrb[60].mxu0  ;;  %v1899_v20 = vpop.f32.mrb[60].mxu1 }
 0x171   :  { %861 = vst [vmem:[%s2027_s2 + $0xf0] sm:$0xff] %v696_v19  ;;  %v925_v22 = vadd.f32 %v924_v9, %v696_v19  ;;  %v998_v25 = vmul.f32 %v696_v19, %v696_v19  ;;  %v698_v27 = vpop.f32.mrb[61].mxu0  ;;  %893 = vst [vmem:[%s2027_s2 + $0x1f0] sm:$0xff] %v1899_v20  ;;  %v826_v28 = vpop.f32.mrb[61].mxu1 }
 0x172   :  { %v699_v31 = vpop.f32.mrb[62].mxu0  ;;  %v1908_v32 = vpop.f32.mrb[62].mxu1 }
 0x173   :  { %v1061_v34 = vadd.f32 %v1060_v18, %v998_v25  ;;  %862 = vst [vmem:[%s2027_s2 + $0xf8] sm:$0xff] %v699_v31  ;;  %v926_v35 = vadd.f32 %v925_v22, %v699_v31  ;;  %v999_v36 = vmul.f32 %v699_v31, %v699_v31  ;;  %v701_v39 = vpop.f32.mrb[63].mxu0  ;;  %894 = vst [vmem:[%s2027_s2 + $0x1f8] sm:$0xff] %v1908_v32  ;;  %v829_v42 = vpop.f32.mrb[63].mxu1 }
 0x175   :  { %v927_v45 = vadd.f32 %v926_v35, %v1623_v11  ;;  %v1062_v46 = vadd.f32 %v1061_v34, %v999_v36  ;;  %v1004_v11 = vmul.f32 %v1659_v37, %v1659_v37 }
 0x177   :  { %v928_v52 = vadd.f32 %v927_v45, %v1632_v15  ;;  %v1063_v53 = vadd.f32 %v1062_v46, %v1000_v44  ;;  %v1005_v15 = vmul.f32 %v1668_v43, %v1668_v43 }
 0x179   :  { %v929_v55 = vadd.f32 %v928_v52, %v1641_v23  ;;  %v1064_v58 = vadd.f32 %v1063_v53, %v1001_v50  ;;  %v1006_v23 = vmul.f32 %v1677_v51, %v1677_v51  ;;  %v1016_v52 = vmul.f32 %v1773_v3, %v1773_v3 }
 0x17b   :  { %v930_v62 = vadd.f32 %v929_v55, %v1650_v29  ;;  %v1065_v63 = vadd.f32 %v1064_v58, %v1002_v54  ;;  %v1007_v29 = vmul.f32 %v1686_v57, %v1686_v57  ;;  %v1017_v55 = vmul.f32 %v1782_v10, %v1782_v10 }
 0x17d   :  { %v931_v0 = vadd.f32 %v930_v62, %v1659_v37  ;;  %v1066_v2 = vadd.f32 %v1065_v63, %v1003_v59  ;;  %v1008_v37 = vmul.f32 %v1695_v1, %v1695_v1  ;;  %v1018_v59 = vmul.f32 %v1791_v21, %v1791_v21 }
 0x17e   :  { %v1019_v63 = vmul.f32 %v1800_v30, %v1800_v30 }
 0x17f   :  { %v932_v5 = vadd.f32 %v931_v0, %v1668_v43  ;;  %v1067_v8 = vadd.f32 %v1066_v2, %v1004_v11  ;;  %v1009_v43 = vmul.f32 %v1704_v7, %v1704_v7  ;;  %v1020_v0 = vmul.f32 %v1809_v41, %v1809_v41 }
 0x181   :  { %v933_v9 = vadd.f32 %v932_v5, %v1677_v51  ;;  %v1068_v12 = vadd.f32 %v1067_v8, %v1005_v15  ;;  %v1010_v51 = vmul.f32 %v1713_v17, %v1713_v17  ;;  %v1021_v15 = vmul.f32 %v1818_v48, %v1818_v48 }
 0x182   :  { %v1022_v8 = vmul.f32 %v1827_v60, %v1827_v60 }
 0x183   :  { %v934_v13 = vadd.f32 %v933_v9, %v1686_v57  ;;  %v1069_v14 = vadd.f32 %v1068_v12, %v1006_v23  ;;  %v1011_v57 = vmul.f32 %v1722_v24, %v1722_v24  ;;  %v1023_v9 = vmul.f32 %v1836_v4, %v1836_v4 }
 0x185   :  { %v1070_v18 = vadd.f32 %v1069_v14, %v1007_v29  ;;  %v935_v19 = vadd.f32 %v934_v13, %v1695_v1  ;;  %v1012_v1 = vmul.f32 %v1731_v33, %v1731_v33  ;;  %v1024_v29 = vmul.f32 %v1845_v16, %v1845_v16 }
 0x186   :  { %v1025_v14 = vmul.f32 %v1854_v26, %v1854_v26 }
 0x187   :  { %v936_v22 = vadd.f32 %v935_v19, %v1704_v7  ;;  %v1071_v25 = vadd.f32 %v1070_v18, %v1008_v37  ;;  %v1013_v7 = vmul.f32 %v1740_v40, %v1740_v40  ;;  %v1026_v18 = vmul.f32 %v1863_v38, %v1863_v38 }
 0x189   :  { %v937_v27 = vadd.f32 %v936_v22, %v1713_v17  ;;  %v1072_v28 = vadd.f32 %v1071_v25, %v1009_v43  ;;  %v1014_v17 = vmul.f32 %v1749_v49, %v1749_v49  ;;  %v1027_v43 = vmul.f32 %v1872_v47, %v1872_v47 }
 0x18a   :  { %v1028_v25 = vmul.f32 %v1881_v61, %v1881_v61 }
 0x18b   :  { %v938_v31 = vadd.f32 %v937_v27, %v1722_v24  ;;  %v1073_v34 = vadd.f32 %v1072_v28, %v1010_v51  ;;  %v1015_v24 = vmul.f32 %v1758_v56, %v1758_v56  ;;  %v1029_v27 = vmul.f32 %v1890_v6, %v1890_v6 }
 0x18d   :  { %v939_v35 = vadd.f32 %v938_v31, %v1731_v33  ;;  %v1074_v36 = vadd.f32 %v1073_v34, %v1011_v57  ;;  %v1031_v34 = vmul.f32 %v1908_v32, %v1908_v32 }
 0x18f   :  { %v940_v39 = vadd.f32 %v939_v35, %v1740_v40  ;;  %v1075_v42 = vadd.f32 %v1074_v36, %v1012_v1 }
 0x191   :  { %v941_v44 = vadd.f32 %v940_v39, %v1749_v49  ;;  %v1076_v45 = vadd.f32 %v1075_v42, %v1013_v7 }
 0x193   :  { %v942_v46 = vadd.f32 %v941_v44, %v1758_v56  ;;  %v1077_v50 = vadd.f32 %v1076_v45, %v1014_v17 }
 0x195   :  { %v943_v33 = vadd.f32 %v942_v46, %v1773_v3  ;;  %v1078_v53 = vadd.f32 %v1077_v50, %v1015_v24 }
 0x197   :  { %v1079_v40 = vadd.f32 %v1078_v53, %v1016_v52  ;;  %v944_v54 = vadd.f32 %v943_v33, %v1782_v10 }
 0x199   :  { %v1080_v49 = vadd.f32 %v1079_v40, %v1017_v55  ;;  %v945_v58 = vadd.f32 %v944_v54, %v1791_v21 }
 0x19b   :  { %v1081_v56 = vadd.f32 %v1080_v49, %v1018_v59  ;;  %v946_v62 = vadd.f32 %v945_v58, %v1800_v30 }
 0x19d   :  { %v1082_v3 = vadd.f32 %v1081_v56, %v1019_v63  ;;  %v947_v11 = vadd.f32 %v946_v62, %v1809_v41 }
 0x19f   :  { %v1083_v2 = vadd.f32 %v1082_v3, %v1020_v0  ;;  %v948_v10 = vadd.f32 %v947_v11, %v1818_v48 }
 0x1a1   :  { %v1084_v5 = vadd.f32 %v1083_v2, %v1021_v15  ;;  %v949_v21 = vadd.f32 %v948_v10, %v1827_v60 }
 0x1a3   :  { %v1085_v23 = vadd.f32 %v1084_v5, %v1022_v8  ;;  %v950_v30 = vadd.f32 %v949_v21, %v1836_v4 }
 0x1a5   :  { %v1086_v12 = vadd.f32 %v1085_v23, %v1023_v9  ;;  %v951_v41 = vadd.f32 %v950_v30, %v1845_v16 }
 0x1a7   :  { %v1087_v13 = vadd.f32 %v1086_v12, %v1024_v29  ;;  %v952_v48 = vadd.f32 %v951_v41, %v1854_v26 }
 0x1a9   :  { %v1088_v37 = vadd.f32 %v1087_v13, %v1025_v14  ;;  %v953_v60 = vadd.f32 %v952_v48, %v1863_v38  ;;  %v1030_v38 = vmul.f32 %v1899_v20, %v1899_v20 }
 0x1ab   :  { %v1089_v19 = vadd.f32 %v1088_v37, %v1026_v18  ;;  %v954_v4 = vadd.f32 %v953_v60, %v1872_v47 }
 0x1ad   :  { %v1090_v22 = vadd.f32 %v1089_v19, %v1027_v43  ;;  %v955_v16 = vadd.f32 %v954_v4, %v1881_v61 }
 0x1af   :  { %v1091_v51 = vadd.f32 %v1090_v22, %v1028_v25  ;;  %v956_v26 = vadd.f32 %v955_v16, %v1890_v6 }
 0x1b1   :  { %v1092_v28 = vadd.f32 %v1091_v51, %v1029_v27  ;;  %v957_v57 = vadd.f32 %v956_v26, %v1899_v20  ;;  %v895_v20 = vld [vmem:[%s2028_s3] sm:$0x1] }
 0x1b3   :  { %v1093_v31 = vadd.f32 %v1092_v28, %v1030_v38  ;;  %v958_v47 = vadd.f32 %v957_v57, %v1908_v32  ;;  %v967_v32 = vld [vmem:[%s2029_s4] sm:$0x1] }
 0x1b5   :  { %v959_v1 = vrot.slane %v958_v47, 4  ;;  %v1094_v61 = vadd.f32 %v1093_v31, %v1031_v34 }
 0x1b7   :  { %v960_v35 = vadd.f32 %v959_v1, %v958_v47  ;;  %v1095_v36 = vrot.slane %v1094_v61, 4 }
 0x1b9   :  { %v961_v7 = vrot.slane %v960_v35, 2  ;;  %v1096_v39 = vadd.f32 %v1095_v36, %v1094_v61 }
 0x1bb   :  { %v962_v42 = vadd.f32 %v961_v7, %v960_v35  ;;  %v1097_v6 = vrot.slane %v1096_v39, 2 }
 0x1bd   :  { %v963_v17 = vrot.slane %v962_v42, 1  ;;  %v1098_v44 = vadd.f32 %v1097_v6, %v1096_v39 }
 0x1bf   :  { %v964_v45 = vadd.f32 %v963_v17, %v962_v42  ;;  %v1099_v24 = vrot.slane %v1098_v44, 1 }
 0x1c1   :  { %v965_v46 = vadd.f32 %v964_v45, %v895_v20  ;;  %v1100_v50 = vadd.f32 %v1099_v24, %v1098_v44 }
 0x1c3   :  { %966 = vst [vmem:[%s2028_s3] sm:$0x1] %v965_v46  ;;  %v1101_v33 = vadd.f32 %v1100_v50, %v967_v32 }
 0x1c5   :  { %1102 = vst [vmem:[%s2029_s4] sm:$0x1] %v1101_v33 }

// kernel: encoder_decoder_resnet_forward.37
= control target key start
LH: loop header
LB: loop body
LE: loop exit
PB: predicated region body
PF: predicated region fallthrough
CT: control target
= control target key end

     0   :  { %v2158_v0 = vmov 0   ;;  %vm944_vm0 = vcmask 64512   ;;  %vm1041_vm1 = vcmask 1043456   ;;  %s2882_s1 = inlined_call_operand.vmem [shape: bf16[392,128], index: 1, kind: input, shape index: {}]   ;;  %s2883_s0 = inlined_call_operand.vmem [shape: bf16[512,392], index: 0, kind: input, shape index: {}]   ;;  %s2884_s2 = inlined_call_operand.vmem [shape: f32[512,128], index: 2, kind: output, shape index: {}]  }
   0x1   :  { %1045 = vmatprep.subr.bf16.mxu1 %v2158_v0  ;;  %v1941_v1 = vld [vmem:[%s2882_s1] sm:$0xff]   ;;  %1334 = vmatprep.subr.bf16.mxu0 %v2158_v0  ;;  %v1942_v2 = vld [vmem:[%s2882_s1 + $0x8] sm:$0xff]   ;;  %v1943_v3 = vld [vmem:[%s2882_s1 + $0x10] sm:$0xff]  }
   0x2   :  { %1046 = vmatpush1.bf16.msra.mxu1 %v1941_v1  ;;  %v1948_v4 = vld [vmem:[%s2882_s1 + $0x80] sm:$0xff]   ;;  %v1950_v5 = vld [vmem:[%s2882_s1 + $0x88] sm:$0xff]   ;;  %v1944_v6 = vld [vmem:[%s2882_s1 + $0x18] sm:$0xff]  }
   0x3   :  { %1047 = vmatprep.subr.bf16.mxu1 %v2158_v0  ;;  %1335 = vmatpush1.bf16.msra.mxu0 %v1948_v4  ;;  %v1952_v7 = vld [vmem:[%s2882_s1 + $0x90] sm:$0xff]   ;;  %v1945_v8 = vld [vmem:[%s2882_s1 + $0x20] sm:$0xff]   ;;  %v1954_v9 = vld [vmem:[%s2882_s1 + $0x98] sm:$0xff]  }
   0x4   :  { %1336 = vmatprep.subr.bf16.mxu0 %v2158_v0  ;;  %v1946_v10 = vld [vmem:[%s2882_s1 + $0x28] sm:$0xff]   ;;  %v1956_v11 = vld [vmem:[%s2882_s1 + $0xa0] sm:$0xff]   ;;  %v1947_v12 = vld [vmem:[%s2882_s1 + $0x30] sm:$0xff]  }
   0x5   :  { %v1967_v13 = vld [vmem:[%s2883_s0 + $0xc] ss:$16 sps:$4 sm:$0xff]   ;;  %v1971_v16 = vld [vmem:[%s2883_s0 + $0x4] ss:$16 sps:$4 sm:$0xff]   ;;  %v1964_v21 = vld [vmem:[%s2882_s1 + $0xc0] ss:$0 sps:$4 sm:$0xff]  }
   0x6   :  { %1048 = vmatpush1.bf16.msra.mxu1 %v1942_v2  ;;  %v1958_v14 = vld [vmem:[%s2882_s1 + $0xa8] sm:$0xff]   ;;  %v1949_v15 = vld [vmem:[%s2882_s1 + $0x38] sm:$0xff]   ;;  %1844 = vmatprep.mubr.msk.bf16.mxu0 %vm944_vm0, %v1967_v13  ;;  %v1960_v17 = vld [vmem:[%s2882_s1 + $0xb0] sm:$0xff]   ;;  %v1043_v23 = vsel %vm1041_vm1, %v1964_v21, 0 }
   0x7   :  { %1049 = vmatprep.subr.bf16.mxu1 %v2158_v0  ;;  %1337 = vmatpush1.bf16.msra.mxu0 %v1950_v5  ;;  %v1951_v18 = vld [vmem:[%s2882_s1 + $0x40] sm:$0xff]   ;;  %v1953_v19 = vld [vmem:[%s2882_s1 + $0x48] sm:$0xff]   ;;  %v1962_v20 = vld [vmem:[%s2882_s1 + $0xb8] sm:$0xff]  }
   0x8   :  { %1338 = vmatprep.subr.bf16.mxu0 %v2158_v0  ;;  %1077 = vmatprep.mubr.bf16.mxu1 %v1971_v16  ;;  %v1955_v22 = vld [vmem:[%s2882_s1 + $0x50] sm:$0xff]   ;;  %v1965_v24 = vld [vmem:[%s2883_s0 + $0x8] ss:$16 sps:$4 sm:$0xff]   ;;  %v1972_v25 = vld [vmem:[%s2883_s0 + $0x2c] ss:$16 sps:$4 sm:$0xff]  }
   0x9   :  { %v1957_v26 = vld [vmem:[%s2882_s1 + $0x58] sm:$0xff]   ;;  %v1959_v27 = vld [vmem:[%s2882_s1 + $0x60] sm:$0xff]   ;;  %v1961_v30 = vld [vmem:[%s2882_s1 + $0x68] sm:$0xff]  }
   0xa   :  { %1050 = vmatpush1.bf16.msra.mxu1 %v1943_v3  ;;  %v1974_v28 = vld [vmem:[%s2883_s0 + $0x28] ss:$16 sps:$4 sm:$0xff]   ;;  %v1978_v29 = vld [vmem:[%s2883_s0 + $0x4c] ss:$16 sps:$4 sm:$0xff]   ;;  %v1963_v31 = vld [vmem:[%s2882_s1 + $0x70] sm:$0xff]  }
   0xb   :  { %1051 = vmatprep.subr.bf16.mxu1 %v2158_v0  ;;  %1339 = vmatpush1.bf16.msra.mxu0 %v1952_v7  ;;  %v1980_v32 = vld [vmem:[%s2883_s0 + $0x48] ss:$16 sps:$4 sm:$0xff]   ;;  %v1984_v33 = vld [vmem:[%s2883_s0 + $0x6c] ss:$16 sps:$4 sm:$0xff]   ;;  %v1969_v35 = vld [vmem:[%s2883_s0] ss:$16 sps:$4 sm:$0xff]  }
   0xc   :  { %1340 = vmatprep.subr.bf16.mxu0 %v2158_v0  ;;  %v1968_v34 = vld [vmem:[%s2882_s1 + $0x78] sm:$0xff]   ;;  %v1975_v36 = vld [vmem:[%s2883_s0 + $0x24] ss:$16 sps:$4 sm:$0xff]   ;;  %v1977_v39 = vld [vmem:[%s2883_s0 + $0x20] ss:$16 sps:$4 sm:$0xff]  }
   0xd   :  { %v1986_v37 = vld [vmem:[%s2883_s0 + $0x68] ss:$16 sps:$4 sm:$0xff]   ;;  %v1990_v38 = vld [vmem:[%s2883_s0 + $0x8c] ss:$16 sps:$4 sm:$0xff]   ;;  %v1981_v40 = vld [vmem:[%s2883_s0 + $0x44] ss:$16 sps:$4 sm:$0xff]  }
   0xe   :  { %1052 = vmatpush1.bf16.msra.mxu1 %v1944_v6  ;;  %v1992_v41 = vld [vmem:[%s2883_s0 + $0x88] ss:$16 sps:$4 sm:$0xff]   ;;  %v1996_v42 = vld [vmem:[%s2883_s0 + $0xac] ss:$16 sps:$4 sm:$0xff]   ;;  %v1983_v43 = vld [vmem:[%s2883_s0 + $0x40] ss:$16 sps:$4 sm:$0xff]  }
   0xf   :  { %1053 = vmatprep.subr.bf16.mxu1 %v2158_v0  ;;  %1341 = vmatpush1.bf16.msra.mxu0 %v1954_v9  ;;  %v1987_v44 = vld [vmem:[%s2883_s0 + $0x64] ss:$16 sps:$4 sm:$0xff]   ;;  %v1998_v45 = vld [vmem:[%s2883_s0 + $0xa8] ss:$16 sps:$4 sm:$0xff]   ;;  %v2002_v46 = vld [vmem:[%s2883_s0 + $0xcc] ss:$16 sps:$4 sm:$0xff]  }
  0x10   :  { %1342 = vmatprep.subr.bf16.mxu0 %v2158_v0  ;;  %v1989_v47 = vld [vmem:[%s2883_s0 + $0x60] ss:$16 sps:$4 sm:$0xff]   ;;  %v1993_v48 = vld [vmem:[%s2883_s0 + $0x84] ss:$16 sps:$4 sm:$0xff]   ;;  %v2004_v49 = vld [vmem:[%s2883_s0 + $0xc8] ss:$16 sps:$4 sm:$0xff]  }
  0x11   :  { %v2008_v50 = vld [vmem:[%s2883_s0 + $0xec] ss:$16 sps:$4 sm:$0xff]   ;;  %v1995_v51 = vld [vmem:[%s2883_s0 + $0x80] ss:$16 sps:$4 sm:$0xff]   ;;  %v1999_v52 = vld [vmem:[%s2883_s0 + $0xa4] ss:$16 sps:$4 sm:$0xff]  }
  0x12   :  { %1054 = vmatpush1.bf16.msra.mxu1 %v1945_v8  ;;  %v2010_v53 = vld [vmem:[%s2883_s0 + $0xe8] ss:$16 sps:$4 sm:$0xff]   ;;  %v2014_v54 = vld [vmem:[%s2883_s0 + $0x10c] ss:$16 sps:$4 sm:$0xff]   ;;  %v2001_v55 = vld [vmem:[%s2883_s0 + $0xa0] ss:$16 sps:$4 sm:$0xff]  }
  0x13   :  { %1055 = vmatprep.subr.bf16.mxu1 %v2158_v0  ;;  %1343 = vmatpush1.bf16.msra.mxu0 %v1956_v11  ;;  %v2005_v56 = vld [vmem:[%s2883_s0 + $0xc4] ss:$16 sps:$4 sm:$0xff]   ;;  %v2016_v57 = vld [vmem:[%s2883_s0 + $0x108] ss:$16 sps:$4 sm:$0xff]   ;;  %v2020_v58 = vld [vmem:[%s2883_s0 + $0x12c] ss:$16 sps:$4 sm:$0xff]  }
  0x14   :  { %1344 = vmatprep.subr.bf16.mxu0 %v2158_v0  ;;  %v2007_v59 = vld [vmem:[%s2883_s0 + $0xc0] ss:$16 sps:$4 sm:$0xff]   ;;  %v2011_v60 = vld [vmem:[%s2883_s0 + $0xe4] ss:$16 sps:$4 sm:$0xff]   ;;  %v2022_v61 = vld [vmem:[%s2883_s0 + $0x128] ss:$16 sps:$4 sm:$0xff]  }
  0x15   :  { %v2026_v62 = vld [vmem:[%s2883_s0 + $0x14c] ss:$16 sps:$4 sm:$0xff]   ;;  %v2013_v63 = vld [vmem:[%s2883_s0 + $0xe0] ss:$16 sps:$4 sm:$0xff]   ;;  %v2028_v1 = vld [vmem:[%s2883_s0 + $0x148] ss:$16 sps:$4 sm:$0xff]  }
  0x16   :  { %1056 = vmatpush1.bf16.msra.mxu1 %v1946_v10  ;;  %v2032_v2 = vld [vmem:[%s2883_s0 + $0x16c] ss:$16 sps:$4 sm:$0xff]   ;;  %v2019_v3 = vld [vmem:[%s2883_s0 + $0x100] ss:$16 sps:$4 sm:$0xff]   ;;  %v2023_v4 = vld [vmem:[%s2883_s0 + $0x124] ss:$16 sps:$4 sm:$0xff]  }
  0x17   :  { %1057 = vmatprep.subr.bf16.mxu1 %v2158_v0  ;;  %1345 = vmatpush1.bf16.msra.mxu0 %v1958_v14  ;;  %v2034_v5 = vld [vmem:[%s2883_s0 + $0x168] ss:$16 sps:$4 sm:$0xff]   ;;  %v2038_v6 = vld [vmem:[%s2883_s0 + $0x18c] ss:$16 sps:$4 sm:$0xff]   ;;  %v2025_v7 = vld [vmem:[%s2883_s0 + $0x120] ss:$16 sps:$4 sm:$0xff]  }
  0x18   :  { %1346 = vmatprep.subr.bf16.mxu0 %v2158_v0  ;;  %v2029_v8 = vld [vmem:[%s2883_s0 + $0x144] ss:$16 sps:$4 sm:$0xff]   ;;  %v2040_v9 = vld [vmem:[%s2883_s0 + $0x188] ss:$16 sps:$4 sm:$0xff]   ;;  %v2044_v10 = vld [vmem:[%s2883_s0 + $0x1ac] ss:$16 sps:$4 sm:$0xff]  }
  0x19   :  { %v2031_v11 = vld [vmem:[%s2883_s0 + $0x140] ss:$16 sps:$4 sm:$0xff]   ;;  %v2046_v13 = vld [vmem:[%s2883_s0 + $0x1a8] ss:$16 sps:$4 sm:$0xff]   ;;  %v2050_v14 = vld [vmem:[%s2883_s0 + $0x1cc] ss:$16 sps:$4 sm:$0xff]  }
  0x1a   :  { %1058 = vmatpush1.bf16.msra.mxu1 %v1947_v12  ;;  %v2035_v12 = vld [vmem:[%s2883_s0 + $0x164] ss:$16 sps:$4 sm:$0xff]   ;;  %v2058_v21 = vld [vmem:[%s2883_s0 + $0x1e8] ss:$16 sps:$4 sm:$0xff]  }
  0x1b   :  { %1059 = vmatprep.subr.bf16.mxu1 %v2158_v0  ;;  %1347 = vmatpush1.bf16.msra.mxu0 %v1960_v17  ;;  %v2041_v16 = vld [vmem:[%s2883_s0 + $0x184] ss:$16 sps:$4 sm:$0xff]   ;;  %v2052_v17 = vld [vmem:[%s2883_s0 + $0x1c8] ss:$16 sps:$4 sm:$0xff]  }
  0x1c   :  { %1348 = vmatprep.subr.bf16.mxu0 %v2158_v0 }
  0x1e   :  { %1060 = vmatpush1.bf16.msra.mxu1 %v1949_v15  ;;  %v2037_v15 = vld [vmem:[%s2883_s0 + $0x160] ss:$16 sps:$4 sm:$0xff]  }
  0x1f   :  { %1061 = vmatprep.subr.bf16.mxu1 %v2158_v0  ;;  %1349 = vmatpush1.bf16.msra.mxu0 %v1962_v20  ;;  %v2047_v20 = vld [vmem:[%s2883_s0 + $0x1a4] ss:$16 sps:$4 sm:$0xff]  }
  0x20   :  { %1350 = vmatprep.subr.bf16.mxu0 %v2158_v0 }
  0x22   :  { %1062 = vmatpush1.bf16.msra.mxu1 %v1951_v18  ;;  %v2056_v18 = vld [vmem:[%s2883_s0 + $0x1ec] ss:$16 sps:$4 sm:$0xff]  }
  0x23   :  { %1063 = vmatprep.subr.bf16.mxu1 %v2158_v0  ;;  %1351 = vmatpush1.bf16.msra.mxu0 %v1043_v23  ;;  %v2049_v23 = vld [vmem:[%s2883_s0 + $0x1a0] ss:$16 sps:$4 sm:$0xff]  }
  0x26   :  { %1064 = vmatpush1.bf16.msra.mxu1 %v1953_v19  ;;  %1367 = vmatmul.mubr.bf16.vlgmr.msra.gmra.mrb[0].mxu0 %v1965_v24  ;;  %v2043_v19 = vld [vmem:[%s2883_s0 + $0x180] ss:$16 sps:$4 sm:$0xff]   ;;  %v2053_v24 = vld [vmem:[%s2883_s0 + $0x1c4] ss:$16 sps:$4 sm:$0xff]  }
  0x27   :  { %1065 = vmatprep.subr.bf16.mxu1 %v2158_v0  ;;  %1845 = vmatprep.mubr.msk.bf16.mxu0 %vm944_vm0, %v1972_v25  ;;  %v2064_v25 = vld [vmem:[%s2883_s0 + $0x208] ss:$16 sps:$4 sm:$0xff]  }
  0x2a   :  { %1066 = vmatpush1.bf16.msra.mxu1 %v1955_v22  ;;  %v2062_v22 = vld [vmem:[%s2883_s0 + $0x20c] ss:$16 sps:$4 sm:$0xff]  }
  0x2b   :  { %1067 = vmatprep.subr.bf16.mxu1 %v2158_v0 }
  0x2e   :  { %1068 = vmatpush1.bf16.msra.mxu1 %v1957_v26  ;;  %1375 = vmatmul.mubr.bf16.gmra.mrb[4].mxu0 %v1974_v28  ;;  %v2068_v26 = vld [vmem:[%s2883_s0 + $0x22c] ss:$16 sps:$4 sm:$0xff]   ;;  %v2059_v28 = vld [vmem:[%s2883_s0 + $0x1e4] ss:$16 sps:$4 sm:$0xff]  }
  0x2f   :  { %1069 = vmatprep.subr.bf16.mxu1 %v2158_v0  ;;  %1846 = vmatprep.mubr.msk.bf16.mxu0 %vm944_vm0, %v1978_v29  ;;  %v2070_v29 = vld [vmem:[%s2883_s0 + $0x228] ss:$16 sps:$4 sm:$0xff]  }
  0x32   :  { %1070 = vmatpush1.bf16.msra.mxu1 %v1959_v27  ;;  %v2055_v27 = vld [vmem:[%s2883_s0 + $0x1c0] ss:$16 sps:$4 sm:$0xff]  }
  0x33   :  { %1071 = vmatprep.subr.bf16.mxu1 %v2158_v0 }
  0x36   :  { %1072 = vmatpush1.bf16.msra.mxu1 %v1961_v30  ;;  %1383 = vmatmul.mubr.bf16.gmra.mrb[8].mxu0 %v1980_v32  ;;  %v2074_v30 = vld [vmem:[%s2883_s0 + $0x24c] ss:$16 sps:$4 sm:$0xff]   ;;  %v2065_v32 = vld [vmem:[%s2883_s0 + $0x204] ss:$16 sps:$4 sm:$0xff]  }
  0x37   :  { %1073 = vmatprep.subr.bf16.mxu1 %v2158_v0  ;;  %1847 = vmatprep.mubr.msk.bf16.mxu0 %vm944_vm0, %v1984_v33  ;;  %v2076_v33 = vld [vmem:[%s2883_s0 + $0x248] ss:$16 sps:$4 sm:$0xff]  }
  0x3a   :  { %1074 = vmatpush1.bf16.msra.mxu1 %v1963_v31  ;;  %v2061_v31 = vld [vmem:[%s2883_s0 + $0x1e0] ss:$16 sps:$4 sm:$0xff]  }
  0x3b   :  { %1075 = vmatprep.subr.bf16.mxu1 %v2158_v0  ;;  %v2017_v0 = vld [vmem:[%s2883_s0 + $0x104] ss:$16 sps:$4 sm:$0xff]  }
  0x3e   :  { %1076 = vmatpush1.bf16.msra.mxu1 %v1968_v34  ;;  %1391 = vmatmul.mubr.bf16.gmra.mrb[12].mxu0 %v1986_v37  ;;  %v2080_v34 = vld [vmem:[%s2883_s0 + $0x26c] ss:$16 sps:$4 sm:$0xff]   ;;  %v2082_v37 = vld [vmem:[%s2883_s0 + $0x268] ss:$16 sps:$4 sm:$0xff]  }
  0x3f   :  { %1848 = vmatprep.mubr.msk.bf16.mxu0 %vm944_vm0, %v1990_v38  ;;  %v2086_v38 = vld [vmem:[%s2883_s0 + $0x28c] ss:$16 sps:$4 sm:$0xff]  }
  0x41   :  { %1078 = vmatmul.mubr.bf16.vlgmr.msra.gmra.mrb[0].mxu1 %v1969_v35  ;;  %v2067_v35 = vld [vmem:[%s2883_s0 + $0x200] ss:$16 sps:$4 sm:$0xff]  }
  0x42   :  { %1085 = vmatprep.mubr.bf16.mxu1 %v1975_v36  ;;  %v2071_v36 = vld [vmem:[%s2883_s0 + $0x224] ss:$16 sps:$4 sm:$0xff]  }
  0x46   :  { %1399 = vmatmul.mubr.bf16.gmra.mrb[16].mxu0 %v1992_v41  ;;  %v2088_v41 = vld [vmem:[%s2883_s0 + $0x288] ss:$16 sps:$4 sm:$0xff]  }
  0x47   :  { %1849 = vmatprep.mubr.msk.bf16.mxu0 %vm944_vm0, %v1996_v42  ;;  %v2092_v42 = vld [vmem:[%s2883_s0 + $0x2ac] ss:$16 sps:$4 sm:$0xff]  }
  0x49   :  { %1086 = vmatmul.mubr.bf16.gmra.mrb[4].mxu1 %v1977_v39  ;;  %v2073_v39 = vld [vmem:[%s2883_s0 + $0x220] ss:$16 sps:$4 sm:$0xff]  }
  0x4a   :  { %1093 = vmatprep.mubr.bf16.mxu1 %v1981_v40  ;;  %v2077_v40 = vld [vmem:[%s2883_s0 + $0x244] ss:$16 sps:$4 sm:$0xff]  }
  0x4e   :  { %1407 = vmatmul.mubr.bf16.gmra.mrb[20].mxu0 %v1998_v45  ;;  %v2094_v45 = vld [vmem:[%s2883_s0 + $0x2a8] ss:$16 sps:$4 sm:$0xff]  }
  0x4f   :  { %1850 = vmatprep.mubr.msk.bf16.mxu0 %vm944_vm0, %v2002_v46  ;;  %v2098_v46 = vld [vmem:[%s2883_s0 + $0x2cc] ss:$16 sps:$4 sm:$0xff]  }
  0x51   :  { %1094 = vmatmul.mubr.bf16.gmra.mrb[8].mxu1 %v1983_v43  ;;  %v2079_v43 = vld [vmem:[%s2883_s0 + $0x240] ss:$16 sps:$4 sm:$0xff]  }
  0x52   :  { %1101 = vmatprep.mubr.bf16.mxu1 %v1987_v44  ;;  %v2083_v44 = vld [vmem:[%s2883_s0 + $0x264] ss:$16 sps:$4 sm:$0xff]  }
  0x56   :  { %1415 = vmatmul.mubr.bf16.gmra.mrb[24].mxu0 %v2004_v49  ;;  %v2100_v49 = vld [vmem:[%s2883_s0 + $0x2c8] ss:$16 sps:$4 sm:$0xff]  }
  0x57   :  { %1851 = vmatprep.mubr.msk.bf16.mxu0 %vm944_vm0, %v2008_v50  ;;  %v2104_v50 = vld [vmem:[%s2883_s0 + $0x2ec] ss:$16 sps:$4 sm:$0xff]  }
  0x59   :  { %1102 = vmatmul.mubr.bf16.gmra.mrb[12].mxu1 %v1989_v47  ;;  %v2085_v47 = vld [vmem:[%s2883_s0 + $0x260] ss:$16 sps:$4 sm:$0xff]  }
  0x5a   :  { %1109 = vmatprep.mubr.bf16.mxu1 %v1993_v48  ;;  %v2089_v48 = vld [vmem:[%s2883_s0 + $0x284] ss:$16 sps:$4 sm:$0xff]  }
  0x5e   :  { %1423 = vmatmul.mubr.bf16.gmra.mrb[28].mxu0 %v2010_v53  ;;  %v2106_v53 = vld [vmem:[%s2883_s0 + $0x2e8] ss:$16 sps:$4 sm:$0xff]  }
  0x5f   :  { %1852 = vmatprep.mubr.msk.bf16.mxu0 %vm944_vm0, %v2014_v54  ;;  %v2110_v54 = vld [vmem:[%s2883_s0 + $0x30c] ss:$16 sps:$4 sm:$0xff]  }
  0x61   :  { %1110 = vmatmul.mubr.bf16.gmra.mrb[16].mxu1 %v1995_v51  ;;  %v2091_v51 = vld [vmem:[%s2883_s0 + $0x280] ss:$16 sps:$4 sm:$0xff]  }
  0x62   :  { %1117 = vmatprep.mubr.bf16.mxu1 %v1999_v52  ;;  %v2095_v52 = vld [vmem:[%s2883_s0 + $0x2a4] ss:$16 sps:$4 sm:$0xff]  }
  0x66   :  { %1431 = vmatmul.mubr.bf16.gmra.mrb[32].mxu0 %v2016_v57  ;;  %v2112_v57 = vld [vmem:[%s2883_s0 + $0x308] ss:$16 sps:$4 sm:$0xff]  }
  0x67   :  { %1853 = vmatprep.mubr.msk.bf16.mxu0 %vm944_vm0, %v2020_v58  ;;  %v2116_v58 = vld [vmem:[%s2883_s0 + $0x32c] ss:$16 sps:$4 sm:$0xff]  }
  0x69   :  { %1118 = vmatmul.mubr.bf16.gmra.mrb[20].mxu1 %v2001_v55  ;;  %v2097_v55 = vld [vmem:[%s2883_s0 + $0x2a0] ss:$16 sps:$4 sm:$0xff]  }
  0x6a   :  { %1125 = vmatprep.mubr.bf16.mxu1 %v2005_v56  ;;  %v2101_v56 = vld [vmem:[%s2883_s0 + $0x2c4] ss:$16 sps:$4 sm:$0xff]  }
  0x6e   :  { %1439 = vmatmul.mubr.bf16.gmra.mrb[36].mxu0 %v2022_v61  ;;  %v2118_v61 = vld [vmem:[%s2883_s0 + $0x328] ss:$16 sps:$4 sm:$0xff]  }
  0x6f   :  { %1854 = vmatprep.mubr.msk.bf16.mxu0 %vm944_vm0, %v2026_v62  ;;  %v2122_v62 = vld [vmem:[%s2883_s0 + $0x34c] ss:$16 sps:$4 sm:$0xff]  }
  0x71   :  { %1126 = vmatmul.mubr.bf16.gmra.mrb[24].mxu1 %v2007_v59  ;;  %v2103_v59 = vld [vmem:[%s2883_s0 + $0x2c0] ss:$16 sps:$4 sm:$0xff]  }
  0x72   :  { %1133 = vmatprep.mubr.bf16.mxu1 %v2011_v60  ;;  %v2107_v60 = vld [vmem:[%s2883_s0 + $0x2e4] ss:$16 sps:$4 sm:$0xff]  }
  0x76   :  { %1447 = vmatmul.mubr.bf16.gmra.mrb[40].mxu0 %v2028_v1  ;;  %v2124_v1 = vld [vmem:[%s2883_s0 + $0x348] ss:$16 sps:$4 sm:$0xff]  }
  0x77   :  { %1855 = vmatprep.mubr.msk.bf16.mxu0 %vm944_vm0, %v2032_v2  ;;  %v2128_v2 = vld [vmem:[%s2883_s0 + $0x36c] ss:$16 sps:$4 sm:$0xff]  }
  0x79   :  { %1134 = vmatmul.mubr.bf16.gmra.mrb[28].mxu1 %v2013_v63  ;;  %v2109_v63 = vld [vmem:[%s2883_s0 + $0x2e0] ss:$16 sps:$4 sm:$0xff]  }
  0x7a   :  { %1141 = vmatprep.mubr.bf16.mxu1 %v2017_v0  ;;  %v2113_v0 = vld [vmem:[%s2883_s0 + $0x304] ss:$16 sps:$4 sm:$0xff]  }
  0x7e   :  { %1455 = vmatmul.mubr.bf16.gmra.mrb[44].mxu0 %v2034_v5 }
  0x7f   :  { %1856 = vmatprep.mubr.msk.bf16.mxu0 %vm944_vm0, %v2038_v6 }
  0x81   :  { %1142 = vmatmul.mubr.bf16.gmra.mrb[32].mxu1 %v2019_v3  ;;  %v2115_v3 = vld [vmem:[%s2883_s0 + $0x300] ss:$16 sps:$4 sm:$0xff]  }
  0x82   :  { %1149 = vmatprep.mubr.bf16.mxu1 %v2023_v4  ;;  %v2119_v4 = vld [vmem:[%s2883_s0 + $0x324] ss:$16 sps:$4 sm:$0xff]  }
  0x86   :  { %1463 = vmatmul.mubr.bf16.gmra.mrb[48].mxu0 %v2040_v9  ;;  %v2134_v9 = vld [vmem:[%s2883_s0 + $0x38c] ss:$16 sps:$4 sm:$0xff]  }
  0x87   :  { %1857 = vmatprep.mubr.msk.bf16.mxu0 %vm944_vm0, %v2044_v10 }
  0x89   :  { %1150 = vmatmul.mubr.bf16.gmra.mrb[36].mxu1 %v2025_v7  ;;  %v2130_v7 = vld [vmem:[%s2883_s0 + $0x368] ss:$16 sps:$4 sm:$0xff]  }
  0x8a   :  { %1157 = vmatprep.mubr.bf16.mxu1 %v2029_v8 }
  0x8e   :  { %1471 = vmatmul.mubr.bf16.gmra.mrb[52].mxu0 %v2046_v13 }
  0x8f   :  { %1858 = vmatprep.mubr.msk.bf16.mxu0 %vm944_vm0, %v2050_v14 }
  0x91   :  { %1158 = vmatmul.mubr.bf16.gmra.mrb[40].mxu1 %v2031_v11  ;;  %v2121_v11 = vld [vmem:[%s2883_s0 + $0x320] ss:$16 sps:$4 sm:$0xff]  }
  0x92   :  { %1165 = vmatprep.mubr.bf16.mxu1 %v2035_v12  ;;  %v2125_v12 = vld [vmem:[%s2883_s0 + $0x344] ss:$16 sps:$4 sm:$0xff]  }
  0x96   :  { %1479 = vmatmul.mubr.bf16.gmra.mrb[56].mxu0 %v2052_v17  ;;  %v2140_v17 = vld [vmem:[%s2883_s0 + $0x3ac] ss:$16 sps:$4 sm:$0xff]  }
  0x97   :  { %1859 = vmatprep.mubr.msk.bf16.mxu0 %vm944_vm0, %v2056_v18 }
  0x99   :  { %1166 = vmatmul.mubr.bf16.gmra.mrb[44].mxu1 %v2037_v15  ;;  %v2136_v15 = vld [vmem:[%s2883_s0 + $0x388] ss:$16 sps:$4 sm:$0xff]  }
  0x9a   :  { %1173 = vmatprep.mubr.bf16.mxu1 %v2041_v16 }
  0x9e   :  { %1487 = vmatmul.mubr.bf16.gmra.mrb[60].mxu0 %v2058_v21 }
  0x9f   :  { %1860 = vmatprep.mubr.msk.bf16.mxu0 %vm944_vm0, %v2062_v22 }
  0xa1   :  { %1174 = vmatmul.mubr.bf16.gmra.mrb[48].mxu1 %v2043_v19  ;;  %v2127_v19 = vld [vmem:[%s2883_s0 + $0x340] ss:$16 sps:$4 sm:$0xff]  }
  0xa2   :  { %1181 = vmatprep.mubr.bf16.mxu1 %v2047_v20  ;;  %v2131_v20 = vld [vmem:[%s2883_s0 + $0x364] ss:$16 sps:$4 sm:$0xff]  }
  0xa6   :  { %1495 = vmatmul.mubr.bf16.gmra.mrb[64].mxu0 %v2064_v25  ;;  %v2146_v25 = vld [vmem:[%s2883_s0 + $0x3cc] ss:$16 sps:$4 sm:$0xff]  }
  0xa7   :  { %1861 = vmatprep.mubr.msk.bf16.mxu0 %vm944_vm0, %v2068_v26 }
  0xa9   :  { %1182 = vmatmul.mubr.bf16.gmra.mrb[52].mxu1 %v2049_v23  ;;  %v2142_v23 = vld [vmem:[%s2883_s0 + $0x3a8] ss:$16 sps:$4 sm:$0xff]  }
  0xaa   :  { %1189 = vmatprep.mubr.bf16.mxu1 %v2053_v24 }
  0xae   :  { %1503 = vmatmul.mubr.bf16.gmra.mrb[68].mxu0 %v2070_v29 }
  0xaf   :  { %1862 = vmatprep.mubr.msk.bf16.mxu0 %vm944_vm0, %v2074_v30  ;;  %v2133_v30 = vld [vmem:[%s2883_s0 + $0x360] ss:$16 sps:$4 sm:$0xff]  }
  0xb1   :  { %1190 = vmatmul.mubr.bf16.gmra.mrb[56].mxu1 %v2055_v27 }
  0xb2   :  { %1197 = vmatprep.mubr.bf16.mxu1 %v2059_v28 }
  0xb6   :  { %1511 = vmatmul.mubr.bf16.gmra.mrb[72].mxu0 %v2076_v33 }
  0xb7   :  { %1863 = vmatprep.mubr.msk.bf16.mxu0 %vm944_vm0, %v2080_v34 }
  0xb9   :  { %1198 = vmatmul.mubr.bf16.gmra.mrb[60].mxu1 %v2061_v31 }
  0xba   :  { %1205 = vmatprep.mubr.bf16.mxu1 %v2065_v32  ;;  %v2137_v32 = vld [vmem:[%s2883_s0 + $0x384] ss:$16 sps:$4 sm:$0xff]  }
  0xbe   :  { %1519 = vmatmul.mubr.bf16.gmra.mrb[76].mxu0 %v2082_v37  ;;  %v2148_v37 = vld [vmem:[%s2883_s0 + $0x3c8] ss:$16 sps:$4 sm:$0xff]  }
  0xbf   :  { %1864 = vmatprep.mubr.msk.bf16.mxu0 %vm944_vm0, %v2086_v38 }
  0xc1   :  { %1206 = vmatmul.mubr.bf16.gmra.mrb[64].mxu1 %v2067_v35 }
  0xc2   :  { %1213 = vmatprep.mubr.bf16.mxu1 %v2071_v36 }
  0xc6   :  { %1527 = vmatmul.mubr.bf16.gmra.mrb[80].mxu0 %v2088_v41 }
  0xc7   :  { %1865 = vmatprep.mubr.msk.bf16.mxu0 %vm944_vm0, %v2092_v42 }
  0xc9   :  { %1214 = vmatmul.mubr.bf16.gmra.mrb[68].mxu1 %v2073_v39  ;;  %v2152_v39 = vld [vmem:[%s2883_s0 + $0x3ec] ss:$16 sps:$4 sm:$0xff]  }
  0xca   :  { %1221 = vmatprep.mubr.bf16.mxu1 %v2077_v40 }
  0xce   :  { %1535 = vmatmul.mubr.bf16.gmra.mrb[84].mxu0 %v2094_v45 }
  0xcf   :  { %1866 = vmatprep.mubr.msk.bf16.mxu0 %vm944_vm0, %v2098_v46  ;;  %v2143_v46 = vld [vmem:[%s2883_s0 + $0x3a4] ss:$16 sps:$4 sm:$0xff]  }
  0xd1   :  { %1222 = vmatmul.mubr.bf16.gmra.mrb[72].mxu1 %v2079_v43 }
  0xd2   :  { %1229 = vmatprep.mubr.bf16.mxu1 %v2083_v44  ;;  %v2139_v44 = vld [vmem:[%s2883_s0 + $0x380] ss:$16 sps:$4 sm:$0xff]  }
  0xd6   :  { %1543 = vmatmul.mubr.bf16.gmra.mrb[88].mxu0 %v2100_v49 }
  0xd7   :  { %1867 = vmatprep.mubr.msk.bf16.mxu0 %vm944_vm0, %v2104_v50 }
  0xd9   :  { %1230 = vmatmul.mubr.bf16.gmra.mrb[76].mxu1 %v2085_v47 }
  0xda   :  { %1237 = vmatprep.mubr.bf16.mxu1 %v2089_v48 }
  0xde   :  { %1551 = vmatmul.mubr.bf16.gmra.mrb[92].mxu0 %v2106_v53 }
  0xdf   :  { %1868 = vmatprep.mubr.msk.bf16.mxu0 %vm944_vm0, %v2110_v54 }
  0xe1   :  { %1238 = vmatmul.mubr.bf16.gmra.mrb[80].mxu1 %v2091_v51  ;;  %v2154_v51 = vld [vmem:[%s2883_s0 + $0x3e8] ss:$16 sps:$4 sm:$0xff]  }
  0xe2   :  { %1245 = vmatprep.mubr.bf16.mxu1 %v2095_v52 }
  0xe6   :  { %1559 = vmatmul.mubr.bf16.gmra.mrb[96].mxu0 %v2112_v57  ;;  %v2145_v57 = vld [vmem:[%s2883_s0 + $0x3a0] ss:$16 sps:$4 sm:$0xff]  }
  0xe7   :  { %1869 = vmatprep.mubr.msk.bf16.mxu0 %vm944_vm0, %v2116_v58 }
  0xe9   :  { %1246 = vmatmul.mubr.bf16.gmra.mrb[84].mxu1 %v2097_v55 }
  0xea   :  { %1253 = vmatprep.mubr.bf16.mxu1 %v2101_v56 }
  0xee   :  { %1567 = vmatmul.mubr.bf16.gmra.mrb[100].mxu0 %v2118_v61 }
  0xef   :  { %1870 = vmatprep.mubr.msk.bf16.mxu0 %vm944_vm0, %v2122_v62 }
  0xf1   :  { %1254 = vmatmul.mubr.bf16.gmra.mrb[88].mxu1 %v2103_v59  ;;  %v2149_v59 = vld [vmem:[%s2883_s0 + $0x3c4] ss:$16 sps:$4 sm:$0xff]  }
  0xf2   :  { %1261 = vmatprep.mubr.bf16.mxu1 %v2107_v60 }
  0xf6   :  { %1575 = vmatmul.mubr.bf16.gmra.mrb[104].mxu0 %v2124_v1 }
  0xf7   :  { %1871 = vmatprep.mubr.msk.bf16.mxu0 %vm944_vm0, %v2128_v2 }
  0xf9   :  { %1262 = vmatmul.mubr.bf16.gmra.mrb[92].mxu1 %v2109_v63  ;;  %v1368_v5 = vpop.f32.mrb[0].mxu0 }
  0xfa   :  { %1269 = vmatprep.mubr.bf16.mxu1 %v2113_v0  ;;  %v1370_v6 = vpop.f32.mrb[1].mxu0 }
  0xfb   :  { %v1371_v8 = vpop.f32.mrb[2].mxu0 }
  0xfc   :  { %v1373_v10 = vpop.f32.mrb[3].mxu0 }
  0xfe   :  { %1583 = vmatmul.mubr.bf16.gmra.mrb[108].mxu0 %v2130_v7  ;;  %v2155_v7 = vld [vmem:[%s2883_s0 + $0x3e4] ss:$16 sps:$4 sm:$0xff]  }
  0xff   :  { %1872 = vmatprep.mubr.msk.bf16.mxu0 %vm944_vm0, %v2134_v9 }
 0x101   :  { %1270 = vmatmul.mubr.bf16.gmra.mrb[96].mxu1 %v2115_v3  ;;  %v1376_v13 = vpop.f32.mrb[4].mxu0 }
 0x102   :  { %1277 = vmatprep.mubr.bf16.mxu1 %v2119_v4  ;;  %v1378_v14 = vpop.f32.mrb[5].mxu0 }
 0x103   :  { %v1379_v16 = vpop.f32.mrb[6].mxu0 }
 0x104   :  { %v1381_v18 = vpop.f32.mrb[7].mxu0 }
 0x106   :  { %1591 = vmatmul.mubr.bf16.gmra.mrb[112].mxu0 %v2136_v15 }
 0x107   :  { %1873 = vmatprep.mubr.msk.bf16.mxu0 %vm944_vm0, %v2140_v17  ;;  %v2157_v17 = vld [vmem:[%s2883_s0 + $0x3e0] ss:$16 sps:$4 sm:$0xff]  }
 0x109   :  { %1278 = vmatmul.mubr.bf16.gmra.mrb[100].mxu1 %v2121_v11  ;;  %v1384_v21 = vpop.f32.mrb[8].mxu0 }
 0x10a   :  { %1285 = vmatprep.mubr.bf16.mxu1 %v2125_v12  ;;  %v1386_v22 = vpop.f32.mrb[9].mxu0 }
 0x10b   :  { %v1387_v24 = vpop.f32.mrb[10].mxu0 }
 0x10c   :  { %v1389_v26 = vpop.f32.mrb[11].mxu0 }
 0x10e   :  { %1599 = vmatmul.mubr.bf16.gmra.mrb[116].mxu0 %v2142_v23 }
 0x10f   :  { %1874 = vmatprep.mubr.msk.bf16.mxu0 %vm944_vm0, %v2146_v25 }
 0x111   :  { %1286 = vmatmul.mubr.bf16.gmra.mrb[104].mxu1 %v2127_v19  ;;  %v1392_v35 = vpop.f32.mrb[12].mxu0 }
 0x112   :  { %1293 = vmatprep.mubr.bf16.mxu1 %v2131_v20  ;;  %v1394_v36 = vpop.f32.mrb[13].mxu0 }
 0x113   :  { %v1395_v38 = vpop.f32.mrb[14].mxu0 }
 0x114   :  { %v1079_v27 = vpop.f32.mrb[0].mxu1  ;;  %v1397_v40 = vpop.f32.mrb[15].mxu0 }
 0x115   :  { %v1369_v28 = vadd.f32 %v1368_v5, %v1079_v27  ;;  %v1081_v29 = vpop.f32.mrb[1].mxu1  ;;  %v2151_v5 = vld [vmem:[%s2883_s0 + $0x3c0] ss:$16 sps:$4 sm:$0xff]  }
 0x116   :  { %v1082_v31 = vpop.f32.mrb[2].mxu1  ;;  %1607 = vmatmul.mubr.bf16.gmra.mrb[120].mxu0 %v2148_v37 }
 0x117   :  { %1623 = vst [vmem:[%s2884_s2] sm:$0xff] %v1369_v28  ;;  %v1372_v33 = vadd.f32 %v1371_v8, %v1082_v31  ;;  %v1084_v34 = vpop.f32.mrb[3].mxu1  ;;  %1875 = vmatprep.mubr.msk.bf16.mxu0 %vm944_vm0, %v2152_v39 }
 0x119   :  { %1624 = vst [vmem:[%s2884_s2 + $0x8] sm:$0xff] %v1372_v33  ;;  %1294 = vmatmul.mubr.bf16.gmra.mrb[108].mxu1 %v2133_v30  ;;  %v1400_v49 = vpop.f32.mrb[16].mxu0 }
 0x11a   :  { %1301 = vmatprep.mubr.bf16.mxu1 %v2137_v32  ;;  %v1402_v50 = vpop.f32.mrb[17].mxu0 }
 0x11b   :  { %v1403_v52 = vpop.f32.mrb[18].mxu0 }
 0x11c   :  { %v1087_v41 = vpop.f32.mrb[4].mxu1  ;;  %v1405_v53 = vpop.f32.mrb[19].mxu0 }
 0x11d   :  { %v1377_v42 = vadd.f32 %v1376_v13, %v1087_v41  ;;  %v1089_v43 = vpop.f32.mrb[5].mxu1 }
 0x11e   :  { %v1090_v45 = vpop.f32.mrb[6].mxu1  ;;  %1615 = vmatmul.mubr.bf16.gmra.mrb[124].mxu0 %v2154_v51 }
 0x11f   :  { %1625 = vst [vmem:[%s2884_s2 + $0x10] sm:$0xff] %v1377_v42  ;;  %v1380_v47 = vadd.f32 %v1379_v16, %v1090_v45  ;;  %v1092_v48 = vpop.f32.mrb[7].mxu1 }
 0x121   :  { %1626 = vst [vmem:[%s2884_s2 + $0x18] sm:$0xff] %v1380_v47  ;;  %1302 = vmatmul.mubr.bf16.gmra.mrb[112].mxu1 %v2139_v44  ;;  %v1408_v62 = vpop.f32.mrb[20].mxu0 }
 0x122   :  { %1309 = vmatprep.mubr.bf16.mxu1 %v2143_v46  ;;  %v1410_v63 = vpop.f32.mrb[21].mxu0 }
 0x123   :  { %v1411_v0 = vpop.f32.mrb[22].mxu0 }
 0x124   :  { %v1095_v54 = vpop.f32.mrb[8].mxu1  ;;  %v1413_v1 = vpop.f32.mrb[23].mxu0 }
 0x125   :  { %v1385_v55 = vadd.f32 %v1384_v21, %v1095_v54  ;;  %v1097_v56 = vpop.f32.mrb[9].mxu1 }
 0x126   :  { %v1098_v58 = vpop.f32.mrb[10].mxu1 }
 0x127   :  { %1627 = vst [vmem:[%s2884_s2 + $0x20] sm:$0xff] %v1385_v55  ;;  %v1388_v60 = vadd.f32 %v1387_v24, %v1098_v58  ;;  %v1100_v61 = vpop.f32.mrb[11].mxu1 }
 0x129   :  { %1628 = vst [vmem:[%s2884_s2 + $0x28] sm:$0xff] %v1388_v60  ;;  %1310 = vmatmul.mubr.bf16.gmra.mrb[116].mxu1 %v2145_v57  ;;  %v1416_v10 = vpop.f32.mrb[24].mxu0 }
 0x12a   :  { %1317 = vmatprep.mubr.bf16.mxu1 %v2149_v59  ;;  %v1418_v11 = vpop.f32.mrb[25].mxu0 }
 0x12b   :  { %v1419_v12 = vpop.f32.mrb[26].mxu0 }
 0x12c   :  { %v1103_v2 = vpop.f32.mrb[12].mxu1  ;;  %v1421_v13 = vpop.f32.mrb[27].mxu0 }
 0x12d   :  { %v1393_v3 = vadd.f32 %v1392_v35, %v1103_v2  ;;  %v1105_v4 = vpop.f32.mrb[13].mxu1 }
 0x12e   :  { %v1106_v6 = vpop.f32.mrb[14].mxu1 }
 0x12f   :  { %1629 = vst [vmem:[%s2884_s2 + $0x30] sm:$0xff] %v1393_v3  ;;  %v1396_v8 = vadd.f32 %v1395_v38, %v1106_v6  ;;  %v1108_v9 = vpop.f32.mrb[15].mxu1 }
 0x131   :  { %1630 = vst [vmem:[%s2884_s2 + $0x38] sm:$0xff] %v1396_v8  ;;  %1318 = vmatmul.mubr.bf16.gmra.mrb[120].mxu1 %v2151_v5  ;;  %v1424_v21 = vpop.f32.mrb[28].mxu0 }
 0x132   :  { %1325 = vmatprep.mubr.bf16.mxu1 %v2155_v7  ;;  %v1426_v22 = vpop.f32.mrb[29].mxu0 }
 0x133   :  { %v1427_v23 = vpop.f32.mrb[30].mxu0 }
 0x134   :  { %v1111_v14 = vpop.f32.mrb[16].mxu1  ;;  %v1429_v24 = vpop.f32.mrb[31].mxu0 }
 0x135   :  { %v1401_v15 = vadd.f32 %v1400_v49, %v1111_v14  ;;  %v1113_v16 = vpop.f32.mrb[17].mxu1 }
 0x136   :  { %v1114_v18 = vpop.f32.mrb[18].mxu1 }
 0x137   :  { %1631 = vst [vmem:[%s2884_s2 + $0x40] sm:$0xff] %v1401_v15  ;;  %v1404_v19 = vadd.f32 %v1403_v52, %v1114_v18  ;;  %v1116_v20 = vpop.f32.mrb[19].mxu1 }
 0x139   :  { %1632 = vst [vmem:[%s2884_s2 + $0x48] sm:$0xff] %v1404_v19  ;;  %1326 = vmatmul.mubr.bf16.gmra.mrb[124].mxu1 %v2157_v17  ;;  %v1432_v31 = vpop.f32.mrb[32].mxu0 }
 0x13a   :  { %v1434_v32 = vpop.f32.mrb[33].mxu0 }
 0x13b   :  { %v1435_v33 = vpop.f32.mrb[34].mxu0 }
 0x13c   :  { %v1119_v25 = vpop.f32.mrb[20].mxu1  ;;  %v1437_v34 = vpop.f32.mrb[35].mxu0 }
 0x13d   :  { %v1409_v26 = vadd.f32 %v1408_v62, %v1119_v25  ;;  %v1121_v27 = vpop.f32.mrb[21].mxu1 }
 0x13e   :  { %v1122_v28 = vpop.f32.mrb[22].mxu1 }
 0x13f   :  { %1633 = vst [vmem:[%s2884_s2 + $0x50] sm:$0xff] %v1409_v26  ;;  %v1412_v29 = vadd.f32 %v1411_v0, %v1122_v28  ;;  %v1124_v30 = vpop.f32.mrb[23].mxu1 }
 0x141   :  { %1634 = vst [vmem:[%s2884_s2 + $0x58] sm:$0xff] %v1412_v29  ;;  %v1440_v41 = vpop.f32.mrb[36].mxu0 }
 0x142   :  { %v1442_v42 = vpop.f32.mrb[37].mxu0 }
 0x143   :  { %v1443_v43 = vpop.f32.mrb[38].mxu0 }
 0x144   :  { %v1127_v35 = vpop.f32.mrb[24].mxu1  ;;  %v1445_v44 = vpop.f32.mrb[39].mxu0 }
 0x145   :  { %v1417_v36 = vadd.f32 %v1416_v10, %v1127_v35  ;;  %v1129_v37 = vpop.f32.mrb[25].mxu1 }
 0x146   :  { %v1130_v38 = vpop.f32.mrb[26].mxu1 }
 0x147   :  { %1635 = vst [vmem:[%s2884_s2 + $0x60] sm:$0xff] %v1417_v36  ;;  %v1420_v39 = vadd.f32 %v1419_v12, %v1130_v38  ;;  %v1132_v40 = vpop.f32.mrb[27].mxu1 }
 0x149   :  { %1636 = vst [vmem:[%s2884_s2 + $0x68] sm:$0xff] %v1420_v39  ;;  %v1448_v51 = vpop.f32.mrb[40].mxu0 }
 0x14a   :  { %v1450_v52 = vpop.f32.mrb[41].mxu0 }
 0x14b   :  { %v1451_v53 = vpop.f32.mrb[42].mxu0 }
 0x14c   :  { %v1135_v45 = vpop.f32.mrb[28].mxu1  ;;  %v1453_v54 = vpop.f32.mrb[43].mxu0 }
 0x14d   :  { %v1425_v46 = vadd.f32 %v1424_v21, %v1135_v45  ;;  %v1137_v47 = vpop.f32.mrb[29].mxu1 }
 0x14e   :  { %v1138_v48 = vpop.f32.mrb[30].mxu1 }
 0x14f   :  { %1637 = vst [vmem:[%s2884_s2 + $0x70] sm:$0xff] %v1425_v46  ;;  %v1428_v49 = vadd.f32 %v1427_v23, %v1138_v48  ;;  %v1140_v50 = vpop.f32.mrb[31].mxu1 }
 0x151   :  { %1638 = vst [vmem:[%s2884_s2 + $0x78] sm:$0xff] %v1428_v49  ;;  %v1456_v61 = vpop.f32.mrb[44].mxu0 }
 0x152   :  { %v1458_v62 = vpop.f32.mrb[45].mxu0 }
 0x153   :  { %v1459_v63 = vpop.f32.mrb[46].mxu0 }
 0x154   :  { %v1143_v55 = vpop.f32.mrb[32].mxu1  ;;  %v1461_v0 = vpop.f32.mrb[47].mxu0 }
 0x155   :  { %v1433_v56 = vadd.f32 %v1432_v31, %v1143_v55  ;;  %v1145_v57 = vpop.f32.mrb[33].mxu1 }
 0x156   :  { %v1146_v58 = vpop.f32.mrb[34].mxu1 }
 0x157   :  { %1639 = vst [vmem:[%s2884_s2 + $0x80] sm:$0xff] %v1433_v56  ;;  %v1436_v59 = vadd.f32 %v1435_v33, %v1146_v58  ;;  %v1148_v60 = vpop.f32.mrb[35].mxu1 }
 0x159   :  { %1640 = vst [vmem:[%s2884_s2 + $0x88] sm:$0xff] %v1436_v59  ;;  %v1464_v7 = vpop.f32.mrb[48].mxu0 }
 0x15a   :  { %v1466_v8 = vpop.f32.mrb[49].mxu0 }
 0x15b   :  { %v1467_v9 = vpop.f32.mrb[50].mxu0 }
 0x15c   :  { %v1151_v1 = vpop.f32.mrb[36].mxu1  ;;  %v1469_v10 = vpop.f32.mrb[51].mxu0 }
 0x15d   :  { %v1441_v2 = vadd.f32 %v1440_v41, %v1151_v1  ;;  %v1153_v3 = vpop.f32.mrb[37].mxu1 }
 0x15e   :  { %v1154_v4 = vpop.f32.mrb[38].mxu1 }
 0x15f   :  { %1641 = vst [vmem:[%s2884_s2 + $0x90] sm:$0xff] %v1441_v2  ;;  %v1444_v5 = vadd.f32 %v1443_v43, %v1154_v4  ;;  %v1156_v6 = vpop.f32.mrb[39].mxu1 }
 0x161   :  { %1642 = vst [vmem:[%s2884_s2 + $0x98] sm:$0xff] %v1444_v5  ;;  %v1472_v17 = vpop.f32.mrb[52].mxu0 }
 0x162   :  { %v1474_v18 = vpop.f32.mrb[53].mxu0 }
 0x163   :  { %v1475_v19 = vpop.f32.mrb[54].mxu0 }
 0x164   :  { %v1159_v11 = vpop.f32.mrb[40].mxu1  ;;  %v1477_v20 = vpop.f32.mrb[55].mxu0 }
 0x165   :  { %v1449_v12 = vadd.f32 %v1448_v51, %v1159_v11  ;;  %v1161_v13 = vpop.f32.mrb[41].mxu1 }
 0x166   :  { %v1162_v14 = vpop.f32.mrb[42].mxu1 }
 0x167   :  { %1643 = vst [vmem:[%s2884_s2 + $0xa0] sm:$0xff] %v1449_v12  ;;  %v1452_v15 = vadd.f32 %v1451_v53, %v1162_v14  ;;  %v1164_v16 = vpop.f32.mrb[43].mxu1 }
 0x169   :  { %1644 = vst [vmem:[%s2884_s2 + $0xa8] sm:$0xff] %v1452_v15  ;;  %v1480_v27 = vpop.f32.mrb[56].mxu0 }
 0x16a   :  { %v1482_v28 = vpop.f32.mrb[57].mxu0 }
 0x16b   :  { %v1483_v29 = vpop.f32.mrb[58].mxu0 }
 0x16c   :  { %v1167_v21 = vpop.f32.mrb[44].mxu1  ;;  %v1485_v30 = vpop.f32.mrb[59].mxu0 }
 0x16d   :  { %v1457_v22 = vadd.f32 %v1456_v61, %v1167_v21  ;;  %v1169_v23 = vpop.f32.mrb[45].mxu1 }
 0x16e   :  { %v1170_v24 = vpop.f32.mrb[46].mxu1 }
 0x16f   :  { %1645 = vst [vmem:[%s2884_s2 + $0xb0] sm:$0xff] %v1457_v22  ;;  %v1460_v25 = vadd.f32 %v1459_v63, %v1170_v24  ;;  %v1172_v26 = vpop.f32.mrb[47].mxu1 }
 0x171   :  { %1646 = vst [vmem:[%s2884_s2 + $0xb8] sm:$0xff] %v1460_v25  ;;  %v1488_v37 = vpop.f32.mrb[60].mxu0 }
 0x172   :  { %v1490_v38 = vpop.f32.mrb[61].mxu0 }
 0x173   :  { %v1491_v39 = vpop.f32.mrb[62].mxu0 }
 0x174   :  { %v1175_v31 = vpop.f32.mrb[48].mxu1  ;;  %v1493_v40 = vpop.f32.mrb[63].mxu0 }
 0x175   :  { %v1465_v32 = vadd.f32 %v1464_v7, %v1175_v31  ;;  %v1177_v33 = vpop.f32.mrb[49].mxu1 }
 0x176   :  { %v1178_v34 = vpop.f32.mrb[50].mxu1 }
 0x177   :  { %1647 = vst [vmem:[%s2884_s2 + $0xc0] sm:$0xff] %v1465_v32  ;;  %v1468_v35 = vadd.f32 %v1467_v9, %v1178_v34  ;;  %v1180_v36 = vpop.f32.mrb[51].mxu1 }
 0x179   :  { %1648 = vst [vmem:[%s2884_s2 + $0xc8] sm:$0xff] %v1468_v35  ;;  %v1496_v47 = vpop.f32.mrb[64].mxu0 }
 0x17a   :  { %v1498_v48 = vpop.f32.mrb[65].mxu0 }
 0x17b   :  { %v1499_v49 = vpop.f32.mrb[66].mxu0 }
 0x17c   :  { %v1183_v41 = vpop.f32.mrb[52].mxu1  ;;  %v1501_v50 = vpop.f32.mrb[67].mxu0 }
 0x17d   :  { %v1473_v42 = vadd.f32 %v1472_v17, %v1183_v41  ;;  %v1185_v43 = vpop.f32.mrb[53].mxu1 }
 0x17e   :  { %v1186_v44 = vpop.f32.mrb[54].mxu1 }
 0x17f   :  { %1649 = vst [vmem:[%s2884_s2 + $0xd0] sm:$0xff] %v1473_v42  ;;  %v1476_v45 = vadd.f32 %v1475_v19, %v1186_v44  ;;  %v1188_v46 = vpop.f32.mrb[55].mxu1 }
 0x181   :  { %1650 = vst [vmem:[%s2884_s2 + $0xd8] sm:$0xff] %v1476_v45  ;;  %v1504_v57 = vpop.f32.mrb[68].mxu0 }
 0x182   :  { %v1506_v58 = vpop.f32.mrb[69].mxu0 }
 0x183   :  { %v1507_v59 = vpop.f32.mrb[70].mxu0 }
 0x184   :  { %v1191_v51 = vpop.f32.mrb[56].mxu1  ;;  %v1509_v60 = vpop.f32.mrb[71].mxu0 }
 0x185   :  { %v1481_v52 = vadd.f32 %v1480_v27, %v1191_v51  ;;  %v1193_v53 = vpop.f32.mrb[57].mxu1 }
 0x186   :  { %v1194_v54 = vpop.f32.mrb[58].mxu1 }
 0x187   :  { %1651 = vst [vmem:[%s2884_s2 + $0xe0] sm:$0xff] %v1481_v52  ;;  %v1484_v55 = vadd.f32 %v1483_v29, %v1194_v54  ;;  %v1196_v56 = vpop.f32.mrb[59].mxu1 }
 0x189   :  { %1652 = vst [vmem:[%s2884_s2 + $0xe8] sm:$0xff] %v1484_v55  ;;  %v1512_v3 = vpop.f32.mrb[72].mxu0 }
 0x18a   :  { %v1514_v4 = vpop.f32.mrb[73].mxu0 }
 0x18b   :  { %v1515_v5 = vpop.f32.mrb[74].mxu0 }
 0x18c   :  { %v1199_v61 = vpop.f32.mrb[60].mxu1  ;;  %v1517_v6 = vpop.f32.mrb[75].mxu0 }
 0x18d   :  { %v1489_v62 = vadd.f32 %v1488_v37, %v1199_v61  ;;  %v1201_v63 = vpop.f32.mrb[61].mxu1 }
 0x18e   :  { %v1202_v0 = vpop.f32.mrb[62].mxu1 }
 0x18f   :  { %1653 = vst [vmem:[%s2884_s2 + $0xf0] sm:$0xff] %v1489_v62  ;;  %v1492_v1 = vadd.f32 %v1491_v39, %v1202_v0  ;;  %v1204_v2 = vpop.f32.mrb[63].mxu1 }
 0x191   :  { %1654 = vst [vmem:[%s2884_s2 + $0xf8] sm:$0xff] %v1492_v1  ;;  %v1520_v13 = vpop.f32.mrb[76].mxu0 }
 0x192   :  { %v1522_v14 = vpop.f32.mrb[77].mxu0 }
 0x193   :  { %v1523_v15 = vpop.f32.mrb[78].mxu0 }
 0x194   :  { %v1207_v7 = vpop.f32.mrb[64].mxu1  ;;  %v1525_v16 = vpop.f32.mrb[79].mxu0 }
 0x195   :  { %v1497_v8 = vadd.f32 %v1496_v47, %v1207_v7  ;;  %v1209_v9 = vpop.f32.mrb[65].mxu1 }
 0x196   :  { %v1210_v10 = vpop.f32.mrb[66].mxu1 }
 0x197   :  { %1655 = vst [vmem:[%s2884_s2 + $0x100] sm:$0xff] %v1497_v8  ;;  %v1500_v11 = vadd.f32 %v1499_v49, %v1210_v10  ;;  %v1212_v12 = vpop.f32.mrb[67].mxu1 }
 0x199   :  { %1656 = vst [vmem:[%s2884_s2 + $0x108] sm:$0xff] %v1500_v11  ;;  %v1528_v23 = vpop.f32.mrb[80].mxu0 }
 0x19a   :  { %v1530_v24 = vpop.f32.mrb[81].mxu0 }
 0x19b   :  { %v1531_v25 = vpop.f32.mrb[82].mxu0 }
 0x19c   :  { %v1215_v17 = vpop.f32.mrb[68].mxu1  ;;  %v1533_v26 = vpop.f32.mrb[83].mxu0 }
 0x19d   :  { %v1505_v18 = vadd.f32 %v1504_v57, %v1215_v17  ;;  %v1217_v19 = vpop.f32.mrb[69].mxu1 }
 0x19e   :  { %v1218_v20 = vpop.f32.mrb[70].mxu1 }
 0x19f   :  { %1657 = vst [vmem:[%s2884_s2 + $0x110] sm:$0xff] %v1505_v18  ;;  %v1508_v21 = vadd.f32 %v1507_v59, %v1218_v20  ;;  %v1220_v22 = vpop.f32.mrb[71].mxu1 }
 0x1a1   :  { %1658 = vst [vmem:[%s2884_s2 + $0x118] sm:$0xff] %v1508_v21  ;;  %v1536_v33 = vpop.f32.mrb[84].mxu0 }
 0x1a2   :  { %v1538_v34 = vpop.f32.mrb[85].mxu0 }
 0x1a3   :  { %v1539_v35 = vpop.f32.mrb[86].mxu0 }
 0x1a4   :  { %v1223_v27 = vpop.f32.mrb[72].mxu1  ;;  %v1541_v36 = vpop.f32.mrb[87].mxu0 }
 0x1a5   :  { %v1513_v28 = vadd.f32 %v1512_v3, %v1223_v27  ;;  %v1225_v29 = vpop.f32.mrb[73].mxu1 }
 0x1a6   :  { %v1226_v30 = vpop.f32.mrb[74].mxu1 }
 0x1a7   :  { %1659 = vst [vmem:[%s2884_s2 + $0x120] sm:$0xff] %v1513_v28  ;;  %v1516_v31 = vadd.f32 %v1515_v5, %v1226_v30  ;;  %v1228_v32 = vpop.f32.mrb[75].mxu1 }
 0x1a9   :  { %1660 = vst [vmem:[%s2884_s2 + $0x128] sm:$0xff] %v1516_v31  ;;  %v1544_v43 = vpop.f32.mrb[88].mxu0 }
 0x1aa   :  { %v1546_v44 = vpop.f32.mrb[89].mxu0 }
 0x1ab   :  { %v1547_v45 = vpop.f32.mrb[90].mxu0 }
 0x1ac   :  { %v1231_v37 = vpop.f32.mrb[76].mxu1  ;;  %v1549_v46 = vpop.f32.mrb[91].mxu0 }
 0x1ad   :  { %v1521_v38 = vadd.f32 %v1520_v13, %v1231_v37  ;;  %v1233_v39 = vpop.f32.mrb[77].mxu1 }
 0x1ae   :  { %v1234_v40 = vpop.f32.mrb[78].mxu1 }
 0x1af   :  { %1661 = vst [vmem:[%s2884_s2 + $0x130] sm:$0xff] %v1521_v38  ;;  %v1524_v41 = vadd.f32 %v1523_v15, %v1234_v40  ;;  %v1236_v42 = vpop.f32.mrb[79].mxu1 }
 0x1b1   :  { %1662 = vst [vmem:[%s2884_s2 + $0x138] sm:$0xff] %v1524_v41  ;;  %v1552_v53 = vpop.f32.mrb[92].mxu0 }
 0x1b2   :  { %v1554_v54 = vpop.f32.mrb[93].mxu0 }
 0x1b3   :  { %v1555_v55 = vpop.f32.mrb[94].mxu0 }
 0x1b4   :  { %v1239_v47 = vpop.f32.mrb[80].mxu1  ;;  %v1557_v56 = vpop.f32.mrb[95].mxu0 }
 0x1b5   :  { %v1529_v48 = vadd.f32 %v1528_v23, %v1239_v47  ;;  %v1241_v49 = vpop.f32.mrb[81].mxu1 }
 0x1b6   :  { %v1242_v50 = vpop.f32.mrb[82].mxu1 }
 0x1b7   :  { %1663 = vst [vmem:[%s2884_s2 + $0x140] sm:$0xff] %v1529_v48  ;;  %v1532_v51 = vadd.f32 %v1531_v25, %v1242_v50  ;;  %v1244_v52 = vpop.f32.mrb[83].mxu1 }
 0x1b9   :  { %1664 = vst [vmem:[%s2884_s2 + $0x148] sm:$0xff] %v1532_v51  ;;  %v1560_v63 = vpop.f32.mrb[96].mxu0 }
 0x1ba   :  { %v1562_v0 = vpop.f32.mrb[97].mxu0 }
 0x1bb   :  { %v1563_v1 = vpop.f32.mrb[98].mxu0 }
 0x1bc   :  { %v1247_v57 = vpop.f32.mrb[84].mxu1  ;;  %v1565_v2 = vpop.f32.mrb[99].mxu0 }
 0x1bd   :  { %v1537_v58 = vadd.f32 %v1536_v33, %v1247_v57  ;;  %v1249_v59 = vpop.f32.mrb[85].mxu1 }
 0x1be   :  { %v1250_v60 = vpop.f32.mrb[86].mxu1 }
 0x1bf   :  { %1665 = vst [vmem:[%s2884_s2 + $0x150] sm:$0xff] %v1537_v58  ;;  %v1540_v61 = vadd.f32 %v1539_v35, %v1250_v60  ;;  %v1252_v62 = vpop.f32.mrb[87].mxu1 }
 0x1c1   :  { %1666 = vst [vmem:[%s2884_s2 + $0x158] sm:$0xff] %v1540_v61  ;;  %v1568_v9 = vpop.f32.mrb[100].mxu0 }
 0x1c2   :  { %v1570_v10 = vpop.f32.mrb[101].mxu0 }
 0x1c3   :  { %v1571_v11 = vpop.f32.mrb[102].mxu0 }
 0x1c4   :  { %v1255_v3 = vpop.f32.mrb[88].mxu1  ;;  %v1573_v12 = vpop.f32.mrb[103].mxu0 }
 0x1c5   :  { %v1545_v4 = vadd.f32 %v1544_v43, %v1255_v3  ;;  %v1257_v5 = vpop.f32.mrb[89].mxu1 }
 0x1c6   :  { %v1258_v6 = vpop.f32.mrb[90].mxu1 }
 0x1c7   :  { %1667 = vst [vmem:[%s2884_s2 + $0x160] sm:$0xff] %v1545_v4  ;;  %v1548_v7 = vadd.f32 %v1547_v45, %v1258_v6  ;;  %v1260_v8 = vpop.f32.mrb[91].mxu1 }
 0x1c9   :  { %1668 = vst [vmem:[%s2884_s2 + $0x168] sm:$0xff] %v1548_v7  ;;  %v1576_v19 = vpop.f32.mrb[104].mxu0 }
 0x1ca   :  { %v1578_v20 = vpop.f32.mrb[105].mxu0 }
 0x1cb   :  { %v1579_v21 = vpop.f32.mrb[106].mxu0 }
 0x1cc   :  { %v1263_v13 = vpop.f32.mrb[92].mxu1  ;;  %v1581_v22 = vpop.f32.mrb[107].mxu0 }
 0x1cd   :  { %v1553_v14 = vadd.f32 %v1552_v53, %v1263_v13  ;;  %v1265_v15 = vpop.f32.mrb[93].mxu1 }
 0x1ce   :  { %v1266_v16 = vpop.f32.mrb[94].mxu1 }
 0x1cf   :  { %1669 = vst [vmem:[%s2884_s2 + $0x170] sm:$0xff] %v1553_v14  ;;  %v1556_v17 = vadd.f32 %v1555_v55, %v1266_v16  ;;  %v1268_v18 = vpop.f32.mrb[95].mxu1 }
 0x1d1   :  { %1670 = vst [vmem:[%s2884_s2 + $0x178] sm:$0xff] %v1556_v17  ;;  %v1584_v29 = vpop.f32.mrb[108].mxu0 }
 0x1d2   :  { %v1586_v30 = vpop.f32.mrb[109].mxu0 }
 0x1d3   :  { %v1587_v31 = vpop.f32.mrb[110].mxu0 }
 0x1d4   :  { %v1271_v23 = vpop.f32.mrb[96].mxu1  ;;  %v1589_v32 = vpop.f32.mrb[111].mxu0 }
 0x1d5   :  { %v1561_v24 = vadd.f32 %v1560_v63, %v1271_v23  ;;  %v1273_v25 = vpop.f32.mrb[97].mxu1 }
 0x1d6   :  { %v1274_v26 = vpop.f32.mrb[98].mxu1 }
 0x1d7   :  { %1671 = vst [vmem:[%s2884_s2 + $0x180] sm:$0xff] %v1561_v24  ;;  %v1564_v27 = vadd.f32 %v1563_v1, %v1274_v26  ;;  %v1276_v28 = vpop.f32.mrb[99].mxu1 }
 0x1d9   :  { %1672 = vst [vmem:[%s2884_s2 + $0x188] sm:$0xff] %v1564_v27  ;;  %v1592_v39 = vpop.f32.mrb[112].mxu0 }
 0x1da   :  { %v1594_v40 = vpop.f32.mrb[113].mxu0 }
 0x1db   :  { %v1595_v41 = vpop.f32.mrb[114].mxu0 }
 0x1dc   :  { %v1279_v33 = vpop.f32.mrb[100].mxu1  ;;  %v1597_v42 = vpop.f32.mrb[115].mxu0 }
 0x1dd   :  { %v1569_v34 = vadd.f32 %v1568_v9, %v1279_v33  ;;  %v1281_v35 = vpop.f32.mrb[101].mxu1 }
 0x1de   :  { %v1282_v36 = vpop.f32.mrb[102].mxu1 }
 0x1df   :  { %1673 = vst [vmem:[%s2884_s2 + $0x190] sm:$0xff] %v1569_v34  ;;  %v1572_v37 = vadd.f32 %v1571_v11, %v1282_v36  ;;  %v1284_v38 = vpop.f32.mrb[103].mxu1 }
 0x1e1   :  { %1674 = vst [vmem:[%s2884_s2 + $0x198] sm:$0xff] %v1572_v37  ;;  %v1600_v49 = vpop.f32.mrb[116].mxu0 }
 0x1e2   :  { %v1602_v50 = vpop.f32.mrb[117].mxu0 }
 0x1e3   :  { %v1603_v51 = vpop.f32.mrb[118].mxu0 }
 0x1e4   :  { %v1287_v43 = vpop.f32.mrb[104].mxu1  ;;  %v1605_v52 = vpop.f32.mrb[119].mxu0 }
 0x1e5   :  { %v1577_v44 = vadd.f32 %v1576_v19, %v1287_v43  ;;  %v1289_v45 = vpop.f32.mrb[105].mxu1 }
 0x1e6   :  { %v1290_v46 = vpop.f32.mrb[106].mxu1 }
 0x1e7   :  { %1675 = vst [vmem:[%s2884_s2 + $0x1a0] sm:$0xff] %v1577_v44  ;;  %v1580_v47 = vadd.f32 %v1579_v21, %v1290_v46  ;;  %v1292_v48 = vpop.f32.mrb[107].mxu1 }
 0x1e9   :  { %1676 = vst [vmem:[%s2884_s2 + $0x1a8] sm:$0xff] %v1580_v47  ;;  %v1608_v59 = vpop.f32.mrb[120].mxu0 }
 0x1ea   :  { %v1610_v60 = vpop.f32.mrb[121].mxu0 }
 0x1eb   :  { %v1611_v61 = vpop.f32.mrb[122].mxu0 }
 0x1ec   :  { %v1295_v53 = vpop.f32.mrb[108].mxu1  ;;  %v1613_v62 = vpop.f32.mrb[123].mxu0 }
 0x1ed   :  { %v1585_v54 = vadd.f32 %v1584_v29, %v1295_v53  ;;  %v1297_v55 = vpop.f32.mrb[109].mxu1 }
 0x1ee   :  { %v1298_v56 = vpop.f32.mrb[110].mxu1 }
 0x1ef   :  { %1677 = vst [vmem:[%s2884_s2 + $0x1b0] sm:$0xff] %v1585_v54  ;;  %v1588_v57 = vadd.f32 %v1587_v31, %v1298_v56  ;;  %v1300_v58 = vpop.f32.mrb[111].mxu1 }
 0x1f1   :  { %1678 = vst [vmem:[%s2884_s2 + $0x1b8] sm:$0xff] %v1588_v57  ;;  %v1616_v5 = vpop.f32.mrb[124].mxu0 }
 0x1f2   :  { %v1618_v6 = vpop.f32.mrb[125].mxu0 }
 0x1f3   :  { %v1619_v7 = vpop.f32.mrb[126].mxu0 }
 0x1f4   :  { %v1303_v63 = vpop.f32.mrb[112].mxu1  ;;  %v1621_v8 = vpop.f32.mrb[127].mxu0 }
 0x1f5   :  { %v1593_v0 = vadd.f32 %v1592_v39, %v1303_v63  ;;  %v1305_v1 = vpop.f32.mrb[113].mxu1 }
 0x1f6   :  { %v1306_v2 = vpop.f32.mrb[114].mxu1 }
 0x1f7   :  { %1679 = vst [vmem:[%s2884_s2 + $0x1c0] sm:$0xff] %v1593_v0  ;;  %v1596_v3 = vadd.f32 %v1595_v41, %v1306_v2  ;;  %v1308_v4 = vpop.f32.mrb[115].mxu1 }
 0x1f9   :  { %1680 = vst [vmem:[%s2884_s2 + $0x1c8] sm:$0xff] %v1596_v3 }
 0x1fc   :  { %v1311_v9 = vpop.f32.mrb[116].mxu1 }
 0x1fd   :  { %v1601_v10 = vadd.f32 %v1600_v49, %v1311_v9  ;;  %v1313_v11 = vpop.f32.mrb[117].mxu1 }
 0x1fe   :  { %v1314_v12 = vpop.f32.mrb[118].mxu1 }
 0x1ff   :  { %1681 = vst [vmem:[%s2884_s2 + $0x1d0] sm:$0xff] %v1601_v10  ;;  %v1604_v13 = vadd.f32 %v1603_v51, %v1314_v12  ;;  %v1316_v14 = vpop.f32.mrb[119].mxu1 }
 0x201   :  { %1682 = vst [vmem:[%s2884_s2 + $0x1d8] sm:$0xff] %v1604_v13 }
 0x204   :  { %v1319_v15 = vpop.f32.mrb[120].mxu1 }
 0x205   :  { %v1609_v16 = vadd.f32 %v1608_v59, %v1319_v15  ;;  %v1321_v17 = vpop.f32.mrb[121].mxu1 }
 0x206   :  { %v1322_v18 = vpop.f32.mrb[122].mxu1 }
 0x207   :  { %1683 = vst [vmem:[%s2884_s2 + $0x1e0] sm:$0xff] %v1609_v16  ;;  %v1612_v19 = vadd.f32 %v1611_v61, %v1322_v18  ;;  %v1324_v20 = vpop.f32.mrb[123].mxu1 }
 0x209   :  { %1684 = vst [vmem:[%s2884_s2 + $0x1e8] sm:$0xff] %v1612_v19 }
 0x20c   :  { %v1327_v21 = vpop.f32.mrb[124].mxu1 }
 0x20d   :  { %v1617_v22 = vadd.f32 %v1616_v5, %v1327_v21  ;;  %v1329_v23 = vpop.f32.mrb[125].mxu1 }
 0x20e   :  { %v1330_v24 = vpop.f32.mrb[126].mxu1 }
 0x20f   :  { %1685 = vst [vmem:[%s2884_s2 + $0x1f0] sm:$0xff] %v1617_v22  ;;  %v1620_v25 = vadd.f32 %v1619_v7, %v1330_v24  ;;  %v1332_v26 = vpop.f32.mrb[127].mxu1 }
 0x211   :  { %1686 = vst [vmem:[%s2884_s2 + $0x1f8] sm:$0xff] %v1620_v25 }

</bundles_post_ra>
